<compile_context>
chip_gen: v7x
topology: tpu7x:2x2x1
jax: 0.10.0
libtpu: 0.0.40
codegen_flags: <defaults>
</compile_context>

<pallas_src>
import functools

import jax
import jax.numpy as jnp
from jax.experimental import pallas as pl
from jax.experimental.pallas import tpu as pltpu

EPS = 1e-5
LANE = 128


def _round_up(x, m):
    return (x + m - 1) // m * m


def _detect_hw():
    """(#TensorCores capped at 2, VMEM capacity bytes); safe fallbacks."""
    cores, vmem = 1, 128 * 1024 * 1024
    try:
        info = pltpu.get_tpu_info()
        vmem = int(getattr(info, "vmem_capacity_bytes", vmem) or vmem)
        for name in ("num_cores", "core_count", "num_tensorcores"):
            v = getattr(info, name, None)
            if v:
                cores = int(v)
                break
    except Exception:
        pass
    if cores <= 1:
        try:
            cores = int(getattr(jax.devices()[0], "num_cores", 1) or 1)
        except Exception:
            cores = 1
    return max(1, min(cores, 2)), vmem


_NUM_CORES, _VMEM_CAP = _detect_hw()


# --------------------------------------------------------------------------
# in-kernel helpers
# --------------------------------------------------------------------------
def _im2col_1x3(x2, mask_l, mask_r):
    """x2: (n, C) f32 flattened (row, w) raster.  Returns the 1x3-conv im2col
    operand (n, 3C).  The W shifts are sublane rolls; the wrapped rows land on
    the w==0 / w==W-1 positions that the conv padding zeroes, so the constant
    (n, 1) multiplicative masks restore exact zero-padding semantics."""
    n = x2.shape[0]
    x_m1 = pltpu.roll(x2, 1, 0) * mask_l              # x[w-1]
    x_p1 = pltpu.roll(x2, n - 1, 0) * mask_r          # x[w+1]
    return jnp.concatenate([x_m1, x2, x_p1], axis=-1)


def _sum_sumsq(y):
    """(n, C) f32 -> (2, C): row 0 = sum, row 1 = sum of squares."""
    return jnp.concatenate([jnp.sum(y, axis=0, keepdims=True),
                            jnp.sum(y * y, axis=0, keepdims=True)], axis=0)


# --------------------------------------------------------------------------
# kernel 1: conv1 fused with the downsample conv (one MXU matmul) + BN stats
# --------------------------------------------------------------------------
def _conv1_kernel(x_ref, w_ref, ml_ref, mr_ref, y_ref, s_ref):
    i = pl.program_id(1)
    x2 = x_ref[...].astype(jnp.float32)                       # (n, Cin_p)
    xcat = _im2col_1x3(x2, ml_ref[...], mr_ref[...]).astype(w_ref.dtype)
    y = jnp.dot(xcat, w_ref[...], preferred_element_type=jnp.float32)
    y_ref[...] = y.astype(y_ref.dtype)

    @pl.when(i == 0)
    def _init():
        s_ref[...] = jnp.zeros_like(s_ref)

    # padded input rows are all-zero and the conv has no bias, so they
    # contribute exactly zero to the statistics.
    s_ref[...] += _sum_sumsq(y)[None]


# --------------------------------------------------------------------------
# kernel 2: BN1 (folded scale/shift) + ReLU + conv2 + BN stats
# --------------------------------------------------------------------------
def _conv2_kernel(y1_ref, sc1_ref, sh1_ref, ml_ref, mr_ref, w_ref, y2_ref,
                  s_ref, *, tiles_per_core, valid_n):
    i = pl.program_id(1)
    y1 = y1_ref[...].astype(jnp.float32)                      # (n, Cp)
    h = jnp.maximum(y1 * sc1_ref[...] + sh1_ref[...], 0.0)    # BN1 + ReLU (f32)
    if valid_n is not None:
        # zero the padded rows so they don't pollute conv2's batch statistics
        n = h.shape[0]
        base = (pl.program_id(0) * tiles_per_core + i) * n
        r = jax.lax.broadcasted_iota(jnp.int32, (n, 1), 0) + base
        h = jnp.where(r < valid_n, h, 0.0)

    xcat = _im2col_1x3(h, ml_ref[...], mr_ref[...]).astype(w_ref.dtype)
    y2 = jnp.dot(xcat, w_ref[...], preferred_element_type=jnp.float32)
    y2_ref[...] = y2.astype(y2_ref.dtype)

    @pl.when(i == 0)
    def _init():
        s_ref[...] = jnp.zeros_like(s_ref)

    s_ref[...] += _sum_sumsq(y2)[None]


# --------------------------------------------------------------------------
# kernel 3: BN2 + residual (identity or BN_d(downsample conv)) + ReLU
# --------------------------------------------------------------------------
def _finalize_kernel(*refs, use_downsample):
    if use_downsample:
        y2_ref, sc2_ref, sh2_ref, yd_ref, scd_ref, shd_ref, o_ref = refs
    else:
        y2_ref, sc2_ref, sh2_ref, res_ref, o_ref = refs
    out = y2_ref[...].astype(jnp.float32) * sc2_ref[...] + sh2_ref[...]
    if use_downsample:
        out = out + yd_ref[...].astype(jnp.float32) * scd_ref[...] + shd_ref[...]
    else:
        out = out + res_ref[...].astype(jnp.float32)
    o_ref[...] = jnp.maximum(out, 0.0).astype(o_ref.dtype)


# --------------------------------------------------------------------------
# wrapper
# --------------------------------------------------------------------------
def _bn_affine(stats, count, gamma, beta, nchan, cp):
    """Fold batch mean / biased var + BN affine params into scale/shift."""
    mean = stats[0] / count
    var = jnp.maximum(stats[1] / count - mean * mean, 0.0)
    inv = jax.lax.rsqrt(var + EPS)
    g = jnp.zeros((cp,), jnp.float32).at[:nchan].set(gamma.astype(jnp.float32))
    b = jnp.zeros((cp,), jnp.float32).at[:nchan].set(beta.astype(jnp.float32))
    scale = g * inv
    shift = b - mean * scale
    return scale.reshape(1, cp), shift.reshape(1, cp)


@functools.partial(jax.jit, static_argnames=("inplanes", "planes", "stride",
                                             "compute_dtype", "row_tile"))
def basic_block_pallas(x_nchw, params, *, inplanes, planes, stride=1,
                       compute_dtype=jnp.bfloat16, row_tile=512):
    """BasicBlock forward (PyTorch training-mode BatchNorm semantics)."""
    assert stride == 1, "stride > 1 not implemented"   # TODO(synk)
    N, C, H, width = x_nchw.shape
    assert C == inplanes
    use_downsample = inplanes != planes

    cin_p = _round_up(inplanes, LANE)
    cp = _round_up(planes, LANE)
    ncol = 2 * cp if use_downsample else cp            # fused conv1(+downsample)
    nh = N * H
    count = float(nh * width)                          # real elems/channel for BN
    ab = jnp.dtype(compute_dtype).itemsize

    # ---- per-generation VMEM budget -> row tile ------------------------------
    vmem_limit = min(80 << 20, _VMEM_CAP * 3 // 4)     # ~48 MiB v7x / 80 MiB v5e,v6e
    fixed = 2 * ab * (3 * cin_p * ncol + 3 * cp * cp)  # double-buffered weights
    tile_budget = int(vmem_limit * 0.6) - fixed
    row_bytes = width * (max(
        2 * cin_p * ab + 2 * ncol * ab + (4 * cin_p + ncol) * 4,   # kernel 1
        4 * cp * ab + 6 * cp * 4,                                  # kernel 2
    ) + 512 * ab)                                                  # lane-padded masks
    rt_cap = max(8, (max(tile_budget, 0) // row_bytes) // 8 * 8)
    rt = max(8, min(row_tile, rt_cap, _round_up(nh, 8)))
    tile_n = rt * width

    # ---- megacore split (v7x: 2 TensorCores) ---------------------------------
    total_tiles = -(-nh // rt)
    ncores = max(1, min(_NUM_CORES, total_tiles))
    tpc = -(-total_tiles // ncores)
    nh_pad = ncores * tpc * rt
    valid_n = nh * width if nh_pad != nh else None

    # NCHW -> flattened (N*H*W, C) raster, channels lane-dense & padded to 128.
    # TODO(synk): keep the surrounding model NHWC to drop this XLA transpose.
    x = jnp.transpose(x_nchw, (0, 2, 3, 1)).reshape(nh * width, inplanes)
    x = jnp.pad(x, ((0, (nh_pad - nh) * width), (0, cin_p - inplanes)))
    x = x.astype(compute_dtype)

    # constant boundary masks for the 1x3 conv taps (fetched once per kernel)
    wpos = jnp.tile(jnp.arange(width, dtype=jnp.int32), rt)
    mask_l = (wpos >= 1).astype(compute_dtype).reshape(tile_n, 1)
    mask_r = (wpos <= width - 2).astype(compute_dtype).reshape(tile_n, 1)

    # Fused (3*Cin_p, ncol) weights for the single K=3C matmul per conv; conv1
    # and the downsample conv share one matmul (output lanes [0:cp) / [cp:2cp)).
    def fuse_w(ws, cin):
        cinp = _round_up(cin, LANE)
        blocks = []
        for w in ws:
            wp = jnp.zeros((3, cinp, cp), jnp.float32)
            wp = wp.at[:, :cin, :w.shape[-1]].set(w)
            blocks.append(wp)
        wf = jnp.concatenate(blocks, axis=-1)
        return wf.reshape(3 * cinp, wf.shape[-1]).astype(compute_dtype)

    w1f = fuse_w([params["w1"]] + ([params["wd"]] if use_downsample else []),
                 inplanes)                              # (3*cin_p, ncol)
    w2f = fuse_w([params["w2"]], planes)                # (3*cp, cp)

    grid = (ncores, tpc)

    def act_spec(nlanes, lane_block=0):
        return pl.BlockSpec((tile_n, nlanes),
                            lambda c, i, lb=lane_block: (c * tpc + i, lb))

    def const2(shape):
        return pl.BlockSpec(shape, lambda c, i: (0, 0))

    x_spec = act_spec(cin_p)
    y1_spec = act_spec(ncol)
    y1lo_spec = act_spec(cp, 0)          # conv1 lanes of the fused slab
    yd_spec = act_spec(cp, 1)            # downsample lanes of the fused slab
    y2_spec = act_spec(cp)
    w1_spec = const2((3 * cin_p, ncol))
    w2_spec = const2((3 * cp, cp))
    m_spec = const2((tile_n, 1))
    vec_spec = const2((1, cp))
    s1_spec = pl.BlockSpec((1, 2, ncol), lambda c, i: (c, 0, 0))
    s2_spec = pl.BlockSpec((1, 2, cp), lambda c, i: (c, 0, 0))

    acc_cp = pltpu.CompilerParams(dimension_semantics=("parallel", "arbitrary"),
                                  vmem_limit_bytes=int(vmem_limit))
    par_cp = pltpu.CompilerParams(dimension_semantics=("parallel", "parallel"),
                                  vmem_limit_bytes=int(vmem_limit))

    y1_shape = jax.ShapeDtypeStruct((nh_pad * width, ncol), compute_dtype)
    y2_shape = jax.ShapeDtypeStruct((nh_pad * width, cp), compute_dtype)
    s1_shape = jax.ShapeDtypeStruct((ncores, 2, ncol), jnp.float32)
    s2_shape = jax.ShapeDtypeStruct((ncores, 2, cp), jnp.float32)
    o_shape = jax.ShapeDtypeStruct((nh_pad * width, cp), compute_dtype)

    # ---- kernel 1: conv1 (+ fused downsample conv) + streamed BN stats -------
    y1, s1 = pl.pallas_call(
        _conv1_kernel, grid=grid,
        in_specs=[x_spec, w1_spec, m_spec, m_spec],
        out_specs=(y1_spec, s1_spec),
        out_shape=(y1_shape, s1_shape),
        compiler_params=acc_cp)(x, w1f, mask_l, mask_r)

    s1 = jnp.sum(s1, axis=0)             # reduce per-core partial stats
    sc1, sh1 = _bn_affine(s1[:, :cp], count, params["g1"], params["b1"],
                          planes, cp)

    # ---- kernel 2: BN1 + ReLU + conv2 + streamed BN stats --------------------
    k2 = functools.partial(_conv2_kernel, tiles_per_core=tpc, valid_n=valid_n)
    y2, s2 = pl.pallas_call(
        k2, grid=grid,
        in_specs=[y1lo_spec, vec_spec, vec_spec, m_spec, m_spec, w2_spec],
        out_specs=(y2_spec, s2_spec),
        out_shape=(y2_shape, s2_shape),
        compiler_params=acc_cp)(y1, sc1, sh1, mask_l, mask_r, w2f)

    s2 = jnp.sum(s2, axis=0)
    sc2, sh2 = _bn_affine(s2, count, params["g2"], params["b2"], planes, cp)

    # ---- kernel 3: BN2 + residual + ReLU (elementwise, fully parallel) -------
    k3 = functools.partial(_finalize_kernel, use_downsample=use_downsample)
    if use_downsample:
        scd, shd = _bn_affine(s1[:, cp:], count, params["gd"], params["bd"],
                              planes, cp)
        out = pl.pallas_call(
            k3, grid=grid,
            in_specs=[y2_spec, vec_spec, vec_spec, yd_spec, vec_spec, vec_spec],
            out_specs=y2_spec,
            out_shape=o_shape,
            compiler_params=par_cp)(y2, sc2, sh2, y1, scd, shd)
    else:
        out = pl.pallas_call(
            k3, grid=grid,
            in_specs=[y2_spec, vec_spec, vec_spec, x_spec],
            out_specs=y2_spec,
            out_shape=o_shape,
            compiler_params=par_cp)(y2, sc2, sh2, x)

    # drop row/channel padding, back to NCHW
    out = out[: nh * width, :planes].reshape(N, H, width, planes)
    return jnp.transpose(out, (0, 3, 1, 2))


# --------------------------------------------------------------------------
# pure-JAX reference (PyTorch training-mode semantics) + param init
# --------------------------------------------------------------------------
def _conv1x3_ref(x_nhwc, w):  # w: (3, Cin, Cout)
    return jax.lax.conv_general_dilated(
        x_nhwc, w[None], window_strides=(1, 1), padding=((0, 0), (1, 1)),
        dimension_numbers=("NHWC", "HWIO", "NHWC"))


def _bn_ref(y, g, b):
    mean = jnp.mean(y, axis=(0, 1, 2), keepdims=True)
    var = jnp.mean((y - mean) ** 2, axis=(0, 1, 2), keepdims=True)
    return (y - mean) * jax.lax.rsqrt(var + EPS) * g.reshape(1, 1, 1, -1) \
        + b.reshape(1, 1, 1, -1)


def basic_block_ref(x_nchw, params, *, inplanes, planes):
    x = jnp.transpose(x_nchw, (0, 2, 3, 1))
    out = _bn_ref(_conv1x3_ref(x, params["w1"]), params["g1"], params["b1"])
    out = jnp.maximum(out, 0.0)
    out = _bn_ref(_conv1x3_ref(out, params["w2"]), params["g2"], params["b2"])
    if inplanes != planes:
        res = _bn_ref(_conv1x3_ref(x, params["wd"]), params["gd"], params["bd"])
    else:
        res = x
    return jnp.transpose(jnp.maximum(out + res, 0.0), (0, 3, 1, 2))


def init_params(key, inplanes, planes):
    k1, k2, kd, kg = jax.random.split(key, 4)
    s1 = 1.0 / jnp.sqrt(3.0 * inplanes)
    s2 = 1.0 / jnp.sqrt(3.0 * planes)
    g = jax.random.split(kg, 6)
    p = {
        # conv weights as (kw, Cin, Cout); PyTorch (Cout, Cin, 1, kw) maps via
        # w[kw, ci, co] = W_pt[co, ci, 0, kw].
        "w1": (jax.random.normal(k1, (3, inplanes, planes)) * s1).astype(jnp.float32),
        "g1": 1.0 + 0.1 * jax.random.normal(g[0], (planes,), jnp.float32),
        "b1": 0.1 * jax.random.normal(g[1], (planes,), jnp.float32),
        "w2": (jax.random.normal(k2, (3, planes, planes)) * s2).astype(jnp.float32),
        "g2": 1.0 + 0.1 * jax.random.normal(g[2], (planes,), jnp.float32),
        "b2": 0.1 * jax.random.normal(g[3], (planes,), jnp.float32),
    }
    if inplanes != planes:
        p.update({
            "wd": (jax.random.normal(kd, (3, inplanes, planes)) * s1).astype(jnp.float32),
            "gd": 1.0 + 0.1 * jax.random.normal(g[4], (planes,), jnp.float32),
            "bd": 0.1 * jax.random.normal(g[5], (planes,), jnp.float32),
        })
    return p


if __name__ == "__main__":
    key = jax.random.PRNGKey(0)
    N, Cin, H, Wd = 2, 4, 8, 16
    planes = 8  # inplanes != planes -> exercises the fused downsample branch

    kx, kp, kx2 = jax.random.split(key, 3)
    x = jax.random.normal(kx, (N, Cin, H, Wd), dtype=jnp.float32)
    params = init_params(kp, Cin, planes)
    ref = basic_block_ref(x, params, inplanes=Cin, planes=planes)

    # 1) downsample path, f32 matmuls (tight check of kernel logic)
    out = jax.block_until_ready(
        basic_block_pallas(x, params, inplanes=Cin, planes=planes,
                           compute_dtype=jnp.float32))
    assert out.shape == (N, planes, H, Wd)
    err = float(jnp.max(jnp.abs(out - ref)))
    assert err < 2e-3, err

    # 2) downsample path, bf16 matmuls with f32 accumulation (loose check)
    out_bf = jax.block_until_ready(
        basic_block_pallas(x, params, inplanes=Cin, planes=planes,
                           compute_dtype=jnp.bfloat16))
    err_bf = float(jnp.max(jnp.abs(out_bf - ref)))
    assert err_bf < 1e-1, err_bf

    # 3) identity-residual path (inplanes == planes), f32
    x2 = jax.random.normal(kx2, (N, planes, H, Wd), dtype=jnp.float32)
    params2 = init_params(kp, planes, planes)
    out2 = jax.block_until_ready(
        basic_block_pallas(x2, params2, inplanes=planes, planes=planes,
                           compute_dtype=jnp.float32))
    ref2 = basic_block_ref(x2, params2, inplanes=planes, planes=planes)
    err2 = float(jnp.max(jnp.abs(out2 - ref2)))
    assert err2 < 2e-3, err2

    print("KERNEL_OK")
</pallas_src>

<mosaic_0001>
module attributes {stable_mosaic.version = 11 : i64} {
  func.func @_conv1_kernel(%arg0: i32, %arg1: i32, %arg2: memref<256x128xf32, #tpu.memory_space<vmem>>, %arg3: memref<384x256xf32, #tpu.memory_space<vmem>>, %arg4: memref<256x1xf32, #tpu.memory_space<vmem>>, %arg5: memref<256x1xf32, #tpu.memory_space<vmem>>, %arg6: memref<256x256xf32, #tpu.memory_space<vmem>>, %arg7: memref<1x2x256xf32, #tpu.memory_space<vmem>>) attributes {dimension_semantics = [#tpu.dimension_semantics<parallel>, #tpu.dimension_semantics<arbitrary>], iteration_bounds = array<i64: 1, 1>, scalar_prefetch = 0 : i64, scratch_operands = 0 : i64, tpu.core_type = #tpu.core_type<tc>, window_params = [{transform_indices = @transform_0, window_bounds = array<i64: 256, 128>}, {pipeline_mode = #tpu.pipeline_mode<synchronous>, transform_indices = @transform_1, window_bounds = array<i64: 384, 256>}, {pipeline_mode = #tpu.pipeline_mode<synchronous>, transform_indices = @transform_2, window_bounds = array<i64: 256, 1>}, {pipeline_mode = #tpu.pipeline_mode<synchronous>, transform_indices = @transform_3, window_bounds = array<i64: 256, 1>}, {transform_indices = @transform_4, window_bounds = array<i64: 256, 256>}, {transform_indices = @transform_5, window_bounds = array<i64: 1, 2, 256>}]} {
    %c0 = arith.constant 0 : index
    %c0_0 = arith.constant 0 : index
    %0 = vector.load %arg2[%c0, %c0_0] : memref<256x128xf32, #tpu.memory_space<vmem>>, vector<256x128xf32>
    %c0_1 = arith.constant 0 : index
    %c0_2 = arith.constant 0 : index
    %1 = vector.load %arg4[%c0_1, %c0_2] : memref<256x1xf32, #tpu.memory_space<vmem>>, vector<256x1xf32>
    %c0_3 = arith.constant 0 : index
    %c0_4 = arith.constant 0 : index
    %2 = vector.load %arg5[%c0_3, %c0_4] : memref<256x1xf32, #tpu.memory_space<vmem>>, vector<256x1xf32>
    %c1_i32 = arith.constant 1 : i32
    %3 = tpu.dynamic_rotate %0 by %c1_i32 dim 0 : vector<256x128xf32>, i32 -> vector<256x128xf32>
    %4 = vector.broadcast %1 : vector<256x1xf32> to vector<256x128xf32>
    %5 = arith.mulf %3, %4 : vector<256x128xf32>
    %c255_i32 = arith.constant 255 : i32
    %6 = tpu.dynamic_rotate %0 by %c255_i32 dim 0 : vector<256x128xf32>, i32 -> vector<256x128xf32>
    %7 = vector.broadcast %2 : vector<256x1xf32> to vector<256x128xf32>
    %8 = arith.mulf %6, %7 : vector<256x128xf32>
    %9 = tpu.concatenate %5, %0, %8 in 1 : vector<256x128xf32>, vector<256x128xf32>, vector<256x128xf32> -> vector<256x384xf32>
    %c0_5 = arith.constant 0 : index
    %c0_6 = arith.constant 0 : index
    %10 = vector.load %arg3[%c0_5, %c0_6] : memref<384x256xf32, #tpu.memory_space<vmem>>, vector<384x256xf32>
    %cst = arith.constant dense<0.000000e+00> : vector<256x256xf32>
    %11 = tpu.matmul %9, %10, %cst {dimension_numbers = #tpu.dot_dimension_numbers<[1], [0], [0], [1], [0, 0, 1, 1], [], []>} : vector<256x384xf32>, vector<384x256xf32>, vector<256x256xf32> -> vector<256x256xf32>
    %c0_7 = arith.constant 0 : index
    %c0_8 = arith.constant 0 : index
    %12 = vector.load %arg6[%c0_7, %c0_8] : memref<256x256xf32, #tpu.memory_space<vmem>>, vector<256x256xf32>
    tpu.vector_store %arg6[%c0_7, %c0_8], %11 {strides = array<i32>} : memref<256x256xf32, #tpu.memory_space<vmem>>, vector<256x256xf32>,
    %c0_i32 = arith.constant 0 : i32
    %13 = arith.cmpi eq, %arg1, %c0_i32 : i32
    %14 = arith.extui %13 : i1 to i32
    %c0_i32_9 = arith.constant 0 : i32
    %15 = arith.cmpi ne, %14, %c0_i32_9 : i32
    scf.if %15 {
      %cst_18 = arith.constant 0.000000e+00 : f32
      %26 = vector.broadcast %cst_18 : f32 to vector<1x2x256xf32>
      %c0_19 = arith.constant 0 : index
      %c0_20 = arith.constant 0 : index
      %c0_21 = arith.constant 0 : index
      %27 = vector.load %arg7[%c0_19, %c0_20, %c0_21] : memref<1x2x256xf32, #tpu.memory_space<vmem>>, vector<1x2x256xf32>
      tpu.vector_store %arg7[%c0_19, %c0_20, %c0_21], %26 {strides = array<i32>} : memref<1x2x256xf32, #tpu.memory_space<vmem>>, vector<1x2x256xf32>,
    } else {
    }
    %c0_10 = arith.constant 0 : index
    %c0_11 = arith.constant 0 : index
    %c0_12 = arith.constant 0 : index
    %16 = vector.load %arg7[%c0_10, %c0_11, %c0_12] : memref<1x2x256xf32, #tpu.memory_space<vmem>>, vector<1x2x256xf32>
    %cst_13 = arith.constant dense<0.000000e+00> : vector<256xf32>
    %17 = vector.multi_reduction <add>, %11, %cst_13 [0] : vector<256x256xf32> to vector<256xf32>
    %18 = vector.shape_cast %17 : vector<256xf32> to vector<1x256xf32>
    %19 = arith.mulf %11, %11 : vector<256x256xf32>
    %cst_14 = arith.constant dense<0.000000e+00> : vector<256xf32>
    %20 = vector.multi_reduction <add>, %19, %cst_14 [0] : vector<256x256xf32> to vector<256xf32>
    %21 = vector.shape_cast %20 : vector<256xf32> to vector<1x256xf32>
    %22 = tpu.concatenate %18, %21 in 0 : vector<1x256xf32>, vector<1x256xf32> -> vector<2x256xf32>
    %23 = vector.shape_cast %22 : vector<2x256xf32> to vector<1x2x256xf32>
    %24 = arith.addf %16, %23 : vector<1x2x256xf32>
    %c0_15 = arith.constant 0 : index
    %c0_16 = arith.constant 0 : index
    %c0_17 = arith.constant 0 : index
    %25 = vector.load %arg7[%c0_15, %c0_16, %c0_17] : memref<1x2x256xf32, #tpu.memory_space<vmem>>, vector<1x2x256xf32>
    tpu.vector_store %arg7[%c0_15, %c0_16, %c0_17], %24 {strides = array<i32>} : memref<1x2x256xf32, #tpu.memory_space<vmem>>, vector<1x2x256xf32>,
    return
  }
  func.func @transform_0(%arg0: i32, %arg1: i32) -> (i32, i32) {
    %c1_i32 = arith.constant 1 : i32
    %0 = arith.muli %arg0, %c1_i32 : i32
    %1 = arith.addi %0, %arg1 : i32
    %c0_i32 = arith.constant 0 : i32
    %c0_i32_0 = arith.constant 0 : i32
    return %1, %c0_i32 : i32, i32
  }
  func.func @transform_1(%arg0: i32, %arg1: i32) -> (i32, i32) {
    %c0_i32 = arith.constant 0 : i32
    %c0_i32_0 = arith.constant 0 : i32
    %c0_i32_1 = arith.constant 0 : i32
    return %c0_i32, %c0_i32_0 : i32, i32
  }
  func.func @transform_2(%arg0: i32, %arg1: i32) -> (i32, i32) {
    %c0_i32 = arith.constant 0 : i32
    %c0_i32_0 = arith.constant 0 : i32
    %c0_i32_1 = arith.constant 0 : i32
    return %c0_i32, %c0_i32_0 : i32, i32
  }
  func.func @transform_3(%arg0: i32, %arg1: i32) -> (i32, i32) {
    %c0_i32 = arith.constant 0 : i32
    %c0_i32_0 = arith.constant 0 : i32
    %c0_i32_1 = arith.constant 0 : i32
    return %c0_i32, %c0_i32_0 : i32, i32
  }
  func.func @transform_4(%arg0: i32, %arg1: i32) -> (i32, i32) {
    %c1_i32 = arith.constant 1 : i32
    %0 = arith.muli %arg0, %c1_i32 : i32
    %1 = arith.addi %0, %arg1 : i32
    %c0_i32 = arith.constant 0 : i32
    %c0_i32_0 = arith.constant 0 : i32
    return %1, %c0_i32 : i32, i32
  }
  func.func @transform_5(%arg0: i32, %arg1: i32) -> (i32, i32, i32) {
    %c0_i32 = arith.constant 0 : i32
    %c0_i32_0 = arith.constant 0 : i32
    %c0_i32_1 = arith.constant 0 : i32
    return %arg0, %c0_i32, %c0_i32_0 : i32, i32, i32
  }
}

module attributes {stable_mosaic.version = 11 : i64} {
  func.func @_finalize_kernel(%arg0: i32, %arg1: i32, %arg2: memref<256x128xf32, #tpu.memory_space<vmem>>, %arg3: memref<1x128xf32, #tpu.memory_space<vmem>>, %arg4: memref<1x128xf32, #tpu.memory_space<vmem>>, %arg5: memref<256x128xf32, #tpu.memory_space<vmem>>, %arg6: memref<1x128xf32, #tpu.memory_space<vmem>>, %arg7: memref<1x128xf32, #tpu.memory_space<vmem>>, %arg8: memref<256x128xf32, #tpu.memory_space<vmem>>) attributes {dimension_semantics = [#tpu.dimension_semantics<parallel>, #tpu.dimension_semantics<parallel>], iteration_bounds = array<i64: 1, 1>, scalar_prefetch = 0 : i64, scratch_operands = 0 : i64, tpu.core_type = #tpu.core_type<tc>, window_params = [{transform_indices = @transform_0, window_bounds = array<i64: 256, 128>}, {pipeline_mode = #tpu.pipeline_mode<synchronous>, transform_indices = @transform_1, window_bounds = array<i64: 1, 128>}, {pipeline_mode = #tpu.pipeline_mode<synchronous>, transform_indices = @transform_2, window_bounds = array<i64: 1, 128>}, {transform_indices = @transform_3, window_bounds = array<i64: 256, 128>}, {pipeline_mode = #tpu.pipeline_mode<synchronous>, transform_indices = @transform_4, window_bounds = array<i64: 1, 128>}, {pipeline_mode = #tpu.pipeline_mode<synchronous>, transform_indices = @transform_5, window_bounds = array<i64: 1, 128>}, {transform_indices = @transform_6, window_bounds = array<i64: 256, 128>}]} {
    %c0 = arith.constant 0 : index
    %c0_0 = arith.constant 0 : index
    %0 = vector.load %arg2[%c0, %c0_0] : memref<256x128xf32, #tpu.memory_space<vmem>>, vector<256x128xf32>
    %c0_1 = arith.constant 0 : index
    %c0_2 = arith.constant 0 : index
    %1 = vector.load %arg3[%c0_1, %c0_2] : memref<1x128xf32, #tpu.memory_space<vmem>>, vector<1x128xf32>
    %2 = vector.broadcast %1 : vector<1x128xf32> to vector<256x128xf32>
    %3 = arith.mulf %0, %2 : vector<256x128xf32>
    %c0_3 = arith.constant 0 : index
    %c0_4 = arith.constant 0 : index
    %4 = vector.load %arg4[%c0_3, %c0_4] : memref<1x128xf32, #tpu.memory_space<vmem>>, vector<1x128xf32>
    %5 = vector.broadcast %4 : vector<1x128xf32> to vector<256x128xf32>
    %6 = arith.addf %3, %5 : vector<256x128xf32>
    %c0_5 = arith.constant 0 : index
    %c0_6 = arith.constant 0 : index
    %7 = vector.load %arg5[%c0_5, %c0_6] : memref<256x128xf32, #tpu.memory_space<vmem>>, vector<256x128xf32>
    %c0_7 = arith.constant 0 : index
    %c0_8 = arith.constant 0 : index
    %8 = vector.load %arg6[%c0_7, %c0_8] : memref<1x128xf32, #tpu.memory_space<vmem>>, vector<1x128xf32>
    %9 = vector.broadcast %8 : vector<1x128xf32> to vector<256x128xf32>
    %10 = arith.mulf %7, %9 : vector<256x128xf32>
    %11 = arith.addf %6, %10 : vector<256x128xf32>
    %c0_9 = arith.constant 0 : index
    %c0_10 = arith.constant 0 : index
    %12 = vector.load %arg7[%c0_9, %c0_10] : memref<1x128xf32, #tpu.memory_space<vmem>>, vector<1x128xf32>
    %13 = vector.broadcast %12 : vector<1x128xf32> to vector<256x128xf32>
    %14 = arith.addf %11, %13 : vector<256x128xf32>
    %cst = arith.constant 0.000000e+00 : f32
    %15 = vector.broadcast %cst : f32 to vector<256x128xf32>
    %16 = arith.maximumf %14, %15 : vector<256x128xf32>
    %c0_11 = arith.constant 0 : index
    %c0_12 = arith.constant 0 : index
    %17 = vector.load %arg8[%c0_11, %c0_12] : memref<256x128xf32, #tpu.memory_space<vmem>>, vector<256x128xf32>
    tpu.vector_store %arg8[%c0_11, %c0_12], %16 {strides = array<i32>} : memref<256x128xf32, #tpu.memory_space<vmem>>, vector<256x128xf32>,
    return
  }
  func.func @transform_0(%arg0: i32, %arg1: i32) -> (i32, i32) {
    %c1_i32 = arith.constant 1 : i32
    %0 = arith.muli %arg0, %c1_i32 : i32
    %1 = arith.addi %0, %arg1 : i32
    %c0_i32 = arith.constant 0 : i32
    %c0_i32_0 = arith.constant 0 : i32
    return %1, %c0_i32 : i32, i32
  }
  func.func @transform_1(%arg0: i32, %arg1: i32) -> (i32, i32) {
    %c0_i32 = arith.constant 0 : i32
    %c0_i32_0 = arith.constant 0 : i32
    %c0_i32_1 = arith.constant 0 : i32
    return %c0_i32, %c0_i32_0 : i32, i32
  }
  func.func @transform_2(%arg0: i32, %arg1: i32) -> (i32, i32) {
    %c0_i32 = arith.constant 0 : i32
    %c0_i32_0 = arith.constant 0 : i32
    %c0_i32_1 = arith.constant 0 : i32
    return %c0_i32, %c0_i32_0 : i32, i32
  }
  func.func @transform_3(%arg0: i32, %arg1: i32) -> (i32, i32) {
    %c1_i32 = arith.constant 1 : i32
    %0 = arith.muli %arg0, %c1_i32 : i32
    %1 = arith.addi %0, %arg1 : i32
    %c1_i32_0 = arith.constant 1 : i32
    %c0_i32 = arith.constant 0 : i32
    return %1, %c1_i32_0 : i32, i32
  }
  func.func @transform_4(%arg0: i32, %arg1: i32) -> (i32, i32) {
    %c0_i32 = arith.constant 0 : i32
    %c0_i32_0 = arith.constant 0 : i32
    %c0_i32_1 = arith.constant 0 : i32
    return %c0_i32, %c0_i32_0 : i32, i32
  }
  func.func @transform_5(%arg0: i32, %arg1: i32) -> (i32, i32) {
    %c0_i32 = arith.constant 0 : i32
    %c0_i32_0 = arith.constant 0 : i32
    %c0_i32_1 = arith.constant 0 : i32
    return %c0_i32, %c0_i32_0 : i32, i32
  }
  func.func @transform_6(%arg0: i32, %arg1: i32) -> (i32, i32) {
    %c1_i32 = arith.constant 1 : i32
    %0 = arith.muli %arg0, %c1_i32 : i32
    %1 = arith.addi %0, %arg1 : i32
    %c0_i32 = arith.constant 0 : i32
    %c0_i32_0 = arith.constant 0 : i32
    return %1, %c0_i32 : i32, i32
  }
}

module attributes {stable_mosaic.version = 11 : i64} {
  func.func @_conv2_kernel(%arg0: i32, %arg1: i32, %arg2: memref<256x128xf32, #tpu.memory_space<vmem>>, %arg3: memref<1x128xf32, #tpu.memory_space<vmem>>, %arg4: memref<1x128xf32, #tpu.memory_space<vmem>>, %arg5: memref<256x1xf32, #tpu.memory_space<vmem>>, %arg6: memref<256x1xf32, #tpu.memory_space<vmem>>, %arg7: memref<384x128xf32, #tpu.memory_space<vmem>>, %arg8: memref<256x128xf32, #tpu.memory_space<vmem>>, %arg9: memref<1x2x128xf32, #tpu.memory_space<vmem>>) attributes {dimension_semantics = [#tpu.dimension_semantics<parallel>, #tpu.dimension_semantics<arbitrary>], iteration_bounds = array<i64: 1, 1>, scalar_prefetch = 0 : i64, scratch_operands = 0 : i64, tpu.core_type = #tpu.core_type<tc>, window_params = [{transform_indices = @transform_0, window_bounds = array<i64: 256, 128>}, {pipeline_mode = #tpu.pipeline_mode<synchronous>, transform_indices = @transform_1, window_bounds = array<i64: 1, 128>}, {pipeline_mode = #tpu.pipeline_mode<synchronous>, transform_indices = @transform_2, window_bounds = array<i64: 1, 128>}, {pipeline_mode = #tpu.pipeline_mode<synchronous>, transform_indices = @transform_3, window_bounds = array<i64: 256, 1>}, {pipeline_mode = #tpu.pipeline_mode<synchronous>, transform_indices = @transform_4, window_bounds = array<i64: 256, 1>}, {pipeline_mode = #tpu.pipeline_mode<synchronous>, transform_indices = @transform_5, window_bounds = array<i64: 384, 128>}, {transform_indices = @transform_6, window_bounds = array<i64: 256, 128>}, {transform_indices = @transform_7, window_bounds = array<i64: 1, 2, 128>}]} {
    %c0 = arith.constant 0 : index
    %c0_0 = arith.constant 0 : index
    %0 = vector.load %arg2[%c0, %c0_0] : memref<256x128xf32, #tpu.memory_space<vmem>>, vector<256x128xf32>
    %c0_1 = arith.constant 0 : index
    %c0_2 = arith.constant 0 : index
    %1 = vector.load %arg3[%c0_1, %c0_2] : memref<1x128xf32, #tpu.memory_space<vmem>>, vector<1x128xf32>
    %2 = vector.broadcast %1 : vector<1x128xf32> to vector<256x128xf32>
    %3 = arith.mulf %0, %2 : vector<256x128xf32>
    %c0_3 = arith.constant 0 : index
    %c0_4 = arith.constant 0 : index
    %4 = vector.load %arg4[%c0_3, %c0_4] : memref<1x128xf32, #tpu.memory_space<vmem>>, vector<1x128xf32>
    %5 = vector.broadcast %4 : vector<1x128xf32> to vector<256x128xf32>
    %6 = arith.addf %3, %5 : vector<256x128xf32>
    %cst = arith.constant 0.000000e+00 : f32
    %7 = vector.broadcast %cst : f32 to vector<256x128xf32>
    %8 = arith.maximumf %6, %7 : vector<256x128xf32>
    %c0_5 = arith.constant 0 : index
    %c0_6 = arith.constant 0 : index
    %9 = vector.load %arg5[%c0_5, %c0_6] : memref<256x1xf32, #tpu.memory_space<vmem>>, vector<256x1xf32>
    %c0_7 = arith.constant 0 : index
    %c0_8 = arith.constant 0 : index
    %10 = vector.load %arg6[%c0_7, %c0_8] : memref<256x1xf32, #tpu.memory_space<vmem>>, vector<256x1xf32>
    %c1_i32 = arith.constant 1 : i32
    %11 = tpu.dynamic_rotate %8 by %c1_i32 dim 0 : vector<256x128xf32>, i32 -> vector<256x128xf32>
    %12 = vector.broadcast %9 : vector<256x1xf32> to vector<256x128xf32>
    %13 = arith.mulf %11, %12 : vector<256x128xf32>
    %c255_i32 = arith.constant 255 : i32
    %14 = tpu.dynamic_rotate %8 by %c255_i32 dim 0 : vector<256x128xf32>, i32 -> vector<256x128xf32>
    %15 = vector.broadcast %10 : vector<256x1xf32> to vector<256x128xf32>
    %16 = arith.mulf %14, %15 : vector<256x128xf32>
    %17 = tpu.concatenate %13, %8, %16 in 1 : vector<256x128xf32>, vector<256x128xf32>, vector<256x128xf32> -> vector<256x384xf32>
    %c0_9 = arith.constant 0 : index
    %c0_10 = arith.constant 0 : index
    %18 = vector.load %arg7[%c0_9, %c0_10] : memref<384x128xf32, #tpu.memory_space<vmem>>, vector<384x128xf32>
    %cst_11 = arith.constant dense<0.000000e+00> : vector<256x128xf32>
    %19 = tpu.matmul %17, %18, %cst_11 {dimension_numbers = #tpu.dot_dimension_numbers<[1], [0], [0], [1], [0, 0, 1, 1], [], []>} : vector<256x384xf32>, vector<384x128xf32>, vector<256x128xf32> -> vector<256x128xf32>
    %c0_12 = arith.constant 0 : index
    %c0_13 = arith.constant 0 : index
    %20 = vector.load %arg8[%c0_12, %c0_13] : memref<256x128xf32, #tpu.memory_space<vmem>>, vector<256x128xf32>
    tpu.vector_store %arg8[%c0_12, %c0_13], %19 {strides = array<i32>} : memref<256x128xf32, #tpu.memory_space<vmem>>, vector<256x128xf32>,
    %c0_i32 = arith.constant 0 : i32
    %21 = arith.cmpi eq, %arg1, %c0_i32 : i32
    %22 = arith.extui %21 : i1 to i32
    %c0_i32_14 = arith.constant 0 : i32
    %23 = arith.cmpi ne, %22, %c0_i32_14 : i32
    scf.if %23 {
      %cst_23 = arith.constant 0.000000e+00 : f32
      %34 = vector.broadcast %cst_23 : f32 to vector<1x2x128xf32>
      %c0_24 = arith.constant 0 : index
      %c0_25 = arith.constant 0 : index
      %c0_26 = arith.constant 0 : index
      %35 = vector.load %arg9[%c0_24, %c0_25, %c0_26] : memref<1x2x128xf32, #tpu.memory_space<vmem>>, vector<1x2x128xf32>
      tpu.vector_store %arg9[%c0_24, %c0_25, %c0_26], %34 {strides = array<i32>} : memref<1x2x128xf32, #tpu.memory_space<vmem>>, vector<1x2x128xf32>,
    } else {
    }
    %c0_15 = arith.constant 0 : index
    %c0_16 = arith.constant 0 : index
    %c0_17 = arith.constant 0 : index
    %24 = vector.load %arg9[%c0_15, %c0_16, %c0_17] : memref<1x2x128xf32, #tpu.memory_space<vmem>>, vector<1x2x128xf32>
    %cst_18 = arith.constant dense<0.000000e+00> : vector<128xf32>
    %25 = vector.multi_reduction <add>, %19, %cst_18 [0] : vector<256x128xf32> to vector<128xf32>
    %26 = vector.shape_cast %25 : vector<128xf32> to vector<1x128xf32>
    %27 = arith.mulf %19, %19 : vector<256x128xf32>
    %cst_19 = arith.constant dense<0.000000e+00> : vector<128xf32>
    %28 = vector.multi_reduction <add>, %27, %cst_19 [0] : vector<256x128xf32> to vector<128xf32>
    %29 = vector.shape_cast %28 : vector<128xf32> to vector<1x128xf32>
    %30 = tpu.concatenate %26, %29 in 0 : vector<1x128xf32>, vector<1x128xf32> -> vector<2x128xf32>
    %31 = vector.shape_cast %30 : vector<2x128xf32> to vector<1x2x128xf32>
    %32 = arith.addf %24, %31 : vector<1x2x128xf32>
    %c0_20 = arith.constant 0 : index
    %c0_21 = arith.constant 0 : index
    %c0_22 = arith.constant 0 : index
    %33 = vector.load %arg9[%c0_20, %c0_21, %c0_22] : memref<1x2x128xf32, #tpu.memory_space<vmem>>, vector<1x2x128xf32>
    tpu.vector_store %arg9[%c0_20, %c0_21, %c0_22], %32 {strides = array<i32>} : memref<1x2x128xf32, #tpu.memory_space<vmem>>, vector<1x2x128xf32>,
    return
  }
  func.func @transform_0(%arg0: i32, %arg1: i32) -> (i32, i32) {
    %c1_i32 = arith.constant 1 : i32
    %0 = arith.muli %arg0, %c1_i32 : i32
    %1 = arith.addi %0, %arg1 : i32
    %c0_i32 = arith.constant 0 : i32
    %c0_i32_0 = arith.constant 0 : i32
    return %1, %c0_i32 : i32, i32
  }
  func.func @transform_1(%arg0: i32, %arg1: i32) -> (i32, i32) {
    %c0_i32 = arith.constant 0 : i32
    %c0_i32_0 = arith.constant 0 : i32
    %c0_i32_1 = arith.constant 0 : i32
    return %c0_i32, %c0_i32_0 : i32, i32
  }
  func.func @transform_2(%arg0: i32, %arg1: i32) -> (i32, i32) {
    %c0_i32 = arith.constant 0 : i32
    %c0_i32_0 = arith.constant 0 : i32
    %c0_i32_1 = arith.constant 0 : i32
    return %c0_i32, %c0_i32_0 : i32, i32
  }
  func.func @transform_3(%arg0: i32, %arg1: i32) -> (i32, i32) {
    %c0_i32 = arith.constant 0 : i32
    %c0_i32_0 = arith.constant 0 : i32
    %c0_i32_1 = arith.constant 0 : i32
    return %c0_i32, %c0_i32_0 : i32, i32
  }
  func.func @transform_4(%arg0: i32, %arg1: i32) -> (i32, i32) {
    %c0_i32 = arith.constant 0 : i32
    %c0_i32_0 = arith.constant 0 : i32
    %c0_i32_1 = arith.constant 0 : i32
    return %c0_i32, %c0_i32_0 : i32, i32
  }
  func.func @transform_5(%arg0: i32, %arg1: i32) -> (i32, i32) {
    %c0_i32 = arith.constant 0 : i32
    %c0_i32_0 = arith.constant 0 : i32
    %c0_i32_1 = arith.constant 0 : i32
    return %c0_i32, %c0_i32_0 : i32, i32
  }
  func.func @transform_6(%arg0: i32, %arg1: i32) -> (i32, i32) {
    %c1_i32 = arith.constant 1 : i32
    %0 = arith.muli %arg0, %c1_i32 : i32
    %1 = arith.addi %0, %arg1 : i32
    %c0_i32 = arith.constant 0 : i32
    %c0_i32_0 = arith.constant 0 : i32
    return %1, %c0_i32 : i32, i32
  }
  func.func @transform_7(%arg0: i32, %arg1: i32) -> (i32, i32, i32) {
    %c0_i32 = arith.constant 0 : i32
    %c0_i32_0 = arith.constant 0 : i32
    %c0_i32_1 = arith.constant 0 : i32
    return %arg0, %c0_i32, %c0_i32_0 : i32, i32, i32
  }
}

</mosaic_0001>

<bundles_post_ra>
// kernel: basic_block_pallas.5
= control target key start
LH: loop header
LB: loop body
LE: loop exit
PB: predicated region body
PF: predicated region fallthrough
CT: control target
= control target key end

     0   :  { %11 = vsyncpa [#allocation3], 0  ;;  %s915_s0 = inlined_call_operand.hbm [shape: f32[256,128], index: 0, kind: input, shape index: {}]   ;;  %s916_s1 = inlined_call_operand.hbm [shape: f32[1,128], index: 1, kind: input, shape index: {}]   ;;  %s917_s2 = inlined_call_operand.hbm [shape: f32[1,128], index: 2, kind: input, shape index: {}]   ;;  %s918_s3 = inlined_call_operand.hbm [shape: f32[256,256], index: 3, kind: input, shape index: {}]   ;;  %s919_s4 = inlined_call_operand.hbm [shape: f32[1,128], index: 4, kind: input, shape index: {}]   ;;  %s920_s5 = inlined_call_operand.hbm [shape: f32[1,128], index: 5, kind: input, shape index: {}]   ;;  %s921_s6 = inlined_call_operand.hbm [shape: f32[256,128], index: 6, kind: output, shape index: {}]  }
   0x1   :  { %12 = vsyncpa [#allocation6], 0 }
   0x2   :  { %13 = vsyncpa [#allocation9], 0 }
   0x3   :  { %14 = vsyncpa [#allocation12], 0 }
   0x4   :  { %15 = vsyncpa [#allocation4], 0  ;;  %s636_s21 = smov [#allocation5]   ;;  %s684_s25 = scalar_lea.hbm %s918_s3, 128 }
   0x5   :  { %s38_s22 = sshll.u32 %s636_s21, 4  ;;  %s469_s28 = scalar_lea.hbm %s916_s1, 16  ;;  %s39_s22 = int_to_ptr.vmem [resolvable:$true] %s38_s22 }
   0x6   :  { %p470_p0 = scmp.ne.s32.totalorder %s916_s1, %s469_s28  ;;  %p473_p1 = scmp.lt.u32.totalorder %s469_s28, %s916_s1 }
   0x8   :  { %p475_p2 = pnand %p473_p1, %p470_p0 }
   0xa   :  { %478 = shalt.err (!%p475_p2)
}
   0xb   :  { %s479_s9 = scalar_lea.vmem %s39_s22, 16  ;;  %s483_s10 = scalar_lea.vmem %s39_s22, 32 }
   0xc   :  { %p480_p3 = scmp.ne.s32.totalorder %s39_s22, %s479_s9  ;;  %p484_p4 = scmp.lt.s32.totalorder %s39_s22, %s39_s22 }
   0xd   :  { %p485_p5 = scmp.lt.s32.totalorder %s483_s10, %s479_s9 }
   0xf   :  { %p486_p6 = por %p485_p5, %p484_p4 }
  0x11   :  { %p487_p7 = pnand %p486_p6, %p480_p3 }
  0x13   :  { %490 = shalt.err (!%p487_p7)
}
  0x14   :  { %41 = dma.hbm_to_vmem [thread:$0]  %s916_s1, 16, %s39_s22, [#allocation6]  }
  0x15   :  { %s637_s13 = smov [#allocation8]   ;;  %s638_s15 = smov [#allocation2]  }
  0x16   :  { %s63_s14 = sshll.u32 %s637_s13, 4  ;;  %s25_s16 = sshll.u32 %s638_s15, 4  ;;  %s64_s14 = int_to_ptr.vmem [resolvable:$true] %s63_s14  ;;  %s26_s16 = int_to_ptr.vmem [resolvable:$true] %s25_s16 }
  0x17   :  { %s515_s19 = scalar_lea.hbm %s918_s3, 4224  ;;  %s493_s23 = scalar_lea.hbm %s918_s3, 8192 }
  0x18   :  { %p492_p8 = scmp.ne.s32.totalorder %s684_s25, %s515_s19  ;;  %p494_p9 = scmp.lt.u32.totalorder %s684_s25, %s918_s3 }
  0x19   :  { %p495_p10 = scmp.lt.u32.totalorder %s493_s23, %s515_s19  ;;  %p497_p12 = scmp.lt.u32.totalorder %s515_s19, %s684_s25 }
  0x1b   :  { %p496_p11 = por %p495_p10, %p494_p9 }
  0x1d   :  { %p498_p13 = por %p497_p12, %p496_p11 }
  0x1f   :  { %p499_p0 = pnand %p498_p13, %p492_p8 }
  0x21   :  { %502 = shalt.err (!%p499_p0)
}
  0x22   :  { %s503_s1 = scalar_lea.vmem %s64_s14, 4096  ;;  %p508_p2 = scmp.lt.s32.totalorder %s64_s14, %s64_s14 }
  0x23   :  { %p504_p1 = scmp.ne.s32.totalorder %s64_s14, %s503_s1  ;;  %p509_p3 = scmp.lt.s32.totalorder %s503_s1, %s503_s1 }
  0x25   :  { %p510_p4 = por %p509_p3, %p508_p2 }
  0x27   :  { %p511_p5 = pnand %p510_p4, %p504_p1 }
  0x29   :  { %514 = shalt.err (!%p511_p5)
}
  0x2a   :  { %s639_s22 = smov 256   ;;  %s640_s27 = smov 128  }
  0x2b   :  { %s641_s28 = smov 8   ;;  %s516_s30 = scalar_lea.hbm %s915_s0, 4096 }
  0x2c   :  { %69 = dma.hbm_to_vmem [thread:$0]  %s684_s25, 4096, %s64_s14, [#allocation9], %s639_s22, %s640_s27, %s641_s28  }
  0x2d   :  { %p517_p6 = scmp.ne.s32.totalorder %s915_s0, %s516_s30  ;;  %p520_p7 = scmp.lt.u32.totalorder %s516_s30, %s915_s0 }
  0x2f   :  { %p522_p8 = pnand %p520_p7, %p517_p6 }
  0x31   :  { %525 = shalt.err (!%p522_p8)
}
  0x32   :  { %s526_s11 = scalar_lea.vmem %s26_s16, 4096  ;;  %p531_p10 = scmp.lt.s32.totalorder %s26_s16, %s26_s16 }
  0x33   :  { %p527_p9 = scmp.ne.s32.totalorder %s26_s16, %s526_s11  ;;  %p532_p11 = scmp.lt.s32.totalorder %s526_s11, %s526_s11 }
  0x35   :  { %p533_p12 = por %p532_p11, %p531_p10 }
  0x37   :  { %p534_p13 = pnand %p533_p12, %p527_p9 }
  0x39   :  { %537 = shalt.err (!%p534_p13)
}
  0x3a   :  { %31 = dma.hbm_to_vmem [thread:$0]  %s915_s0, 4096, %s26_s16, [#allocation3], %s640_s27, %s640_s27, %s641_s28  }
  0x3b   :  { %s642_s13 = smov [#allocation7]   ;;  %s643_s15 = smov [#allocation10]  }
  0x3c   :  { %s48_s14 = sshll.u32 %s642_s13, 4  ;;  %s76_s17 = sshll.u32 %s643_s15, 4  ;;  %s49_s14 = int_to_ptr.vmem [resolvable:$true] %s48_s14  ;;  %s77_s17 = int_to_ptr.vmem [resolvable:$true] %s76_s17 }
  0x3d   :  { %s538_s20 = scalar_lea.hbm %s917_s2, 16 }
  0x3e   :  { %p539_p0 = scmp.ne.s32.totalorder %s917_s2, %s538_s20  ;;  %p542_p1 = scmp.lt.u32.totalorder %s538_s20, %s917_s2 }
  0x40   :  { %p544_p2 = pnand %p542_p1, %p539_p0 }
  0x42   :  { %547 = shalt.err (!%p544_p2)
}
  0x43   :  { %s548_s0 = scalar_lea.vmem %s49_s14, 16  ;;  %s552_s16 = scalar_lea.vmem %s49_s14, 32 }
  0x44   :  { %p549_p3 = scmp.ne.s32.totalorder %s49_s14, %s548_s0  ;;  %p553_p4 = scmp.lt.s32.totalorder %s49_s14, %s49_s14 }
  0x45   :  { %p554_p5 = scmp.lt.s32.totalorder %s552_s16, %s548_s0 }
  0x47   :  { %p555_p6 = por %p554_p5, %p553_p4 }
  0x49   :  { %p556_p7 = pnand %p555_p6, %p549_p3 }
  0x4b   :  { %559 = shalt.err (!%p556_p7)
}
  0x4c   :  { %51 = dma.hbm_to_vmem [thread:$0]  %s917_s2, 16, %s49_s14, [#allocation6]  }
  0x4d   :  { %s560_s30 = scalar_lea.hbm %s919_s4, 16 }
  0x4e   :  { %p561_p8 = scmp.ne.s32.totalorder %s919_s4, %s560_s30  ;;  %p564_p9 = scmp.lt.u32.totalorder %s560_s30, %s919_s4 }
  0x50   :  { %p566_p10 = pnand %p564_p9, %p561_p8 }
  0x52   :  { %569 = shalt.err (!%p566_p10)
}
  0x53   :  { %s570_s11 = scalar_lea.vmem %s77_s17, 16  ;;  %s574_s25 = scalar_lea.vmem %s77_s17, 32 }
  0x54   :  { %p571_p11 = scmp.ne.s32.totalorder %s77_s17, %s570_s11  ;;  %p575_p12 = scmp.lt.s32.totalorder %s77_s17, %s77_s17 }
  0x55   :  { %p576_p13 = scmp.lt.s32.totalorder %s574_s25, %s570_s11 }
  0x57   :  { %p577_p0 = por %p576_p13, %p575_p12 }
  0x59   :  { %p578_p1 = pnand %p577_p0, %p571_p11 }
  0x5b   :  { %581 = shalt.err (!%p578_p1)
}
  0x5c   :  { %79 = dma.hbm_to_vmem [thread:$0]  %s919_s4, 16, %s77_s17, [#allocation9]  }
  0x5d   :  { %s644_s13 = smov [#allocation11]   ;;  %s582_s19 = scalar_lea.hbm %s920_s5, 16 }
  0x5e   :  { %s86_s14 = sshll.u32 %s644_s13, 4  ;;  %p583_p2 = scmp.ne.s32.totalorder %s920_s5, %s582_s19  ;;  %s87_s14 = int_to_ptr.vmem [resolvable:$true] %s86_s14 }
  0x5f   :  { %p586_p3 = scmp.lt.u32.totalorder %s582_s19, %s920_s5 }
  0x61   :  { %p588_p4 = pnand %p586_p3, %p583_p2 }
  0x63   :  { %591 = shalt.err (!%p588_p4)
}
  0x64   :  { %s592_s26 = scalar_lea.vmem %s87_s14, 16  ;;  %s596_s4 = scalar_lea.vmem %s87_s14, 32 }
  0x65   :  { %p593_p5 = scmp.ne.s32.totalorder %s87_s14, %s592_s26  ;;  %p597_p6 = scmp.lt.s32.totalorder %s87_s14, %s87_s14 }
  0x66   :  { %p598_p7 = scmp.lt.s32.totalorder %s596_s4, %s592_s26 }
  0x68   :  { %p599_p8 = por %p598_p7, %p597_p6 }
  0x6a   :  { %p600_p9 = pnand %p599_p8, %p593_p5 }
  0x6c   :  { %603 = shalt.err (!%p600_p9)
}
  0x6d   :  { %89 = dma.hbm_to_vmem [thread:$0]  %s920_s5, 16, %s87_s14, [#allocation12]  }
  0x6e   :  { %626 = dma.done.wait [#allocation3], 4096  }
  0x6f   :  { %627 = vsyncadd [#allocation3], 4294963200 }
  0x70   :  { %628 = dma.done.wait [#allocation6], 32  }
  0x71   :  { %629 = vsyncadd [#allocation6], 4294967264 }
  0x72   :  { %630 = dma.done.wait [#allocation9], 4112  }
  0x73   :  { %631 = vsyncadd [#allocation9], 4294963184 }
  0x74   :  { %632 = dma.done.wait [#allocation12], 16  }
  0x75   :  { %633 = vsyncadd [#allocation12], 4294967280  ;;  %v114_v0 = vld [vmem:[#allocation2] sm:$0xff]  ;;  %v115_v8 = vld [vmem:[#allocation2 + $0x8] sm:$0xff]  ;;  %s645_s5 = smov [#allocation13]  }
  0x76   :  { %v764_v1 = vld [vmem:[#allocation5] ss:$0 sm:$0xff]  ;;  %v766_v2 = vld [vmem:[#allocation7] ss:$0 sm:$0xff]  ;;  %v224_v4 = vld [vmem:[#allocation8] sm:$0xff]  ;;  %s439_s16 = sshll.u32 %s645_s5, 4  ;;  %s440_s16 = int_to_ptr.vmem [resolvable:$true] %s439_s16 }
  0x77   :  { %v153_v3 = vmul.f32 %v764_v1, %v114_v0  ;;  %v769_v5 = vld [vmem:[#allocation10] ss:$0 sm:$0xff]  ;;  %v772_v7 = vld [vmem:[#allocation11] ss:$0 sm:$0xff]  ;;  %v225_v9 = vld [vmem:[#allocation8 + $0x8] sm:$0xff]  ;;  %v154_v12 = vmul.f32 %v764_v1, %v115_v8  ;;  %s604_s1 = scalar_lea.vmem %s440_s16, 4096  ;;  %p609_p11 = scmp.lt.s32.totalorder %s440_s16, %s440_s16 }
  0x78   :  { %v263_v6 = vmul.f32 %v769_v5, %v224_v4  ;;  %v116_v10 = vld [vmem:[#allocation2 + $0x10] sm:$0xff]  ;;  %v264_v13 = vmul.f32 %v769_v5, %v225_v9  ;;  %v117_v16 = vld [vmem:[#allocation2 + $0x18] sm:$0xff]  ;;  %v118_v21 = vld [vmem:[#allocation2 + $0x20] sm:$0xff]  ;;  %p605_p10 = scmp.ne.s32.totalorder %s440_s16, %s604_s1  ;;  %p610_p12 = scmp.lt.s32.totalorder %s604_s1, %s604_s1 }
  0x79   :  { %v192_v11 = vadd.f32 %v766_v2, %v153_v3  ;;  %v155_v14 = vmul.f32 %v764_v1, %v116_v10  ;;  %v226_v15 = vld [vmem:[#allocation8 + $0x10] sm:$0xff]  ;;  %v227_v17 = vld [vmem:[#allocation8 + $0x18] sm:$0xff]  ;;  %v156_v19 = vmul.f32 %v764_v1, %v117_v16  ;;  %v228_v22 = vld [vmem:[#allocation8 + $0x20] sm:$0xff]  ;;  %v193_v25 = vadd.f32 %v766_v2, %v154_v12 }
  0x7a   :  { %v265_v18 = vmul.f32 %v769_v5, %v226_v15  ;;  %v266_v20 = vmul.f32 %v769_v5, %v227_v17  ;;  %v119_v23 = vld [vmem:[#allocation2 + $0x28] sm:$0xff]  ;;  %v157_v27 = vmul.f32 %v764_v1, %v118_v21  ;;  %v120_v29 = vld [vmem:[#allocation2 + $0x30] sm:$0xff]  ;;  %v267_v32 = vmul.f32 %v769_v5, %v228_v22  ;;  %v121_v39 = vld [vmem:[#allocation2 + $0x38] sm:$0xff]  ;;  %p611_p13 = por %p610_p12, %p609_p11 }
  0x7b   :  { %v295_v24 = vadd.f32 %v263_v6, %v192_v11  ;;  %v194_v26 = vadd.f32 %v766_v2, %v155_v14  ;;  %v229_v28 = vld [vmem:[#allocation8 + $0x28] sm:$0xff]  ;;  %v230_v30 = vld [vmem:[#allocation8 + $0x30] sm:$0xff]  ;;  %v195_v31 = vadd.f32 %v766_v2, %v156_v19  ;;  %v158_v33 = vmul.f32 %v764_v1, %v119_v23  ;;  %v231_v44 = vld [vmem:[#allocation8 + $0x38] sm:$0xff] }
  0x7c   :  { %v268_v34 = vmul.f32 %v769_v5, %v229_v28  ;;  %v296_v36 = vadd.f32 %v264_v13, %v193_v25  ;;  %v196_v38 = vadd.f32 %v766_v2, %v157_v27  ;;  %v159_v42 = vmul.f32 %v764_v1, %v120_v29  ;;  %v122_v53 = vld [vmem:[#allocation2 + $0x40] sm:$0xff]  ;;  %v123_v55 = vld [vmem:[#allocation2 + $0x48] sm:$0xff]  ;;  %v124_v3 = vld [vmem:[#allocation2 + $0x50] sm:$0xff]  ;;  %p612_p0 = pnand %p611_p13, %p605_p10 }
  0x7d   :  { %v334_v35 = vadd.f32 %v772_v7, %v295_v24  ;;  %v297_v37 = vadd.f32 %v265_v18, %v194_v26  ;;  %v298_v40 = vadd.f32 %v266_v20, %v195_v31  ;;  %v197_v41 = vadd.f32 %v766_v2, %v158_v33  ;;  %v232_v54 = vld [vmem:[#allocation8 + $0x40] sm:$0xff]  ;;  %v233_v60 = vld [vmem:[#allocation8 + $0x48] sm:$0xff]  ;;  %v234_v4 = vld [vmem:[#allocation8 + $0x50] sm:$0xff] }
  0x7e   :  { %v269_v43 = vmul.f32 %v769_v5, %v230_v30  ;;  %v335_v46 = vadd.f32 %v772_v7, %v296_v36  ;;  %v299_v48 = vadd.f32 %v267_v32, %v196_v38  ;;  %v198_v51 = vadd.f32 %v766_v2, %v159_v42  ;;  %v125_v11 = vld [vmem:[#allocation2 + $0x58] sm:$0xff]  ;;  %v126_v17 = vld [vmem:[#allocation2 + $0x60] sm:$0xff]  ;;  %v127_v23 = vld [vmem:[#allocation2 + $0x68] sm:$0xff] }
  0x7f   :  { %v366_v45 = vmax.f32 %v334_v35, 0.0  ;;  %v336_v47 = vadd.f32 %v772_v7, %v297_v37  ;;  %v337_v49 = vadd.f32 %v772_v7, %v298_v40  ;;  %v300_v50 = vadd.f32 %v268_v34, %v197_v41  ;;  %v235_v12 = vld [vmem:[#allocation8 + $0x58] sm:$0xff]  ;;  %v236_v22 = vld [vmem:[#allocation8 + $0x60] sm:$0xff]  ;;  %v237_v32 = vld [vmem:[#allocation8 + $0x68] sm:$0xff] }
  0x80   :  { %v160_v52 = vmul.f32 %v764_v1, %v121_v39  ;;  %v367_v56 = vmax.f32 %v335_v46, 0.0  ;;  %v338_v58 = vadd.f32 %v772_v7, %v299_v48  ;;  %v270_v59 = vmul.f32 %v769_v5, %v231_v44  ;;  %v128_v33 = vld [vmem:[#allocation2 + $0x70] sm:$0xff]  ;;  %v239_v48 = vld [vmem:[#allocation8 + $0x78] sm:$0xff] }
  0x81   :  { %398 = vst [vmem:[#allocation13] sm:$0xff] %v366_v45  ;;  %v368_v57 = vmax.f32 %v336_v47, 0.0  ;;  %v369_v61 = vmax.f32 %v337_v49, 0.0  ;;  %v339_v62 = vadd.f32 %v772_v7, %v300_v50  ;;  %v301_v63 = vadd.f32 %v269_v43, %v198_v51  ;;  %v238_v42 = vld [vmem:[#allocation8 + $0x70] sm:$0xff] }
  0x82   :  { %v199_v0 = vadd.f32 %v766_v2, %v160_v52  ;;  %399 = vst [vmem:[#allocation13 + $0x8] sm:$0xff] %v367_v56  ;;  %v370_v6 = vmax.f32 %v338_v58, 0.0  ;;  %v161_v8 = vmul.f32 %v764_v1, %v122_v53  ;;  %v271_v9 = vmul.f32 %v769_v5, %v232_v54  ;;  %v129_v47 = vld [vmem:[#allocation2 + $0x78] sm:$0xff]  ;;  %v130_v53 = vld [vmem:[#allocation2 + $0x80] sm:$0xff] }
  0x83   :  { %400 = vst [vmem:[#allocation13 + $0x10] sm:$0xff] %v368_v57  ;;  %v162_v10 = vmul.f32 %v764_v1, %v123_v55  ;;  %401 = vst [vmem:[#allocation13 + $0x18] sm:$0xff] %v369_v61  ;;  %v371_v13 = vmax.f32 %v339_v62, 0.0  ;;  %v340_v14 = vadd.f32 %v772_v7, %v301_v63  ;;  %v272_v16 = vmul.f32 %v769_v5, %v233_v60  ;;  %v240_v58 = vld [vmem:[#allocation8 + $0x80] sm:$0xff] }
  0x84   :  { %v302_v15 = vadd.f32 %v270_v59, %v199_v0  ;;  %402 = vst [vmem:[#allocation13 + $0x20] sm:$0xff] %v370_v6  ;;  %v200_v18 = vadd.f32 %v766_v2, %v161_v8  ;;  %v163_v20 = vmul.f32 %v764_v1, %v124_v3  ;;  %v273_v21 = vmul.f32 %v769_v5, %v234_v4  ;;  %v131_v59 = vld [vmem:[#allocation2 + $0x88] sm:$0xff] }
  0x85   :  { %v201_v19 = vadd.f32 %v766_v2, %v162_v10  ;;  %403 = vst [vmem:[#allocation13 + $0x28] sm:$0xff] %v371_v13  ;;  %v372_v24 = vmax.f32 %v340_v14, 0.0  ;;  %v164_v26 = vmul.f32 %v764_v1, %v125_v11  ;;  %v274_v27 = vmul.f32 %v769_v5, %v235_v12  ;;  %v241_v0 = vld [vmem:[#allocation8 + $0x88] sm:$0xff]  ;;  %v242_v10 = vld [vmem:[#allocation8 + $0x90] sm:$0xff] }
  0x86   :  { %v341_v25 = vadd.f32 %v772_v7, %v302_v15  ;;  %v303_v28 = vadd.f32 %v271_v9, %v200_v18  ;;  %v202_v30 = vadd.f32 %v766_v2, %v163_v20  ;;  %v165_v31 = vmul.f32 %v764_v1, %v126_v17  ;;  %v132_v9 = vld [vmem:[#allocation2 + $0x90] sm:$0xff]  ;;  %v133_v15 = vld [vmem:[#allocation2 + $0x98] sm:$0xff] }
  0x87   :  { %v304_v29 = vadd.f32 %v272_v16, %v201_v19  ;;  %404 = vst [vmem:[#allocation13 + $0x30] sm:$0xff] %v372_v24  ;;  %v203_v35 = vadd.f32 %v766_v2, %v164_v26  ;;  %v275_v36 = vmul.f32 %v769_v5, %v236_v22  ;;  %v166_v37 = vmul.f32 %v764_v1, %v127_v23  ;;  %v243_v16 = vld [vmem:[#allocation8 + $0x98] sm:$0xff]  ;;  %v244_v26 = vld [vmem:[#allocation8 + $0xa0] sm:$0xff] }
  0x88   :  { %v373_v34 = vmax.f32 %v341_v25, 0.0  ;;  %v342_v38 = vadd.f32 %v772_v7, %v303_v28  ;;  %v305_v40 = vadd.f32 %v273_v21, %v202_v30  ;;  %v204_v41 = vadd.f32 %v766_v2, %v165_v31  ;;  %v134_v21 = vld [vmem:[#allocation2 + $0xa0] sm:$0xff] }
  0x89   :  { %v343_v39 = vadd.f32 %v772_v7, %v304_v29  ;;  %v306_v43 = vadd.f32 %v274_v27, %v203_v35  ;;  %v205_v44 = vadd.f32 %v766_v2, %v166_v37  ;;  %v276_v45 = vmul.f32 %v769_v5, %v237_v32  ;;  %v135_v27 = vld [vmem:[#allocation2 + $0xa8] sm:$0xff] }
  0x8a   :  { %405 = vst [vmem:[#allocation13 + $0x38] sm:$0xff] %v373_v34  ;;  %v167_v46 = vmul.f32 %v764_v1, %v128_v33  ;;  %v374_v49 = vmax.f32 %v342_v38, 0.0  ;;  %v344_v51 = vadd.f32 %v772_v7, %v305_v40  ;;  %v307_v52 = vadd.f32 %v275_v36, %v204_v41  ;;  %v245_v36 = vld [vmem:[#allocation8 + $0xa8] sm:$0xff] }
  0x8b   :  { %v375_v50 = vmax.f32 %v343_v39, 0.0  ;;  %v345_v54 = vadd.f32 %v772_v7, %v306_v43  ;;  %v308_v55 = vadd.f32 %v276_v45, %v205_v44  ;;  %v277_v57 = vmul.f32 %v769_v5, %v238_v42  ;;  %v136_v41 = vld [vmem:[#allocation2 + $0xb0] sm:$0xff] }
  0x8c   :  { %v206_v56 = vadd.f32 %v766_v2, %v167_v46  ;;  %406 = vst [vmem:[#allocation13 + $0x40] sm:$0xff] %v374_v49  ;;  %v376_v60 = vmax.f32 %v344_v51, 0.0  ;;  %v346_v61 = vadd.f32 %v772_v7, %v307_v52  ;;  %v168_v62 = vmul.f32 %v764_v1, %v129_v47  ;;  %v246_v46 = vld [vmem:[#allocation8 + $0xb0] sm:$0xff]  ;;  %v247_v52 = vld [vmem:[#allocation8 + $0xb8] sm:$0xff] }
  0x8d   :  { %407 = vst [vmem:[#allocation13 + $0x48] sm:$0xff] %v375_v50  ;;  %v278_v63 = vmul.f32 %v769_v5, %v239_v48  ;;  %v377_v3 = vmax.f32 %v345_v54, 0.0  ;;  %v347_v4 = vadd.f32 %v772_v7, %v308_v55  ;;  %v169_v8 = vmul.f32 %v764_v1, %v130_v53  ;;  %v137_v47 = vld [vmem:[#allocation2 + $0xb8] sm:$0xff] }
  0x8e   :  { %v309_v6 = vadd.f32 %v277_v57, %v206_v56  ;;  %408 = vst [vmem:[#allocation13 + $0x50] sm:$0xff] %v376_v60  ;;  %v378_v11 = vmax.f32 %v346_v61, 0.0  ;;  %v207_v12 = vadd.f32 %v766_v2, %v168_v62  ;;  %v279_v13 = vmul.f32 %v769_v5, %v240_v58  ;;  %v138_v57 = vld [vmem:[#allocation2 + $0xc0] sm:$0xff] }
  0x8f   :  { %v170_v14 = vmul.f32 %v764_v1, %v131_v59  ;;  %409 = vst [vmem:[#allocation13 + $0x58] sm:$0xff] %v377_v3  ;;  %v379_v17 = vmax.f32 %v347_v4, 0.0  ;;  %v208_v19 = vadd.f32 %v766_v2, %v169_v8  ;;  %v280_v20 = vmul.f32 %v769_v5, %v241_v0  ;;  %v248_v62 = vld [vmem:[#allocation8 + $0xc0] sm:$0xff]  ;;  %v249_v8 = vld [vmem:[#allocation8 + $0xc8] sm:$0xff] }
  0x90   :  { %v348_v18 = vadd.f32 %v772_v7, %v309_v6  ;;  %410 = vst [vmem:[#allocation13 + $0x60] sm:$0xff] %v378_v11  ;;  %v310_v22 = vadd.f32 %v278_v63, %v207_v12  ;;  %v171_v24 = vmul.f32 %v764_v1, %v132_v9  ;;  %v281_v25 = vmul.f32 %v769_v5, %v242_v10  ;;  %v139_v63 = vld [vmem:[#allocation2 + $0xc8] sm:$0xff] }
  0x91   :  { %v209_v23 = vadd.f32 %v766_v2, %v170_v14  ;;  %411 = vst [vmem:[#allocation13 + $0x68] sm:$0xff] %v379_v17  ;;  %v311_v29 = vadd.f32 %v279_v13, %v208_v19  ;;  %v172_v30 = vmul.f32 %v764_v1, %v133_v15  ;;  %v282_v31 = vmul.f32 %v769_v5, %v243_v16  ;;  %v140_v13 = vld [vmem:[#allocation2 + $0xd0] sm:$0xff]  ;;  %v141_v19 = vld [vmem:[#allocation2 + $0xd8] sm:$0xff] }
  0x92   :  { %v380_v28 = vmax.f32 %v348_v18, 0.0  ;;  %v349_v32 = vadd.f32 %v772_v7, %v310_v22  ;;  %v210_v34 = vadd.f32 %v766_v2, %v171_v24  ;;  %v173_v35 = vmul.f32 %v764_v1, %v134_v21  ;;  %v250_v14 = vld [vmem:[#allocation8 + $0xd0] sm:$0xff] }
  0x93   :  { %v312_v33 = vadd.f32 %v280_v20, %v209_v23  ;;  %v350_v37 = vadd.f32 %v772_v7, %v311_v29  ;;  %v211_v38 = vadd.f32 %v766_v2, %v172_v30  ;;  %v283_v39 = vmul.f32 %v769_v5, %v244_v26  ;;  %v251_v20 = vld [vmem:[#allocation8 + $0xd8] sm:$0xff]  ;;  %v252_v30 = vld [vmem:[#allocation8 + $0xe0] sm:$0xff] }
  0x94   :  { %412 = vst [vmem:[#allocation13 + $0x70] sm:$0xff] %v380_v28  ;;  %v174_v40 = vmul.f32 %v764_v1, %v135_v27  ;;  %v381_v42 = vmax.f32 %v349_v32, 0.0  ;;  %v313_v44 = vadd.f32 %v281_v25, %v210_v34  ;;  %v212_v45 = vadd.f32 %v766_v2, %v173_v35  ;;  %v142_v25 = vld [vmem:[#allocation2 + $0xe0] sm:$0xff]  ;;  %v143_v35 = vld [vmem:[#allocation2 + $0xe8] sm:$0xff] }
  0x95   :  { %v351_v43 = vadd.f32 %v772_v7, %v312_v33  ;;  %v382_v48 = vmax.f32 %v350_v37, 0.0  ;;  %v314_v49 = vadd.f32 %v282_v31, %v211_v38  ;;  %v284_v51 = vmul.f32 %v769_v5, %v245_v36 }
  0x96   :  { %v213_v50 = vadd.f32 %v766_v2, %v174_v40  ;;  %413 = vst [vmem:[#allocation13 + $0x78] sm:$0xff] %v381_v42  ;;  %v352_v54 = vadd.f32 %v772_v7, %v313_v44  ;;  %v315_v55 = vadd.f32 %v283_v39, %v212_v45  ;;  %v175_v56 = vmul.f32 %v764_v1, %v136_v41  ;;  %v253_v40 = vld [vmem:[#allocation8 + $0xe8] sm:$0xff] }
  0x97   :  { %v383_v53 = vmax.f32 %v351_v43, 0.0  ;;  %414 = vst [vmem:[#allocation13 + $0x80] sm:$0xff] %v382_v48  ;;  %v353_v58 = vadd.f32 %v772_v7, %v314_v49  ;;  %v285_v60 = vmul.f32 %v769_v5, %v246_v46  ;;  %v176_v61 = vmul.f32 %v764_v1, %v137_v47  ;;  %v144_v41 = vld [vmem:[#allocation2 + $0xf0] sm:$0xff] }
  0x98   :  { %v316_v59 = vadd.f32 %v284_v51, %v213_v50  ;;  %v384_v0 = vmax.f32 %v352_v54, 0.0  ;;  %v354_v3 = vadd.f32 %v772_v7, %v315_v55  ;;  %v214_v4 = vadd.f32 %v766_v2, %v175_v56  ;;  %v254_v50 = vld [vmem:[#allocation8 + $0xf0] sm:$0xff]  ;;  %v255_v56 = vld [vmem:[#allocation8 + $0xf8] sm:$0xff] }
  0x99   :  { %415 = vst [vmem:[#allocation13 + $0x88] sm:$0xff] %v383_v53  ;;  %v286_v6 = vmul.f32 %v769_v5, %v247_v52  ;;  %v385_v9 = vmax.f32 %v353_v58, 0.0  ;;  %v215_v11 = vadd.f32 %v766_v2, %v176_v61  ;;  %v177_v12 = vmul.f32 %v764_v1, %v138_v57  ;;  %v145_v51 = vld [vmem:[#allocation2 + $0xf8] sm:$0xff] }
  0x9a   :  { %v355_v10 = vadd.f32 %v772_v7, %v316_v59  ;;  %416 = vst [vmem:[#allocation13 + $0x90] sm:$0xff] %v384_v0  ;;  %v386_v15 = vmax.f32 %v354_v3, 0.0  ;;  %v317_v16 = vadd.f32 %v285_v60, %v214_v4  ;;  %v287_v17 = vmul.f32 %v769_v5, %v248_v62 }
  0x9b   :  { %v178_v18 = vmul.f32 %v764_v1, %v139_v63  ;;  %417 = vst [vmem:[#allocation13 + $0x98] sm:$0xff] %v385_v9  ;;  %v318_v22 = vadd.f32 %v286_v6, %v215_v11  ;;  %v216_v23 = vadd.f32 %v766_v2, %v177_v12  ;;  %v288_v24 = vmul.f32 %v769_v5, %v249_v8 }
  0x9c   :  { %v387_v21 = vmax.f32 %v355_v10, 0.0  ;;  %418 = vst [vmem:[#allocation13 + $0xa0] sm:$0xff] %v386_v15  ;;  %v356_v26 = vadd.f32 %v772_v7, %v317_v16  ;;  %v179_v28 = vmul.f32 %v764_v1, %v140_v13  ;;  %v289_v29 = vmul.f32 %v769_v5, %v250_v14 }
  0x9d   :  { %v217_v27 = vadd.f32 %v766_v2, %v178_v18  ;;  %v357_v31 = vadd.f32 %v772_v7, %v318_v22  ;;  %v319_v32 = vadd.f32 %v287_v17, %v216_v23  ;;  %v180_v33 = vmul.f32 %v764_v1, %v141_v19 }
  0x9e   :  { %419 = vst [vmem:[#allocation13 + $0xa8] sm:$0xff] %v387_v21  ;;  %v290_v34 = vmul.f32 %v769_v5, %v251_v20  ;;  %v388_v36 = vmax.f32 %v356_v26, 0.0  ;;  %v218_v38 = vadd.f32 %v766_v2, %v179_v28  ;;  %v181_v39 = vmul.f32 %v764_v1, %v142_v25 }
  0x9f   :  { %v320_v37 = vadd.f32 %v288_v24, %v217_v27  ;;  %v389_v42 = vmax.f32 %v357_v31, 0.0  ;;  %v358_v43 = vadd.f32 %v772_v7, %v319_v32  ;;  %v219_v44 = vadd.f32 %v766_v2, %v180_v33 }
  0xa0   :  { %v291_v45 = vmul.f32 %v769_v5, %v252_v30  ;;  %420 = vst [vmem:[#allocation13 + $0xb0] sm:$0xff] %v388_v36  ;;  %v321_v47 = vadd.f32 %v289_v29, %v218_v38  ;;  %v220_v48 = vadd.f32 %v766_v2, %v181_v39  ;;  %v182_v49 = vmul.f32 %v764_v1, %v143_v35 }
  0xa1   :  { %v359_v46 = vadd.f32 %v772_v7, %v320_v37  ;;  %421 = vst [vmem:[#allocation13 + $0xb8] sm:$0xff] %v389_v42  ;;  %v390_v52 = vmax.f32 %v358_v43, 0.0  ;;  %v322_v53 = vadd.f32 %v290_v34, %v219_v44  ;;  %v292_v54 = vmul.f32 %v769_v5, %v253_v40 }
  0xa2   :  { %v183_v55 = vmul.f32 %v764_v1, %v144_v41  ;;  %v360_v58 = vadd.f32 %v772_v7, %v321_v47  ;;  %v323_v59 = vadd.f32 %v291_v45, %v220_v48  ;;  %v221_v60 = vadd.f32 %v766_v2, %v182_v49 }
  0xa3   :  { %v391_v57 = vmax.f32 %v359_v46, 0.0  ;;  %422 = vst [vmem:[#allocation13 + $0xc0] sm:$0xff] %v390_v52  ;;  %v361_v61 = vadd.f32 %v772_v7, %v322_v53  ;;  %v293_v63 = vmul.f32 %v769_v5, %v254_v50  ;;  %v184_v0 = vmul.f32 %v764_v1, %v145_v51 }
  0xa4   :  { %v222_v62 = vadd.f32 %v766_v2, %v183_v55  ;;  %v392_v3 = vmax.f32 %v360_v58, 0.0  ;;  %v362_v4 = vadd.f32 %v772_v7, %v323_v59  ;;  %v324_v6 = vadd.f32 %v292_v54, %v221_v60 }
  0xa5   :  { %423 = vst [vmem:[#allocation13 + $0xc8] sm:$0xff] %v391_v57  ;;  %v294_v8 = vmul.f32 %v769_v5, %v255_v56  ;;  %v393_v9 = vmax.f32 %v361_v61, 0.0  ;;  %v223_v11 = vadd.f32 %v766_v2, %v184_v0 }
  0xa6   :  { %v325_v10 = vadd.f32 %v293_v63, %v222_v62  ;;  %424 = vst [vmem:[#allocation13 + $0xd0] sm:$0xff] %v392_v3  ;;  %v394_v12 = vmax.f32 %v362_v4, 0.0  ;;  %v363_v13 = vadd.f32 %v772_v7, %v324_v6 }
  0xa7   :  { %425 = vst [vmem:[#allocation13 + $0xd8] sm:$0xff] %v393_v9  ;;  %v326_v15 = vadd.f32 %v294_v8, %v223_v11 }
  0xa8   :  { %v364_v14 = vadd.f32 %v772_v7, %v325_v10  ;;  %426 = vst [vmem:[#allocation13 + $0xe0] sm:$0xff] %v394_v12  ;;  %v395_v1 = vmax.f32 %v363_v13, 0.0 }
  0xa9   :  { %v365_v17 = vadd.f32 %v772_v7, %v326_v15 }
  0xaa   :  { %v396_v16 = vmax.f32 %v364_v14, 0.0  ;;  %427 = vst [vmem:[#allocation13 + $0xe8] sm:$0xff] %v395_v1 }
  0xab   :  { %v397_v5 = vmax.f32 %v365_v17, 0.0 }
  0xac   :  { %428 = vst [vmem:[#allocation13 + $0xf0] sm:$0xff] %v396_v16 }
  0xad   :  { %429 = vst [vmem:[#allocation13 + $0xf8] sm:$0xff] %v397_v5 }
  0xae   :  { %615 = shalt.err (!%p612_p0)
}
  0xaf   :  { %s616_s29 = scalar_lea.hbm %s921_s6, 4096 }
  0xb0   :  { %p617_p1 = scmp.ne.s32.totalorder %s921_s6, %s616_s29  ;;  %p620_p2 = scmp.lt.u32.totalorder %s616_s29, %s921_s6 }
  0xb2   :  { %p622_p3 = pnand %p620_p2, %p617_p1 }
  0xb4   :  { %625 = shalt.err (!%p622_p3)
}
  0xb5   :  { %445 = dma.vmem_to_hbm [thread:$0]  %s440_s16, 4096, %s921_s6, [#allocation4], %s640_s27, %s640_s27, %s641_s28  }
  0xb6   :  { %634 = dma.done.wait [#allocation4], 4096  }
  0xb7   :  { %635 = vsyncadd [#allocation4], 4294963200 }
  0xb8   :  { %449 = vsyncpa [#allocation3], 1 }
  0xb9   :  { %450 = vsyncpa [#allocation6], 1 }
  0xba   :  { %451 = vsyncpa [#allocation9], 1 }
  0xbb   :  { %452 = vsyncpa [#allocation12], 1 }
  0xbc   :  { %453 = vsyncpa [#allocation4], 1 }

// kernel: basic_block_pallas.4
= control target key start
LH: loop header
LB: loop body
LE: loop exit
PB: predicated region body
PF: predicated region fallthrough
CT: control target
= control target key end

     0   :  { %13 = vsyncpa [#allocation3], 0  ;;  %s2773_s0 = inlined_call_operand.hbm [shape: f32[256,256], index: 0, kind: input, shape index: {}]   ;;  %s2774_s1 = inlined_call_operand.hbm [shape: f32[1,128], index: 1, kind: input, shape index: {}]   ;;  %s2775_s2 = inlined_call_operand.hbm [shape: f32[1,128], index: 2, kind: input, shape index: {}]   ;;  %s2776_s3 = inlined_call_operand.hbm [shape: f32[256,1], index: 3, kind: input, shape index: {}]   ;;  %s2777_s4 = inlined_call_operand.hbm [shape: f32[256,1], index: 4, kind: input, shape index: {}]   ;;  %s2778_s5 = inlined_call_operand.hbm [shape: f32[384,128], index: 5, kind: input, shape index: {}]   ;;  %s2779_s6 = inlined_call_operand.hbm [shape: f32[256,128], index: 6, kind: output, shape index: {0}]   ;;  %s2780_s7 = inlined_call_operand.hbm [shape: f32[1,2,128], index: 7, kind: output, shape index: {1}]  }
   0x1   :  { %14 = vsyncpa [#allocation6], 0 }
   0x2   :  { %15 = vsyncpa [#allocation9], 0 }
   0x3   :  { %16 = vsyncpa [#allocation12], 0 }
   0x4   :  { %17 = vsyncpa [#allocation4], 0 }
   0x5   :  { %18 = vsyncpa [#allocation15], 0  ;;  %s1966_s24 = smov [#allocation5]   ;;  %s1778_s28 = scalar_lea.hbm %s2774_s1, 16 }
   0x6   :  { %s42_s25 = sshll.u32 %s1966_s24, 4  ;;  %p1779_p0 = scmp.ne.s32.totalorder %s2774_s1, %s1778_s28  ;;  %s43_s25 = int_to_ptr.vmem [resolvable:$true] %s42_s25 }
   0x7   :  { %p1782_p1 = scmp.lt.u32.totalorder %s1778_s28, %s2774_s1 }
   0x9   :  { %p1784_p2 = pnand %p1782_p1, %p1779_p0 }
   0xb   :  { %1787 = shalt.err (!%p1784_p2)
}
   0xc   :  { %s1788_s10 = scalar_lea.vmem %s43_s25, 16  ;;  %s1792_s11 = scalar_lea.vmem %s43_s25, 32 }
   0xd   :  { %p1789_p3 = scmp.ne.s32.totalorder %s43_s25, %s1788_s10  ;;  %p1793_p4 = scmp.lt.s32.totalorder %s43_s25, %s43_s25 }
   0xe   :  { %p1794_p5 = scmp.lt.s32.totalorder %s1792_s11, %s1788_s10 }
  0x10   :  { %p1795_p6 = por %p1794_p5, %p1793_p4 }
  0x12   :  { %p1796_p7 = pnand %p1795_p6, %p1789_p3 }
  0x14   :  { %1799 = shalt.err (!%p1796_p7)
}
  0x15   :  { %45 = dma.hbm_to_vmem [thread:$0]  %s2774_s1, 16, %s43_s25, [#allocation6]  }
  0x16   :  { %s1967_s14 = smov [#allocation8]   ;;  %s1968_s16 = smov [#allocation2]  }
  0x17   :  { %s61_s15 = sshll.u32 %s1967_s14, 4  ;;  %s29_s17 = sshll.u32 %s1968_s16, 4  ;;  %s62_s15 = int_to_ptr.vmem [resolvable:$true] %s61_s15  ;;  %s30_s17 = int_to_ptr.vmem [resolvable:$true] %s29_s17 }
  0x18   :  { %s1800_s20 = scalar_lea.hbm %s2776_s3, 4096 }
  0x19   :  { %p1801_p8 = scmp.ne.s32.totalorder %s2776_s3, %s1800_s20  ;;  %p1804_p9 = scmp.lt.u32.totalorder %s1800_s20, %s2776_s3 }
  0x1b   :  { %p1806_p10 = pnand %p1804_p9, %p1801_p8 }
  0x1d   :  { %1809 = shalt.err (!%p1806_p10)
}
  0x1e   :  { %s1810_s1 = scalar_lea.vmem %s62_s15, 4096  ;;  %p1815_p12 = scmp.lt.s32.totalorder %s62_s15, %s62_s15 }
  0x1f   :  { %p1811_p11 = scmp.ne.s32.totalorder %s62_s15, %s1810_s1  ;;  %p1816_p13 = scmp.lt.s32.totalorder %s1810_s1, %s1810_s1 }
  0x21   :  { %p1817_p0 = por %p1816_p13, %p1815_p12 }
  0x23   :  { %p1818_p1 = pnand %p1817_p0, %p1811_p11 }
  0x25   :  { %1821 = shalt.err (!%p1818_p1)
}
  0x26   :  { %s1969_s25 = smov 128   ;;  %s1970_s26 = smov 8  }
  0x27   :  { %67 = dma.hbm_to_vmem [thread:$0]  %s2776_s3, 4096, %s62_s15, [#allocation9], %s1969_s25, %s1969_s25, %s1970_s26  }
  0x28   :  { %s1822_s8 = scalar_lea.hbm %s2773_s0, 4096  ;;  %s1824_s13 = scalar_lea.hbm %s2773_s0, 8192 }
  0x29   :  { %p1823_p2 = scmp.ne.s32.totalorder %s2773_s0, %s1822_s8  ;;  %p1825_p3 = scmp.lt.u32.totalorder %s1824_s13, %s1822_s8 }
  0x2a   :  { %p1826_p4 = scmp.lt.u32.totalorder %s1822_s8, %s2773_s0 }
  0x2c   :  { %p1827_p5 = por %p1826_p4, %p1825_p3 }
  0x2e   :  { %p1828_p6 = pnand %p1827_p5, %p1823_p2 }
  0x30   :  { %1831 = shalt.err (!%p1828_p6)
}
  0x31   :  { %s1832_s3 = scalar_lea.vmem %s30_s17, 4096  ;;  %p1837_p8 = scmp.lt.s32.totalorder %s30_s17, %s30_s17 }
  0x32   :  { %p1833_p7 = scmp.ne.s32.totalorder %s30_s17, %s1832_s3  ;;  %p1838_p9 = scmp.lt.s32.totalorder %s1832_s3, %s1832_s3 }
  0x34   :  { %p1839_p10 = por %p1838_p9, %p1837_p8 }
  0x36   :  { %p1840_p11 = pnand %p1839_p10, %p1833_p7 }
  0x38   :  { %1843 = shalt.err (!%p1840_p11)
}
  0x39   :  { %s1971_s15 = smov 256   ;;  %s1972_s20 = smov [#allocation7]  }
  0x3a   :  { %35 = dma.hbm_to_vmem [thread:$0]  %s2773_s0, 4096, %s30_s17, [#allocation3], %s1971_s15, %s1969_s25, %s1970_s26  }
  0x3b   :  { %s52_s21 = sshll.u32 %s1972_s20, 4  ;;  %s1973_s22 = smov [#allocation10]   ;;  %s53_s21 = int_to_ptr.vmem [resolvable:$true] %s52_s21 }
  0x3c   :  { %s73_s23 = sshll.u32 %s1973_s22, 4  ;;  %s1844_s27 = scalar_lea.hbm %s2775_s2, 16  ;;  %s2064_s23 = int_to_ptr.vmem [resolvable:$true] %s73_s23 }
  0x3d   :  { %p1845_p12 = scmp.ne.s32.totalorder %s2775_s2, %s1844_s27  ;;  %p1848_p13 = scmp.lt.u32.totalorder %s1844_s27, %s2775_s2 }
  0x3f   :  { %p1850_p0 = pnand %p1848_p13, %p1845_p12 }
  0x41   :  { %1853 = shalt.err (!%p1850_p0)
}
  0x42   :  { %s1854_s0 = scalar_lea.vmem %s53_s21, 16  ;;  %s1858_s17 = scalar_lea.vmem %s53_s21, 32 }
  0x43   :  { %p1855_p1 = scmp.ne.s32.totalorder %s53_s21, %s1854_s0  ;;  %p1859_p2 = scmp.lt.s32.totalorder %s53_s21, %s53_s21 }
  0x44   :  { %p1860_p3 = scmp.lt.s32.totalorder %s1858_s17, %s1854_s0 }
  0x46   :  { %p1861_p4 = por %p1860_p3, %p1859_p2 }
  0x48   :  { %p1862_p5 = pnand %p1861_p4, %p1855_p1 }
  0x4a   :  { %1865 = shalt.err (!%p1862_p5)
}
  0x4b   :  { %55 = dma.hbm_to_vmem [thread:$0]  %s2775_s2, 16, %s53_s21, [#allocation6]  }
  0x4c   :  { %s1866_s13 = scalar_lea.hbm %s2777_s4, 4096 }
  0x4d   :  { %p1867_p6 = scmp.ne.s32.totalorder %s2777_s4, %s1866_s13  ;;  %p1870_p7 = scmp.lt.u32.totalorder %s1866_s13, %s2777_s4 }
  0x4f   :  { %p1872_p8 = pnand %p1870_p7, %p1867_p6 }
  0x51   :  { %1875 = shalt.err (!%p1872_p8)
}
  0x52   :  { %s1876_s18 = scalar_lea.vmem %s2064_s23, 4096  ;;  %p1881_p10 = scmp.lt.s32.totalorder %s2064_s23, %s2064_s23 }
  0x53   :  { %p1877_p9 = scmp.ne.s32.totalorder %s2064_s23, %s1876_s18  ;;  %p1882_p11 = scmp.lt.s32.totalorder %s1876_s18, %s1876_s18 }
  0x55   :  { %p1883_p12 = por %p1882_p11, %p1881_p10 }
  0x57   :  { %p1884_p13 = pnand %p1883_p12, %p1877_p9 }
  0x59   :  { %1887 = shalt.err (!%p1884_p13)
}
  0x5a   :  { %79 = dma.hbm_to_vmem [thread:$0]  %s2777_s4, 4096, %s2064_s23, [#allocation9], %s1969_s25, %s1969_s25, %s1970_s26  }
  0x5b   :  { %s1974_s20 = smov [#allocation11]   ;;  %s1888_s1 = scalar_lea.hbm %s2778_s5, 6144 }
  0x5c   :  { %s85_s21 = sshll.u32 %s1974_s20, 4  ;;  %p1889_p0 = scmp.ne.s32.totalorder %s2778_s5, %s1888_s1  ;;  %s86_s21 = int_to_ptr.vmem [resolvable:$true] %s85_s21 }
  0x5d   :  { %p1892_p1 = scmp.lt.u32.totalorder %s1888_s1, %s2778_s5 }
  0x5f   :  { %p1894_p2 = pnand %p1892_p1, %p1889_p0 }
  0x61   :  { %1897 = shalt.err (!%p1894_p2)
}
  0x62   :  { %s1898_s8 = scalar_lea.vmem %s86_s21, 6144  ;;  %p1903_p4 = scmp.lt.s32.totalorder %s86_s21, %s86_s21 }
  0x63   :  { %p1899_p3 = scmp.ne.s32.totalorder %s86_s21, %s1898_s8  ;;  %p1904_p5 = scmp.lt.s32.totalorder %s1898_s8, %s1898_s8 }
  0x65   :  { %p1905_p6 = por %p1904_p5, %p1903_p4 }
  0x67   :  { %p1906_p7 = pnand %p1905_p6, %p1899_p3 }
  0x69   :  { %1909 = shalt.err (!%p1906_p7)
}
  0x6a   :  { %91 = dma.hbm_to_vmem [thread:$0]  %s2778_s5, 6144, %s86_s21, [#allocation12], %s1969_s25, %s1969_s25, %s1970_s26  }
  0x6b   :  { %1954 = dma.done.wait [#allocation3], 4096  }
  0x6c   :  { %1955 = vsyncadd [#allocation3], 4294963200 }
  0x6d   :  { %1956 = dma.done.wait [#allocation6], 32  }
  0x6e   :  { %1957 = vsyncadd [#allocation6], 4294967264 }
  0x6f   :  { %1958 = dma.done.wait [#allocation9], 8192  }
  0x70   :  { %1959 = vsyncadd [#allocation9], 4294959104 }
  0x71   :  { %1960 = dma.done.wait [#allocation12], 6144  }
  0x72   :  { %1961 = vsyncadd [#allocation12], 4294961152  ;;  %v1975_v0 = vmov 0   ;;  %v2783_v1 = vmov 0.0|0.0   ;;  %v258_v2 = vld [vmem:[#allocation8 + $0x10] sm:$0xff]  ;;  %v256_v3 = vld [vmem:[#allocation8] sm:$0xff]  ;;  %v352_v35 = vlaneseq }
  0x73   :  { %1777 = vset.pattern.permute.xlu1 %v1975_v0  ;;  %1776 = vset.pattern.permute.xlu0 %v1975_v0  ;;  %v259_v4 = vld [vmem:[#allocation8 + $0x18] sm:$0xff]  ;;  %v257_v5 = vld [vmem:[#allocation8 + $0x8] sm:$0xff]  ;;  %v260_v6 = vld [vmem:[#allocation8 + $0x20] sm:$0xff]  ;;  %s1978_s5 = smov [#allocation13]  }
  0x74   :  { %1650 = vmatprep.subr.bf16.mxu0 %v2783_v1  ;;  %1730 = vmatprep.subr.bf16.mxu1 %v2783_v1  ;;  %v280_v7 = vld [vmem:[#allocation8 + $0xc0] sm:$0xff]  ;;  %v261_v8 = vld [vmem:[#allocation8 + $0x28] sm:$0xff]  ;;  %v838_v13 = vld [vmem:[#allocation11 + $0x10] sm:$0xff]  ;;  %v2125_v41 = vshrl.u32 %v352_v35, 7  ;;  %s1491_s0 = sshll.u32 %s1978_s5, 4  ;;  %s1492_s0 = int_to_ptr.vmem [resolvable:$true] %s1491_s0 }
  0x75   :  { %399 = vperm.xlu1 %1777, %v258_v2   ;;  %389 = vperm.xlu0 %1776, %v256_v3   ;;  %v281_v9 = vld [vmem:[#allocation8 + $0xc8] sm:$0xff]  ;;  %v836_v10 = vld [vmem:[#allocation11] sm:$0xff]  ;;  %v839_v14 = vld [vmem:[#allocation11 + $0x18] sm:$0xff]  ;;  %s1910_s17 = scalar_lea.vmem %s1492_s0, 4096  ;;  %p1915_p9 = scmp.lt.s32.totalorder %s1492_s0, %s1492_s0 }
  0x76   :  { %v837_v11 = vld [vmem:[#allocation11 + $0x8] sm:$0xff]  ;;  %v262_v15 = vld [vmem:[#allocation8 + $0x30] sm:$0xff]  ;;  %v1654_v17 = vpack.c.bf16 %v839_v14, %v838_v13  ;;  %v840_v18 = vld [vmem:[#allocation11 + $0x20] sm:$0xff]  ;;  %vm354_vm0 = vcmp.lt.s32.totalorder %v2125_v41, 1  ;;  %vm611_vm1 = vcmp.lt.s32.totalorder %v2125_v41, 7  ;;  %p1911_p8 = scmp.ne.s32.totalorder %s1492_s0, %s1910_s17  ;;  %p1916_p10 = scmp.lt.s32.totalorder %s1910_s17, %s1910_s17 }
  0x77   :  { %v1651_v12 = vpack.c.bf16 %v837_v11, %v836_v10  ;;  %v282_v16 = vld [vmem:[#allocation8 + $0xd0] sm:$0xff]  ;;  %v841_v19 = vld [vmem:[#allocation11 + $0x28] sm:$0xff]  ;;  %v263_v20 = vld [vmem:[#allocation8 + $0x38] sm:$0xff] }
  0x78   :  { %v283_v21 = vld [vmem:[#allocation8 + $0xd8] sm:$0xff]  ;;  %v1657_v22 = vpack.c.bf16 %v841_v19, %v840_v18  ;;  %v842_v23 = vld [vmem:[#allocation11 + $0x30] sm:$0xff]  ;;  %v264_v25 = vld [vmem:[#allocation8 + $0x40] sm:$0xff]  ;;  %p1917_p11 = por %p1916_p10, %p1915_p9 }
  0x79   :  { %404 = vperm.xlu1 %1777, %v259_v4   ;;  %394 = vperm.xlu0 %1776, %v257_v5   ;;  %v843_v24 = vld [vmem:[#allocation11 + $0x38] sm:$0xff]  ;;  %v284_v26 = vld [vmem:[#allocation8 + $0xe0] sm:$0xff]  ;;  %v845_v29 = vld [vmem:[#allocation11 + $0x48] sm:$0xff] }
  0x7a   :  { %1652 = vmatpush1.bf16.msra.mxu0 %v1651_v12  ;;  %1746 = vmatpush1.bf16.msra.mxu1 %v1651_v12  ;;  %v1660_v27 = vpack.c.bf16 %v843_v24, %v842_v23  ;;  %v844_v28 = vld [vmem:[#allocation11 + $0x40] sm:$0xff]  ;;  %v265_v30 = vld [vmem:[#allocation8 + $0x48] sm:$0xff]  ;;  %v846_v33 = vld [vmem:[#allocation11 + $0x50] sm:$0xff]  ;;  %p1918_p12 = pnand %p1917_p11, %p1911_p8 }
  0x7b   :  { %1653 = vmatprep.subr.bf16.mxu0 %v2783_v1  ;;  %1731 = vmatprep.subr.bf16.mxu1 %v2783_v1  ;;  %v285_v31 = vld [vmem:[#allocation8 + $0xe8] sm:$0xff]  ;;  %v1663_v32 = vpack.c.bf16 %v845_v29, %v844_v28  ;;  %v847_v34 = vld [vmem:[#allocation11 + $0x58] sm:$0xff]  ;;  %v266_v36 = vld [vmem:[#allocation8 + $0x50] sm:$0xff] }
  0x7c   :  { %v286_v37 = vld [vmem:[#allocation8 + $0xf0] sm:$0xff]  ;;  %v1666_v38 = vpack.c.bf16 %v847_v34, %v846_v33  ;;  %v848_v39 = vld [vmem:[#allocation11 + $0x60] sm:$0xff]  ;;  %v849_v40 = vld [vmem:[#allocation11 + $0x68] sm:$0xff] }
  0x7d   :  { %409 = vperm.xlu1 %1777, %v260_v6   ;;  %509 = vperm.xlu0 %1776, %v280_v7   ;;  %v267_v42 = vld [vmem:[#allocation8 + $0x58] sm:$0xff]  ;;  %v115_v44 = vld [vmem:[#allocation2 + $0x8] sm:$0xff]  ;;  %v116_v45 = vld [vmem:[#allocation2 + $0x10] sm:$0xff]  ;;  %v1669_v52 = vpack.c.bf16 %v849_v40, %v848_v39 }
  0x7e   :  { %1655 = vmatpush1.bf16.msra.mxu0 %v1654_v17  ;;  %1747 = vmatpush1.bf16.msra.mxu1 %v1654_v17  ;;  %v287_v43 = vld [vmem:[#allocation8 + $0xf8] sm:$0xff]  ;;  %v850_v58 = vld [vmem:[#allocation11 + $0x70] sm:$0xff]  ;;  %v288_v10 = vld [vmem:[#allocation10] sm:$0xff] }
  0x7f   :  { %1656 = vmatprep.subr.bf16.mxu0 %v2783_v1  ;;  %1732 = vmatprep.subr.bf16.mxu1 %v2783_v1  ;;  %v2127_v46 = vld [vmem:[#allocation5] ss:$0 sm:$0xff]  ;;  %v2131_v49 = vld [vmem:[#allocation7] ss:$0 sm:$0xff]  ;;  %v145_v51 = vld [vmem:[#allocation2 + $0xf8] sm:$0xff] }
  0x80   :  { %v154_v47 = vmul.f32 %v2127_v46, %v115_v44  ;;  %v155_v48 = vmul.f32 %v2127_v46, %v116_v45  ;;  %v114_v50 = vld [vmem:[#allocation2] sm:$0xff]  ;;  %v184_v54 = vmul.f32 %v2127_v46, %v145_v51  ;;  %v117_v55 = vld [vmem:[#allocation2 + $0x18] sm:$0xff]  ;;  %v119_v23 = vld [vmem:[#allocation2 + $0x28] sm:$0xff] }
  0x81   :  { %414 = vperm.xlu1 %1777, %v261_v8   ;;  %514 = vperm.xlu0 %1776, %v281_v9   ;;  %v153_v53 = vmul.f32 %v2127_v46, %v114_v50  ;;  %v118_v56 = vld [vmem:[#allocation2 + $0x20] sm:$0xff]  ;;  %v137_v57 = vld [vmem:[#allocation2 + $0xb8] sm:$0xff]  ;;  %v156_v62 = vmul.f32 %v2127_v46, %v117_v55  ;;  %v289_v9 = vld [vmem:[#allocation10 + $0x8] sm:$0xff] }
  0x82   :  { %1658 = vmatpush1.bf16.msra.mxu0 %v1657_v22  ;;  %1748 = vmatpush1.bf16.msra.mxu1 %v1657_v22  ;;  %v851_v59 = vld [vmem:[#allocation11 + $0x78] sm:$0xff]  ;;  %v193_v60 = vadd.f32 %v2131_v49, %v154_v47  ;;  %v194_v61 = vadd.f32 %v2131_v49, %v155_v48  ;;  %v2143_v2 = vadd.f32 %v2131_v49, %v184_v54  ;;  %v139_v24 = vld [vmem:[#allocation2 + $0xc8] sm:$0xff]  ;;  %v120_v28 = vld [vmem:[#allocation2 + $0x30] sm:$0xff] }
  0x83   :  { %1659 = vmatprep.subr.bf16.mxu0 %v2783_v1  ;;  %1733 = vmatprep.subr.bf16.mxu1 %v2783_v1  ;;  %v138_v63 = vld [vmem:[#allocation2 + $0xc0] sm:$0xff]  ;;  %v192_v0 = vadd.f32 %v2131_v49, %v153_v53  ;;  %v157_v3 = vmul.f32 %v2127_v46, %v118_v56  ;;  %v176_v4 = vmul.f32 %v2127_v46, %v137_v57  ;;  %v140_v29 = vld [vmem:[#allocation2 + $0xd0] sm:$0xff]  ;;  %v121_v40 = vld [vmem:[#allocation2 + $0x38] sm:$0xff] }
  0x84   :  { %v2147_v5 = vmax.f32 %v193_v60, 0.0  ;;  %v2149_v6 = vmax.f32 %v194_v61, 0.0  ;;  %v195_v7 = vadd.f32 %v2131_v49, %v156_v62  ;;  %v177_v8 = vmul.f32 %v2127_v46, %v138_v63  ;;  %v855_v33 = vld [vmem:[#allocation11 + $0x98] sm:$0xff] }
  0x85   :  { %419 = vperm.xlu1 %1777, %v262_v15   ;;  %519 = vperm.xlu0 %1776, %v282_v16   ;;  %v1672_v11 = vpack.c.bf16 %v851_v59, %v850_v58  ;;  %v2153_v12 = vmax.f32 %v192_v0, 0.0  ;;  %v196_v13 = vadd.f32 %v2131_v49, %v157_v3  ;;  %v2157_v14 = vadd.f32 %v2131_v49, %v176_v4  ;;  %v852_v15 = vld [vmem:[#allocation11 + $0x80] sm:$0xff]  ;;  %v853_v16 = vld [vmem:[#allocation11 + $0x88] sm:$0xff]  ;;  %v141_v45 = vld [vmem:[#allocation2 + $0xd8] sm:$0xff] }
  0x86   :  { %1661 = vmatpush1.bf16.msra.mxu0 %v1660_v27  ;;  %1749 = vmatpush1.bf16.msra.mxu1 %v1660_v27  ;;  %v321_v17 = vrot.slane %v2147_v5, 7  ;;  %v322_v18 = vrot.slane %v2149_v6, 7  ;;  %v2163_v19 = vmax.f32 %v195_v7, 0.0  ;;  %v178_v39 = vmul.f32 %v2127_v46, %v139_v24  ;;  %v122_v51 = vld [vmem:[#allocation2 + $0x40] sm:$0xff]  ;;  %v857_v59 = vld [vmem:[#allocation11 + $0xa8] sm:$0xff] }
  0x87   :  { %1662 = vmatprep.subr.bf16.mxu0 %v2783_v1  ;;  %1734 = vmatprep.subr.bf16.mxu1 %v2783_v1  ;;  %v2168_v22 = vmax.f32 %v196_v13, 0.0  ;;  %v179_v44 = vmul.f32 %v2127_v46, %v140_v29  ;;  %v291_v53 = vld [vmem:[#allocation10 + $0x18] sm:$0xff]  ;;  %v160_v56 = vmul.f32 %v2127_v46, %v121_v40  ;;  %v856_v58 = vld [vmem:[#allocation11 + $0xa0] sm:$0xff]  ;;  %v180_v61 = vmul.f32 %v2127_v46, %v141_v45  ;;  %v124_v29 = vld [vmem:[#allocation2 + $0x50] sm:$0xff] }
  0x88   :  { %948 = vmatprep.mubr.f32.mxu0 %v2153_v12  ;;  %v323_v27 = vrot.slane %v2163_v19, 7  ;;  %v2201_v50 = vadd.f32 %v2131_v49, %v178_v39  ;;  %v142_v57 = vld [vmem:[#allocation2 + $0xe0] sm:$0xff]  ;;  %v161_v0 = vmul.f32 %v2127_v46, %v122_v51  ;;  %v143_v24 = vld [vmem:[#allocation2 + $0xe8] sm:$0xff] }
  0x89   :  { %424 = vperm.xlu1 %1777, %v263_v20   ;;  %524 = vperm.xlu0 %1776, %v283_v21   ;;  %v216_v20 = vadd.f32 %v2131_v49, %v177_v8  ;;  %v2781_v21 = vrot.slane %v2153_v12, 7  ;;  %v324_v35 = vrot.slane %v2168_v22, 7  ;;  %v2205_v55 = vadd.f32 %v2131_v49, %v179_v44  ;;  %v293_v8 = vld [vmem:[#allocation10 + $0x28] sm:$0xff]  ;;  %v860_v44 = vld [vmem:[#allocation11 + $0xc0] sm:$0xff] }
  0x8a   :  { %1664 = vmatpush1.bf16.msra.mxu0 %v1663_v32  ;;  %1750 = vmatpush1.bf16.msra.mxu1 %v1663_v32  ;;  %v854_v32 = vld [vmem:[#allocation11 + $0x90] sm:$0xff]  ;;  %v199_v63 = vadd.f32 %v2131_v49, %v160_v56  ;;  %v2219_v4 = vadd.f32 %v2131_v49, %v180_v61  ;;  %v181_v7 = vmul.f32 %v2127_v46, %v142_v57  ;;  %v861_v45 = vld [vmem:[#allocation11 + $0xc8] sm:$0xff]  ;;  %v271_v56 = vld [vmem:[#allocation8 + $0x78] sm:$0xff] }
  0x8b   :  { %1665 = vmatprep.subr.bf16.mxu0 %v2783_v1  ;;  %1735 = vmatprep.subr.bf16.mxu1 %v2783_v1  ;;  %v2179_v34 = vsel %vm354_vm0, %v2781_v21, %v321_v17  ;;  %v1678_v47 = vpack.c.bf16 %v855_v33, %v854_v32  ;;  %v294_v32 = vld [vmem:[#allocation10 + $0x30] sm:$0xff]  ;;  %v182_v40 = vmul.f32 %v2127_v46, %v143_v24  ;;  %v295_v61 = vld [vmem:[#allocation10 + $0x38] sm:$0xff] }
  0x8c   :  { %v2223_v13 = vmax.f32 %v199_v63, 0.0  ;;  %v270_v33 = vld [vmem:[#allocation8 + $0x70] sm:$0xff]  ;;  %v1687_v63 = vpack.c.bf16 %v861_v45, %v860_v44  ;;  %v297_v44 = vld [vmem:[#allocation10 + $0x48] sm:$0xff]  ;;  %v296_v45 = vld [vmem:[#allocation10 + $0x40] sm:$0xff] }
  0x8d   :  { %429 = vperm.xlu1 %1777, %v264_v25   ;;  %529 = vperm.xlu0 %1776, %v284_v26   ;;  %v290_v25 = vld [vmem:[#allocation10 + $0x10] sm:$0xff]  ;;  %v2172_v26 = vsel %vm354_vm0, %v321_v17, %v322_v18 }
  0x8e   :  { %1667 = vmatpush1.bf16.msra.mxu0 %v1666_v38  ;;  %1751 = vmatpush1.bf16.msra.mxu1 %v1666_v38  ;;  %v158_v38 = vmul.f32 %v2127_v46, %v119_v23  ;;  %v858_v17 = vld [vmem:[#allocation11 + $0xb0] sm:$0xff]  ;;  %v2233_v23 = vadd.f32 %v2131_v49, %v181_v7 }
  0x8f   :  { %1668 = vmatprep.subr.bf16.mxu0 %v2783_v1  ;;  %1736 = vmatprep.subr.bf16.mxu1 %v2783_v1  ;;  %v866_v24 = vld [vmem:[#allocation11 + $0xf0] sm:$0xff] }
  0x90   :  { %v197_v48 = vadd.f32 %v2131_v49, %v158_v38 }
  0x91   :  { %434 = vperm.xlu1 %1777, %v265_v30   ;;  %534 = vperm.xlu0 %1776, %v285_v31   ;;  %v268_v30 = vld [vmem:[#allocation8 + $0x60] sm:$0xff]  ;;  %v1675_v31 = vpack.c.bf16 %v853_v16, %v852_v15  ;;  %v200_v15 = vadd.f32 %v2131_v49, %v161_v0  ;;  %v862_v0 = vld [vmem:[#allocation11 + $0xd0] sm:$0xff] }
  0x92   :  { %1670 = vmatpush1.bf16.msra.mxu0 %v1669_v52  ;;  %1752 = vmatpush1.bf16.msra.mxu1 %v1669_v52  ;;  %v269_v52 = vld [vmem:[#allocation8 + $0x68] sm:$0xff]  ;;  %v2210_v60 = vmax.f32 %v197_v48, 0.0  ;;  %v163_v48 = vmul.f32 %v2127_v46, %v124_v29 }
  0x93   :  { %1671 = vmatprep.subr.bf16.mxu0 %v2783_v1  ;;  %1737 = vmatprep.subr.bf16.mxu1 %v2783_v1  ;;  %v123_v16 = vld [vmem:[#allocation2 + $0x48] sm:$0xff] }
  0x94   :  { %v325_v3 = vrot.slane %v2210_v60, 7  ;;  %v127_v29 = vld [vmem:[#allocation2 + $0x68] sm:$0xff] }
  0x95   :  { %439 = vperm.xlu1 %1777, %v266_v36   ;;  %539 = vperm.xlu0 %1776, %v286_v37   ;;  %v2182_v36 = vmax.f32 %v216_v20, 0.0  ;;  %v2188_v37 = vsel %vm354_vm0, %v322_v18, %v323_v27  ;;  %v859_v18 = vld [vmem:[#allocation11 + $0xb8] sm:$0xff] }
  0x96   :  { %1673 = vmatpush1.bf16.msra.mxu0 %v1672_v11  ;;  %1753 = vmatpush1.bf16.msra.mxu1 %v1672_v11  ;;  %v2230_v20 = vsel %vm354_vm0, %v324_v35, %v325_v3 }
  0x97   :  { %1674 = vmatprep.subr.bf16.mxu0 %v2783_v1  ;;  %1738 = vmatprep.subr.bf16.mxu1 %v2783_v1 }
  0x98   :  { %1068 = vmatprep.mubr.f32.mxu1 %v2182_v36 }
  0x99   :  { %444 = vperm.xlu1 %1777, %v267_v42   ;;  %544 = vperm.xlu0 %1776, %v287_v43   ;;  %v2194_v42 = vsel %vm354_vm0, %v323_v27, %v324_v35  ;;  %v159_v43 = vmul.f32 %v2127_v46, %v120_v28  ;;  %v327_v27 = vrot.slane %v2223_v13, 7  ;;  %v2240_v28 = vmax.f32 %v200_v15, 0.0 }
  0x9a   :  { %1676 = vmatpush1.bf16.msra.mxu0 %v1675_v31  ;;  %1754 = vmatpush1.bf16.msra.mxu1 %v1675_v31  ;;  %v144_v31 = vld [vmem:[#allocation2 + $0xf0] sm:$0xff]  ;;  %v1684_v35 = vpack.c.bf16 %v859_v18, %v858_v17  ;;  %v2782_v17 = vrot.slane %v2153_v12, 1  ;;  %v126_v18 = vld [vmem:[#allocation2 + $0x60] sm:$0xff] }
  0x9b   :  { %v198_v54 = vadd.f32 %v2131_v49, %v159_v43  ;;  %1677 = vmatprep.subr.bf16.mxu0 %v2783_v1  ;;  %1739 = vmatprep.subr.bf16.mxu1 %v2783_v1  ;;  %v328_v39 = vrot.slane %v2240_v28, 7  ;;  %v125_v43 = vld [vmem:[#allocation2 + $0x58] sm:$0xff] }
  0x9d   :  { %651 = vperm.xlu1 %1777, %v289_v9   ;;  %646 = vperm.xlu0 %1776, %v288_v10   ;;  %v2213_v62 = vmax.f32 %v198_v54, 0.0  ;;  %v292_v9 = vld [vmem:[#allocation10 + $0x20] sm:$0xff]  ;;  %v1681_v10 = vpack.c.bf16 %v857_v59, %v856_v58  ;;  %v2255_v51 = vsel %vm354_vm0, %v327_v27, %v328_v39  ;;  %v580_v54 = vrot.slane %v2147_v5, 1 }
  0x9e   :  { %1679 = vmatpush1.bf16.msra.mxu0 %v1678_v47  ;;  %1755 = vmatpush1.bf16.msra.mxu1 %v1678_v47  ;;  %v202_v58 = vadd.f32 %v2131_v49, %v163_v48  ;;  %v164_v59 = vmul.f32 %v2127_v46, %v125_v43 }
  0x9f   :  { %v326_v11 = vrot.slane %v2213_v62, 7  ;;  %1680 = vmatprep.subr.bf16.mxu0 %v2783_v1  ;;  %1740 = vmatprep.subr.bf16.mxu1 %v2783_v1  ;;  %v2293_v43 = vsel %vm611_vm1, %v2782_v17, %v580_v54  ;;  %v131_v17 = vld [vmem:[#allocation2 + $0x88] sm:$0xff] }
  0xa0   :  { %v2274_v15 = vmax.f32 %v202_v58, 0.0  ;;  %v166_v58 = vmul.f32 %v2127_v46, %v127_v29  ;;  %v298_v29 = vld [vmem:[#allocation10 + $0x50] sm:$0xff] }
  0xa1   :  { %656 = vperm.xlu1 %1777, %v290_v25   ;;  %449 = vperm.xlu0 %1776, %v268_v30   ;;  %v2237_v25 = vsel %vm354_vm0, %v325_v3, %v326_v11  ;;  %v162_v30 = vmul.f32 %v2127_v46, %v123_v16  ;;  %v2245_v38 = vsel %vm354_vm0, %v326_v11, %v327_v27  ;;  %v863_v3 = vld [vmem:[#allocation11 + $0xd8] sm:$0xff] }
  0xa2   :  { %1682 = vmatpush1.bf16.msra.mxu0 %v1681_v10  ;;  %1756 = vmatpush1.bf16.msra.mxu1 %v1681_v10  ;;  %v865_v10 = vld [vmem:[#allocation11 + $0xe8] sm:$0xff]  ;;  %v203_v16 = vadd.f32 %v2131_v49, %v164_v59  ;;  %v583_v59 = vrot.slane %v2168_v22, 1 }
  0xa3   :  { %1683 = vmatprep.subr.bf16.mxu0 %v2783_v1  ;;  %1741 = vmatprep.subr.bf16.mxu1 %v2783_v1  ;;  %v201_v47 = vadd.f32 %v2131_v49, %v162_v30  ;;  %v867_v30 = vld [vmem:[#allocation11 + $0xf8] sm:$0xff] }
  0xa5   :  { %454 = vperm.xlu1 %1777, %v269_v52   ;;  %661 = vperm.xlu0 %1776, %v291_v53   ;;  %v2258_v52 = vadd.f32 %v2131_v49, %v182_v40  ;;  %v183_v53 = vmul.f32 %v2127_v46, %v144_v31  ;;  %v2262_v57 = vmax.f32 %v201_v47, 0.0  ;;  %v868_v31 = vld [vmem:[#allocation11 + $0x100] sm:$0xff]  ;;  %v2287_v40 = vmax.f32 %v203_v16, 0.0 }
  0xa6   :  { %1685 = vmatpush1.bf16.msra.mxu0 %v1684_v35  ;;  %1757 = vmatpush1.bf16.msra.mxu1 %v1684_v35  ;;  %v330_v35 = vrot.slane %v2274_v15, 7  ;;  %v1690_v47 = vpack.c.bf16 %v863_v3, %v862_v0  ;;  %v205_v16 = vadd.f32 %v2131_v49, %v166_v58 }
  0xa7   :  { %v2268_v7 = vadd.f32 %v2131_v49, %v183_v53  ;;  %1686 = vmatprep.subr.bf16.mxu0 %v2783_v1  ;;  %1742 = vmatprep.subr.bf16.mxu1 %v2783_v1  ;;  %v329_v11 = vrot.slane %v2262_v57, 7  ;;  %v582_v53 = vrot.slane %v2163_v19, 1 }
  0xa9   :  { %671 = vperm.xlu1 %1777, %v293_v8   ;;  %666 = vperm.xlu0 %1776, %v292_v9   ;;  %v581_v8 = vrot.slane %v2149_v6, 1  ;;  %v864_v9 = vld [vmem:[#allocation11 + $0xe0] sm:$0xff] }
  0xaa   :  { %1688 = vmatpush1.bf16.msra.mxu0 %v1687_v63  ;;  %1758 = vmatpush1.bf16.msra.mxu1 %v1687_v63  ;;  %v1693_v48 = vpack.c.bf16 %v865_v10, %v864_v9  ;;  %v2306_v63 = vpack.c.bf16 %v867_v30, %v866_v24  ;;  %v129_v10 = vld [vmem:[#allocation2 + $0x78] sm:$0xff]  ;;  %v584_v24 = vrot.slane %v2210_v60, 1 }
  0xab   :  { %v2280_v27 = vsel %vm611_vm1, %v580_v54, %v581_v8  ;;  %1689 = vmatprep.subr.bf16.mxu0 %v2783_v1  ;;  %1743 = vmatprep.subr.bf16.mxu1 %v2783_v1  ;;  %v331_v54 = vrot.slane %v2287_v40, 7  ;;  %v2312_v3 = vsel %vm611_vm1, %v581_v8, %v582_v53  ;;  %v272_v8 = vld [vmem:[#allocation8 + $0x80] sm:$0xff] }
  0xad   :  { %676 = vperm.xlu1 %1777, %v294_v32   ;;  %459 = vperm.xlu0 %1776, %v270_v33   ;;  %v869_v32 = vld [vmem:[#allocation11 + $0x108] sm:$0xff]  ;;  %v2284_v33 = vsel %vm354_vm0, %v328_v39, %v329_v11  ;;  %v165_v39 = vmul.f32 %v2127_v46, %v126_v18  ;;  %v2322_v18 = vsel %vm611_vm1, %v582_v53, %v583_v59  ;;  %v587_v53 = vrot.slane %v2240_v28, 1 }
  0xae   :  { %v2308_v0 = vpack.c.bf16 %v869_v32, %v868_v31  ;;  %2792 = vst [vmem:[#allocation22_spill] sm:$0xff] %v2322_v18  ;;  %1691 = vmatpush1.bf16.msra.mxu0 %v1690_v47  ;;  %1759 = vmatpush1.bf16.msra.mxu1 %v1690_v47  ;;  %v585_v31 = vrot.slane %v2213_v62, 1  ;;  %v586_v32 = vrot.slane %v2223_v13, 1  ;;  %v168_v47 = vmul.f32 %v2127_v46, %v129_v10  ;;  %v300_v18 = vld [vmem:[#allocation10 + $0x60] sm:$0xff] }
  0xaf   :  { %v204_v9 = vadd.f32 %v2131_v49, %v165_v39  ;;  %1692 = vmatprep.subr.bf16.mxu0 %v2783_v1  ;;  %1744 = vmatprep.subr.bf16.mxu1 %v2783_v1  ;;  %v273_v1 = vld [vmem:[#allocation8 + $0x88] sm:$0xff] }
  0xb0   :  { %v2343_v58 = vsel %vm611_vm1, %v584_v24, %v585_v31  ;;  %v207_v10 = vadd.f32 %v2131_v49, %v168_v47  ;;  %v2354_v21 = vsel %vm611_vm1, %v586_v32, %v587_v53  ;;  %v2797_v47 = vmov 0.0|0.0  }
  0xb1   :  { %464 = vperm.xlu1 %1777, %v271_v56   ;;  %681 = vperm.xlu0 %1776, %v295_v61   ;;  %v2301_v56 = vsel %vm354_vm0, %v329_v11, %v330_v35  ;;  %v128_v61 = vld [vmem:[#allocation2 + $0x70] sm:$0xff]  ;;  %v2317_v11 = vsel %vm354_vm0, %v330_v35, %v331_v54  ;;  %v2325_v30 = vmax.f32 %v204_v9, 0.0  ;;  %2794 = vst [vmem:[#allocation24_spill] sm:$0xff] %v2343_v58  ;;  %2796 = vst [vmem:[#allocation26_spill] sm:$0xff] %v2354_v21 }
  0xb2   :  { %v167_v35 = vmul.f32 %v2127_v46, %v128_v61  ;;  %v2347_v61 = vsel %vm611_vm1, %v585_v31, %v586_v32  ;;  %1694 = vmatpush1.bf16.msra.mxu0 %v1693_v48  ;;  %1760 = vmatpush1.bf16.msra.mxu1 %v1693_v48  ;;  %v2371_v21 = vmax.f32 %v207_v10, 0.0 }
  0xb3   :  { %v332_v39 = vrot.slane %v2325_v30, 7  ;;  %2795 = vst [vmem:[#allocation25_spill] sm:$0xff] %v2347_v61  ;;  %1695 = vmatprep.subr.bf16.mxu0 %v2797_v47  ;;  %1745 = vmatprep.subr.bf16.mxu1 %v2797_v47 }
  0xb4   :  { %v206_v9 = vadd.f32 %v2131_v49, %v167_v35  ;;  %v590_v35 = vrot.slane %v2287_v40, 1 }
  0xb5   :  { %691 = vperm.xlu1 %1777, %v297_v44   ;;  %686 = vperm.xlu0 %1776, %v296_v45   ;;  %v2332_v44 = vmax.f32 %v205_v16, 0.0  ;;  %v2336_v45 = vsel %vm611_vm1, %v583_v59, %v584_v24  ;;  %v130_v16 = vld [vmem:[#allocation2 + $0x80] sm:$0xff]  ;;  %v588_v24 = vrot.slane %v2262_v57, 1  ;;  %v2359_v31 = vsel %vm354_vm0, %v331_v54, %v332_v39 }
  0xb6   :  { %2793 = vst [vmem:[#allocation23_spill] sm:$0xff] %v2336_v45  ;;  %v299_v45 = vld [vmem:[#allocation10 + $0x58] sm:$0xff]  ;;  %v169_v54 = vmul.f32 %v2127_v46, %v130_v16  ;;  %v591_v16 = vrot.slane %v2325_v30, 1  ;;  %1697 = vmatpush1.bf16.msra.mxu0 %v2306_v63  ;;  %1761 = vmatpush1.bf16.msra.mxu1 %v2306_v63 }
  0xb7   :  { %v333_v59 = vrot.slane %v2332_v44, 7  ;;  %v2375_v48 = vsel %vm611_vm1, %v587_v53, %v588_v24  ;;  %v335_v53 = vrot.slane %v2371_v21, 7  ;;  %1699 = vmatprep.subr.bf16.mxu1 %v2308_v0 }
  0xb8   :  { %2799 = vst [vmem:[#allocation28_spill] sm:$0xff] %v2375_v48  ;;  %v208_v10 = vadd.f32 %v2131_v49, %v169_v54  ;;  %v2410_v63 = vsel %vm611_vm1, %v590_v35, %v591_v16 }
  0xb9   :  { %696 = vperm.xlu1 %1777, %v298_v29   ;;  %469 = vperm.xlu0 %1776, %v272_v8   ;;  %v2361_v29 = vmax.f32 %v206_v9, 0.0  ;;  %v589_v8 = vrot.slane %v2274_v15, 1  ;;  %v2369_v32 = vsel %vm354_vm0, %v332_v39, %v333_v59  ;;  %v132_v9 = vld [vmem:[#allocation2 + $0x90] sm:$0xff]  ;;  %v170_v39 = vmul.f32 %v2127_v46, %v131_v17  ;;  %2804 = vst [vmem:[#allocation33_spill] sm:$0xff] %v2410_v63 }
  0xba   :  { %2798 = vst [vmem:[#allocation27_spill] sm:$0xff] %v2369_v32  ;;  %v171_v48 = vmul.f32 %v2127_v46, %v132_v9  ;;  %v301_v32 = vld [vmem:[#allocation10 + $0x68] sm:$0xff]  ;;  %v592_v17 = vrot.slane %v2332_v44, 1  ;;  %v2406_v54 = vmax.f32 %v208_v10, 0.0  ;;  %v133_v9 = vld [vmem:[#allocation2 + $0x98] sm:$0xff] }
  0xbb   :  { %v334_v61 = vrot.slane %v2361_v29, 7  ;;  %v2381_v58 = vsel %vm611_vm1, %v588_v24, %v589_v8  ;;  %v2385_v47 = vsel %vm611_vm1, %v589_v8, %v590_v35  ;;  %v274_v63 = vld [vmem:[#allocation8 + $0x90] sm:$0xff] }
  0xbc   :  { %2800 = vst [vmem:[#allocation29_spill] sm:$0xff] %v2381_v58  ;;  %2801 = vst [vmem:[#allocation30_spill] sm:$0xff] %v2385_v47  ;;  %v2421_v58 = vsel %vm611_vm1, %v591_v16, %v592_v17  ;;  %v336_v35 = vrot.slane %v2406_v54, 7 }
  0xbd   :  { %474 = vperm.xlu1 %1777, %v273_v1   ;;  %701 = vperm.xlu0 %1776, %v299_v45   ;;  %v2396_v24 = vsel %vm354_vm0, %v333_v59, %v334_v61  ;;  %v209_v1 = vadd.f32 %v2131_v49, %v170_v39  ;;  %v593_v45 = vrot.slane %v2361_v29, 1  ;;  %v2404_v8 = vsel %vm354_vm0, %v334_v61, %v335_v53 }
  0xbe   :  { %2802 = vst [vmem:[#allocation31_spill] sm:$0xff] %v2404_v8  ;;  %2803 = vst [vmem:[#allocation32_spill] sm:$0xff] %v2406_v54  ;;  %v210_v59 = vadd.f32 %v2131_v49, %v171_v48  ;;  %v172_v61 = vmul.f32 %v2127_v46, %v133_v9  ;;  %v302_v48 = vld [vmem:[#allocation10 + $0x70] sm:$0xff]  ;;  %v594_v8 = vrot.slane %v2371_v21, 1  ;;  %v2432_v16 = vsel %vm354_vm0, %v335_v53, %v336_v35  ;;  %v275_v53 = vld [vmem:[#allocation8 + $0x98] sm:$0xff] }
  0xbf   :  { %v2413_v39 = vmax.f32 %v209_v1, 0.0  ;;  %v2417_v47 = vsel %vm611_vm1, %v592_v17, %v593_v45  ;;  %2807 = vst [vmem:[#allocation36_spill] sm:$0xff] %v2421_v58  ;;  %2809 = vst [vmem:[#allocation38_spill] sm:$0xff] %v2432_v16  ;;  %v595_v16 = vrot.slane %v2406_v54, 1  ;;  %v135_v54 = vld [vmem:[#allocation2 + $0xa8] sm:$0xff] }
  0xc0   :  { %2806 = vst [vmem:[#allocation35_spill] sm:$0xff] %v2417_v47  ;;  %v2425_v10 = vmax.f32 %v210_v59, 0.0  ;;  %v211_v47 = vadd.f32 %v2131_v49, %v172_v61  ;;  %v303_v61 = vld [vmem:[#allocation10 + $0x78] sm:$0xff] }
  0xc1   :  { %2805 = vst [vmem:[#allocation34_spill] sm:$0xff] %v2413_v39  ;;  %711 = vperm.xlu1 %1777, %v301_v32   ;;  %706 = vperm.xlu0 %1776, %v300_v18   ;;  %v337_v1 = vrot.slane %v2413_v39, 7  ;;  %v2441_v32 = vsel %vm611_vm1, %v593_v45, %v594_v8 }
  0xc2   :  { %2808 = vst [vmem:[#allocation37_spill] sm:$0xff] %v2425_v10  ;;  %v338_v17 = vrot.slane %v2425_v10, 7  ;;  %2811 = vst [vmem:[#allocation40_spill] sm:$0xff] %v2441_v32  ;;  %v2443_v59 = vmax.f32 %v211_v47, 0.0  ;;  %v2457_v47 = vsel %vm611_vm1, %v594_v8, %v595_v16 }
  0xc3   :  { %v2437_v18 = vsel %vm354_vm0, %v336_v35, %v337_v1  ;;  %v134_v35 = vld [vmem:[#allocation2 + $0xa0] sm:$0xff]  ;;  %2814 = vst [vmem:[#allocation43_spill] sm:$0xff] %v2457_v47 }
  0xc4   :  { %2810 = vst [vmem:[#allocation39_spill] sm:$0xff] %v2437_v18  ;;  %v2447_v9 = vsel %vm354_vm0, %v337_v1, %v338_v17  ;;  %v339_v58 = vrot.slane %v2443_v59, 7  ;;  %v173_v45 = vmul.f32 %v2127_v46, %v134_v35  ;;  %v596_v1 = vrot.slane %v2413_v39, 1  ;;  %v276_v47 = vld [vmem:[#allocation8 + $0xa0] sm:$0xff]  ;;  %v136_v39 = vld [vmem:[#allocation2 + $0xb0] sm:$0xff] }
  0xc5   :  { %716 = vperm.xlu1 %1777, %v302_v48   ;;  %479 = vperm.xlu0 %1776, %v274_v63   ;;  %2812 = vst [vmem:[#allocation41_spill] sm:$0xff] %v2447_v9  ;;  %v305_v63 = vld [vmem:[#allocation10 + $0x88] sm:$0xff]  ;;  %v304_v48 = vld [vmem:[#allocation10 + $0x80] sm:$0xff]  ;;  %v597_v9 = vrot.slane %v2425_v10, 1 }
  0xc6   :  { %v2453_v18 = vsel %vm354_vm0, %v338_v17, %v339_v58  ;;  %v212_v32 = vadd.f32 %v2131_v49, %v173_v45  ;;  %v2469_v8 = vsel %vm611_vm1, %v595_v16, %v596_v1 }
  0xc7   :  { %2813 = vst [vmem:[#allocation42_spill] sm:$0xff] %v2453_v18  ;;  %v2465_v17 = vsel %vm611_vm1, %v596_v1, %v597_v9  ;;  %2816 = vst [vmem:[#allocation45_spill] sm:$0xff] %v2469_v8  ;;  %v598_v18 = vrot.slane %v2443_v59, 1 }
  0xc8   :  { %2815 = vst [vmem:[#allocation44_spill] sm:$0xff] %v2465_v17  ;;  %v2471_v35 = vmax.f32 %v212_v32, 0.0  ;;  %v175_v32 = vmul.f32 %v2127_v46, %v136_v39  ;;  %v308_v39 = vld [vmem:[#allocation10 + $0xa0] sm:$0xff] }
  0xc9   :  { %484 = vperm.xlu1 %1777, %v275_v53   ;;  %721 = vperm.xlu0 %1776, %v303_v61   ;;  %v174_v53 = vmul.f32 %v2127_v46, %v135_v54  ;;  %v306_v61 = vld [vmem:[#allocation10 + $0x90] sm:$0xff]  ;;  %v2479_v17 = vsel %vm611_vm1, %v597_v9, %v598_v18  ;;  %v309_v46 = vld [vmem:[#allocation10 + $0xa8] sm:$0xff] }
  0xca   :  { %v340_v45 = vrot.slane %v2471_v35, 7  ;;  %v214_v8 = vadd.f32 %v2131_v49, %v175_v32  ;;  %v278_v32 = vld [vmem:[#allocation8 + $0xb0] sm:$0xff] }
  0xcb   :  { %v213_v10 = vadd.f32 %v2131_v49, %v174_v53  ;;  %v599_v53 = vrot.slane %v2471_v35, 1  ;;  %v2504_v49 = vmax.f32 %v2157_v14, 0.0 }
  0xcc   :  { %v2483_v16 = vsel %vm354_vm0, %v339_v58, %v340_v45 }
  0xcd   :  { %731 = vperm.xlu1 %1777, %v305_v63   ;;  %726 = vperm.xlu0 %1776, %v304_v48   ;;  %v2485_v54 = vmax.f32 %v213_v10, 0.0  ;;  %v277_v63 = vld [vmem:[#allocation8 + $0xa8] sm:$0xff]  ;;  %v307_v48 = vld [vmem:[#allocation10 + $0x98] sm:$0xff]  ;;  %v2497_v58 = vsel %vm611_vm1, %v598_v18, %v599_v53  ;;  %v2499_v10 = vmax.f32 %v214_v8, 0.0  ;;  %2818 = vst [vmem:[#allocation47_spill] sm:$0xff] %v2504_v49  ;;  %v310_v8 = vld [vmem:[#allocation10 + $0xb0] sm:$0xff] }
  0xce   :  { %2817 = vst [vmem:[#allocation46_spill] sm:$0xff] %v2497_v58 }
  0xcf   :  { %v341_v1 = vrot.slane %v2485_v54, 7 }
  0xd1   :  { %736 = vperm.xlu1 %1777, %v306_v61   ;;  %489 = vperm.xlu0 %1776, %v276_v47   ;;  %v2493_v9 = vsel %vm354_vm0, %v340_v45, %v341_v1  ;;  %v600_v47 = vrot.slane %v2485_v54, 1  ;;  %v601_v61 = vrot.slane %v2499_v10, 1 }
  0xd3   :  { %v2508_v45 = vsel %vm611_vm1, %v600_v47, %v601_v61  ;;  %v2512_v18 = vsel %vm611_vm1, %v599_v53, %v600_v47  ;;  %v279_v53 = vld [vmem:[#allocation8 + $0xb8] sm:$0xff] }
  0xd4   :  { %2819 = vst [vmem:[#allocation48_spill] sm:$0xff] %v2508_v45  ;;  %2820 = vst [vmem:[#allocation49_spill] sm:$0xff] %v2512_v18  ;;  %v311_v47 = vld [vmem:[#allocation10 + $0xb8] sm:$0xff]  ;;  %v2527_v18 = vmax.f32 %v2201_v50, 0.0 }
  0xd5   :  { %494 = vperm.xlu1 %1777, %v277_v63   ;;  %741 = vperm.xlu0 %1776, %v307_v48   ;;  %v602_v63 = vrot.slane %v2504_v49, 1  ;;  %v342_v48 = vrot.slane %v2499_v10, 7 }
  0xd7   :  { %v2518_v14 = vsel %vm611_vm1, %v601_v61, %v602_v63  ;;  %v2522_v58 = vsel %vm354_vm0, %v341_v1, %v342_v48  ;;  %v313_v1 = vld [vmem:[#allocation10 + $0xc8] sm:$0xff] }
  0xd8   :  { %2821 = vst [vmem:[#allocation50_spill] sm:$0xff] %v2518_v14  ;;  %2822 = vst [vmem:[#allocation51_spill] sm:$0xff] %v2522_v58 }
  0xd9   :  { %751 = vperm.xlu1 %1777, %v309_v46   ;;  %746 = vperm.xlu0 %1776, %v308_v39   ;;  %v343_v46 = vrot.slane %v2504_v49, 7  ;;  %v603_v39 = vrot.slane %v2182_v36, 1  ;;  %v318_v49 = vld [vmem:[#allocation10 + $0xf0] sm:$0xff] }
  0xdb   :  { %v2531_v45 = vsel %vm354_vm0, %v342_v48, %v343_v46  ;;  %v2535_v61 = vsel %vm611_vm1, %v602_v63, %v603_v39  ;;  %v315_v48 = vld [vmem:[#allocation10 + $0xd8] sm:$0xff]  ;;  %v317_v63 = vld [vmem:[#allocation10 + $0xe8] sm:$0xff] }
  0xdc   :  { %2823 = vst [vmem:[#allocation52_spill] sm:$0xff] %v2531_v45  ;;  %2824 = vst [vmem:[#allocation53_spill] sm:$0xff] %v2535_v61  ;;  %v314_v45 = vld [vmem:[#allocation10 + $0xd0] sm:$0xff]  ;;  %v316_v61 = vld [vmem:[#allocation10 + $0xe0] sm:$0xff] }
  0xdd   :  { %756 = vperm.xlu1 %1777, %v310_v8   ;;  %499 = vperm.xlu0 %1776, %v278_v32   ;;  %v312_v8 = vld [vmem:[#allocation10 + $0xc0] sm:$0xff]  ;;  %v2789_v32 = vrot.slane %v2527_v18, 1 }
  0xdf   :  { %v2542_v50 = vsel %vm611_vm1, %v603_v39, %v2789_v32  ;;  %v344_v32 = vrot.slane %v2182_v36, 7 }
  0xe0   :  { %2825 = vst [vmem:[#allocation54_spill] sm:$0xff] %v2542_v50 }
  0xe1   :  { %504 = vperm.xlu1 %1777, %v279_v53   ;;  %761 = vperm.xlu0 %1776, %v311_v47   ;;  %v2545_v53 = vmax.f32 %v2143_v2, 0.0  ;;  %v319_v47 = vld [vmem:[#allocation10 + $0xf8] sm:$0xff]  ;;  %v2828_v2 = vrot.slane %v2153_v12, 7 }
  0xe3   :  { %v2791_v58 = vrot.slane %v2545_v53, 7  ;;  %v2790_v39 = vrot.slane %v2545_v53, 1 }
  0xe5   :  { %771 = vperm.xlu1 %1777, %v313_v1   ;;  %766 = vperm.xlu0 %1776, %v312_v8   ;;  %v2826_v1 = vrot.slane %v2153_v12, 1  ;;  %v362_v12 = vsel %vm354_vm0, %v343_v46, %v344_v32  ;;  %v2578_v46 = vmax.f32 %v2219_v4, 0.0 }
  0xe9   :  { %781 = vperm.xlu1 %1777, %v315_v48   ;;  %776 = vperm.xlu0 %1776, %v314_v45   ;;  %v2555_v45 = vsel %vm611_vm1, %v2790_v39, %v2826_v1  ;;  %v2570_v1 = vmax.f32 %v2205_v55, 0.0  ;;  %v871_v39 = vld [vmem:[#allocation11 + $0x118] sm:$0xff]  ;;  %v872_v55 = vld [vmem:[#allocation11 + $0x120] sm:$0xff] }
  0xea   :  { %2827 = vst [vmem:[#allocation55_spill] sm:$0xff] %v2555_v45 }
  0xed   :  { %791 = vperm.xlu1 %1777, %v317_v63   ;;  %786 = vperm.xlu0 %1776, %v316_v61   ;;  %v386_v61 = vsel %vm354_vm0, %v2791_v58, %v2828_v2  ;;  %v870_v2 = vld [vmem:[#allocation11 + $0x110] sm:$0xff]  ;;  %v873_v58 = vld [vmem:[#allocation11 + $0x128] sm:$0xff] }
  0xf1   :  { %801 = vperm.xlu1 %1777, %v319_v47   ;;  %796 = vperm.xlu0 %1776, %v318_v49   ;;  %v345_v49 = vrot.slane %v2527_v18, 7 }
  0xf4   :  { %v400_v8 = vpop.permute.xlu1 %399  ;;  %v390_v48 = vpop.permute.xlu0 %389 }
  0xf5   :  { %v547_v63 = vmul.f32 %v390_v48, %v386_v61  ;;  %v549_v48 = vmul.f32 %v400_v8, %v2172_v26  ;;  %v2588_v8 = vmax.f32 %v2233_v23, 0.0 }
  0xf7   :  { %949 = vmatmul.mubr.f32.vlgmr.msra.gmra.mrb[0].mxu0 %v547_v63  ;;  %v1702_v63 = vpack.c.bf16 %v871_v39, %v870_v2  ;;  %v347_v39 = vrot.slane %v2578_v46, 7  ;;  %v875_v2 = vld [vmem:[#allocation11 + $0x138] sm:$0xff] }
  0xf8   :  { %v405_v50 = vpop.permute.xlu1 %404  ;;  %v395_v14 = vpop.permute.xlu0 %394  ;;  %953 = vmatprep.mubr.f32.mxu0 %v2147_v5 }
  0xf9   :  { %v548_v47 = vmul.f32 %v395_v14, %v2179_v34  ;;  %v361_v34 = vsel %vm354_vm0, %v344_v32, %v345_v49  ;;  %v346_v14 = vrot.slane %v2570_v1, 7  ;;  %v1706_v32 = vpack.c.bf16 %v873_v58, %v872_v55  ;;  %v878_v55 = vld [vmem:[#allocation11 + $0x150] sm:$0xff] }
  0xfb   :  { %954 = vmatmul.mubr.f32.gmra.mrb[2].mxu0 %v548_v47  ;;  %v360_v4 = vsel %vm354_vm0, %v345_v49, %v346_v14  ;;  %v359_v23 = vsel %vm354_vm0, %v346_v14, %v347_v39  ;;  %v2597_v49 = vmax.f32 %v2258_v52, 0.0  ;;  %v2606_v14 = vmax.f32 %v2268_v7, 0.0 }
  0xfc   :  { %v410_v61 = vpop.permute.xlu1 %409  ;;  %v510_v36 = vpop.permute.xlu0 %509  ;;  %958 = vmatprep.mubr.f32.mxu0 %v2149_v6  ;;  %v550_v6 = vmul.f32 %v405_v50, %v2188_v37 }
  0xfd   :  { %v571_v5 = vmul.f32 %v510_v36, %v362_v12  ;;  %v874_v12 = vld [vmem:[#allocation11 + $0x130] sm:$0xff]  ;;  %v551_v37 = vmul.f32 %v410_v61, %v2194_v42  ;;  %v876_v36 = vld [vmem:[#allocation11 + $0x140] sm:$0xff] }
  0xfe   :  { %v1710_v50 = vpack.c.bf16 %v875_v2, %v874_v12  ;;  %v881_v12 = vld [vmem:[#allocation11 + $0x168] sm:$0xff] }
  0xff   :  { %959 = vmatmul.mubr.f32.gmra.mrb[4].mxu0 %v549_v48  ;;  %1069 = vmatmul.mubr.f32.vlgmr.msra.gmra.mrb[0].mxu1 %v571_v5  ;;  %v877_v48 = vld [vmem:[#allocation11 + $0x148] sm:$0xff] }
 0x100   :  { %v415_v47 = vpop.permute.xlu1 %414  ;;  %v515_v45 = vpop.permute.xlu0 %514  ;;  %1701 = vmatpush3.bf16.msra.mxu1 %v2308_v0  ;;  %963 = vmatprep.mubr.f32.mxu0 %v2163_v19 }
 0x101   :  { %v572_v26 = vmul.f32 %v515_v45, %v361_v34  ;;  %1073 = vmatprep.mubr.f32.mxu1 %v2527_v18  ;;  %1703 = vmatprep.subr.bf16.mxu1 %v1702_v63  ;;  %v348_v45 = vrot.slane %v2588_v8, 7  ;;  %v552_v42 = vmul.f32 %v415_v47, %v2230_v20  ;;  %v349_v34 = vrot.slane %v2597_v49, 7 }
 0x103   :  { %964 = vmatmul.mubr.f32.gmra.mrb[6].mxu0 %v550_v6  ;;  %1074 = vmatmul.mubr.f32.gmra.mrb[2].mxu1 %v572_v26  ;;  %v358_v52 = vsel %vm354_vm0, %v347_v39, %v348_v45  ;;  %v879_v6 = vld [vmem:[#allocation11 + $0x158] sm:$0xff]  ;;  %v357_v7 = vsel %vm354_vm0, %v348_v45, %v349_v34  ;;  %v880_v39 = vld [vmem:[#allocation11 + $0x160] sm:$0xff] }
 0x104   :  { %v420_v19 = vpop.permute.xlu1 %419  ;;  %v520_v0 = vpop.permute.xlu0 %519  ;;  %1705 = vmatpush3.bf16.msra.mxu1 %v1702_v63  ;;  %968 = vmatprep.mubr.f32.mxu0 %v2168_v22  ;;  %v1714_v63 = vpack.c.bf16 %v877_v48, %v876_v36  ;;  %v2829_v48 = vrot.slane %v2545_v53, 7 }
 0x105   :  { %v573_v58 = vmul.f32 %v520_v0, %v360_v4  ;;  %1078 = vmatprep.mubr.f32.mxu1 %v2570_v1  ;;  %1707 = vmatprep.subr.bf16.mxu1 %v1706_v32  ;;  %v553_v20 = vmul.f32 %v420_v19, %v2237_v25  ;;  %v350_v4 = vrot.slane %v2606_v14, 7  ;;  %v1722_v19 = vpack.c.bf16 %v881_v12, %v880_v39 }
 0x107   :  { %969 = vmatmul.mubr.f32.gmra.mrb[8].mxu0 %v551_v37  ;;  %1079 = vmatmul.mubr.f32.gmra.mrb[4].mxu1 %v573_v58  ;;  %v356_v37 = vsel %vm354_vm0, %v349_v34, %v350_v4  ;;  %v882_v58 = vld [vmem:[#allocation11 + $0x170] sm:$0xff] }
 0x108   :  { %v425_v22 = vpop.permute.xlu1 %424  ;;  %v525_v5 = vpop.permute.xlu0 %524  ;;  %1709 = vmatpush3.bf16.msra.mxu1 %v1706_v32  ;;  %973 = vmatprep.mubr.f32.mxu0 %v2210_v60  ;;  %v1718_v32 = vpack.c.bf16 %v879_v6, %v878_v55 }
 0x109   :  { %v574_v61 = vmul.f32 %v525_v5, %v359_v23  ;;  %1083 = vmatprep.mubr.f32.mxu1 %v2578_v46  ;;  %1711 = vmatprep.subr.bf16.mxu1 %v1710_v50 }
 0x10b   :  { %974 = vmatmul.mubr.f32.gmra.mrb[10].mxu0 %v552_v42  ;;  %1084 = vmatmul.mubr.f32.gmra.mrb[6].mxu1 %v574_v61 }
 0x10c   :  { %v430_v60 = vpop.permute.xlu1 %429  ;;  %v530_v26 = vpop.permute.xlu0 %529  ;;  %1713 = vmatpush3.bf16.msra.mxu1 %v1710_v50  ;;  %978 = vmatprep.mubr.f32.mxu0 %v2213_v62  ;;  %v554_v62 = vmul.f32 %v425_v22, %v2245_v38  ;;  %v883_v50 = vld [vmem:[#allocation11 + $0x178] sm:$0xff]  ;;  %v355_v22 = vsel %vm354_vm0, %v350_v4, %v2829_v48  ;;  %v2840_v48 = vld [vmem:[#allocation30_spill] sm:$0xff] }
 0x10d   :  { %v575_v47 = vmul.f32 %v530_v26, %v358_v52  ;;  %1088 = vmatprep.mubr.f32.mxu1 %v2588_v8  ;;  %1715 = vmatprep.subr.bf16.mxu1 %v1714_v63  ;;  %v1726_v36 = vpack.c.bf16 %v883_v50, %v882_v58 }
 0x10f   :  { %979 = vmatmul.mubr.f32.gmra.mrb[12].mxu0 %v553_v20  ;;  %1089 = vmatmul.mubr.f32.gmra.mrb[8].mxu1 %v575_v47 }
 0x110   :  { %v435_v2 = vpop.permute.xlu1 %434  ;;  %v535_v0 = vpop.permute.xlu0 %534  ;;  %1717 = vmatpush3.bf16.msra.mxu1 %v1714_v63  ;;  %983 = vmatprep.mubr.f32.mxu0 %v2223_v13  ;;  %v555_v13 = vmul.f32 %v430_v60, %v2255_v51 }
 0x111   :  { %v576_v25 = vmul.f32 %v535_v0, %v357_v7  ;;  %1093 = vmatprep.mubr.f32.mxu1 %v2597_v49  ;;  %1719 = vmatprep.subr.bf16.mxu1 %v1718_v32  ;;  %v2833_v7 = vld [vmem:[#allocation23_spill] sm:$0xff] }
 0x113   :  { %984 = vmatmul.mubr.f32.gmra.mrb[14].mxu0 %v554_v62  ;;  %1094 = vmatmul.mubr.f32.gmra.mrb[10].mxu1 %v576_v25  ;;  %v2835_v62 = vld [vmem:[#allocation31_spill] sm:$0xff] }
 0x114   :  { %v440_v23 = vpop.permute.xlu1 %439  ;;  %v540_v45 = vpop.permute.xlu0 %539  ;;  %1721 = vmatpush3.bf16.msra.mxu1 %v1718_v32  ;;  %988 = vmatprep.mubr.f32.mxu0 %v2240_v28  ;;  %v556_v28 = vmul.f32 %v435_v2, %v2284_v33  ;;  %v2832_v32 = vld [vmem:[#allocation24_spill] sm:$0xff] }
 0x115   :  { %v577_v38 = vmul.f32 %v540_v45, %v356_v37  ;;  %1098 = vmatprep.mubr.f32.mxu1 %v2606_v14  ;;  %1723 = vmatprep.subr.bf16.mxu1 %v1722_v19  ;;  %v557_v52 = vmul.f32 %v440_v23, %v2301_v56  ;;  %v2837_v23 = vld [vmem:[#allocation32_spill] sm:$0xff] }
 0x117   :  { %989 = vmatmul.mubr.f32.gmra.mrb[16].mxu0 %v555_v13  ;;  %1099 = vmatmul.mubr.f32.gmra.mrb[12].mxu1 %v577_v38  ;;  %v2839_v13 = vld [vmem:[#allocation28_spill] sm:$0xff] }
 0x118   :  { %v445_v5 = vpop.permute.xlu1 %444  ;;  %v545_v42 = vpop.permute.xlu0 %544  ;;  %1725 = vmatpush3.bf16.msra.mxu1 %v1722_v19  ;;  %993 = vmatprep.mubr.f32.mxu0 %v2262_v57  ;;  %v2836_v19 = vld [vmem:[#allocation26_spill] sm:$0xff] }
 0x119   :  { %v578_v51 = vmul.f32 %v545_v42, %v355_v22  ;;  %1103 = vmatprep.mubr.f32.mxu1 %v2545_v53  ;;  %1727 = vmatprep.subr.bf16.mxu1 %v1726_v36  ;;  %v558_v6 = vmul.f32 %v445_v5, %v2317_v11  ;;  %v2841_v22 = vld [vmem:[#allocation38_spill] sm:$0xff] }
 0x11b   :  { %994 = vmatmul.mubr.f32.gmra.mrb[18].mxu0 %v556_v28  ;;  %1104 = vmatmul.mubr.f32.gmra.mrb[14].mxu1 %v578_v51  ;;  %v2842_v51 = vld [vmem:[#allocation34_spill] sm:$0xff] }
 0x11c   :  { %v652_v61 = vpop.permute.xlu1 %651  ;;  %v647_v63 = vpop.permute.xlu0 %646  ;;  %1729 = vmatpush3.bf16.msra.mxu1 %v1726_v36  ;;  %998 = vmatprep.mubr.f32.mxu0 %v2274_v15 }
 0x11d   :  { %v805_v34 = vmul.f32 %v652_v61, %v2280_v27  ;;  %v804_v55 = vmul.f32 %v647_v63, %v2293_v43  ;;  %v2830_v43 = vld [vmem:[#allocation22_spill] sm:$0xff]  ;;  %v2843_v61 = vld [vmem:[#allocation39_spill] sm:$0xff] }
 0x11f   :  { %999 = vmatmul.mubr.f32.gmra.mrb[20].mxu0 %v557_v52  ;;  %1602 = vmatprep.mubr.f32.mxu1 %v804_v55  ;;  %v2844_v52 = vld [vmem:[#allocation33_spill] sm:$0xff] }
 0x120   :  { %v657_v57 = vpop.permute.xlu1 %656  ;;  %v450_v33 = vpop.permute.xlu0 %449  ;;  %1603 = vmatmul.mubr.f32.vlgmr.msra.gmra.mrb[16].mxu1 %v805_v34  ;;  %1003 = vmatprep.mubr.f32.mxu0 %v2287_v40  ;;  %v2831_v40 = vld [vmem:[#allocation27_spill] sm:$0xff] }
 0x121   :  { %v806_v60 = vmul.f32 %v657_v57, %v2312_v3  ;;  %v559_v27 = vmul.f32 %v450_v33, %v2359_v31  ;;  %v2834_v31 = vld [vmem:[#allocation25_spill] sm:$0xff] }
 0x122   :  { %v2845_v33 = vld [vmem:[#allocation37_spill] sm:$0xff] }
 0x123   :  { %1004 = vmatmul.mubr.f32.gmra.mrb[22].mxu0 %v558_v6  ;;  %1605 = vmatprep.mubr.f32.mxu1 %v806_v60  ;;  %v2846_v6 = vld [vmem:[#allocation35_spill] sm:$0xff] }
 0x124   :  { %v455_v15 = vpop.permute.xlu1 %454  ;;  %v662_v26 = vpop.permute.xlu0 %661  ;;  %1008 = vmatprep.mubr.f32.mxu0 %v2325_v30 }
 0x125   :  { %v807_v56 = vmul.f32 %v662_v26, %v2830_v43  ;;  %v560_v11 = vmul.f32 %v455_v15, %v2831_v40  ;;  %v2847_v15 = vld [vmem:[#allocation36_spill] sm:$0xff] }
 0x127   :  { %1009 = vmatmul.mubr.f32.gmra.mrb[24].mxu0 %v559_v27  ;;  %1606 = vmatmul.mubr.f32.gmra.mrb[18].mxu1 %v807_v56  ;;  %v2848_v56 = vld [vmem:[#allocation40_spill] sm:$0xff] }
 0x128   :  { %v672_v20 = vpop.permute.xlu1 %671  ;;  %v667_v47 = vpop.permute.xlu0 %666  ;;  %1013 = vmatprep.mubr.f32.mxu0 %v2332_v44 }
 0x129   :  { %v809_v3 = vmul.f32 %v672_v20, %v2832_v32  ;;  %v808_v4 = vmul.f32 %v667_v47, %v2833_v7  ;;  %v2849_v47 = vld [vmem:[#allocation41_spill] sm:$0xff] }
 0x12b   :  { %1014 = vmatmul.mubr.f32.gmra.mrb[26].mxu0 %v560_v11  ;;  %1608 = vmatprep.mubr.f32.mxu1 %v808_v4  ;;  %v2851_v4 = vld [vmem:[#allocation43_spill] sm:$0xff] }
 0x12c   :  { %v677_v39 = vpop.permute.xlu1 %676  ;;  %v460_v30 = vpop.permute.xlu0 %459  ;;  %1609 = vmatmul.mubr.f32.gmra.mrb[20].mxu1 %v809_v3  ;;  %1018 = vmatprep.mubr.f32.mxu0 %v2361_v29  ;;  %v2838_v29 = vld [vmem:[#allocation29_spill] sm:$0xff]  ;;  %v2850_v3 = vld [vmem:[#allocation42_spill] sm:$0xff] }
 0x12d   :  { %v810_v12 = vmul.f32 %v677_v39, %v2834_v31  ;;  %v561_v2 = vmul.f32 %v460_v30, %v2396_v24 }
 0x12f   :  { %1019 = vmatmul.mubr.f32.gmra.mrb[28].mxu0 %v561_v2  ;;  %1611 = vmatprep.mubr.f32.mxu1 %v810_v12  ;;  %v2852_v12 = vld [vmem:[#allocation44_spill] sm:$0xff] }
 0x130   :  { %v465_v44 = vpop.permute.xlu1 %464  ;;  %v682_v0 = vpop.permute.xlu0 %681  ;;  %1023 = vmatprep.mubr.f32.mxu0 %v2371_v21 }
 0x131   :  { %v562_v25 = vmul.f32 %v465_v44, %v2835_v62  ;;  %v811_v37 = vmul.f32 %v682_v0, %v2836_v19  ;;  %v2853_v44 = vld [vmem:[#allocation45_spill] sm:$0xff] }
 0x133   :  { %1024 = vmatmul.mubr.f32.gmra.mrb[30].mxu0 %v562_v25  ;;  %1612 = vmatmul.mubr.f32.gmra.mrb[22].mxu1 %v811_v37 }
 0x134   :  { %v692_v58 = vpop.permute.xlu1 %691  ;;  %v687_v50 = vpop.permute.xlu0 %686  ;;  %1028 = vmatprep.mubr.f32.mxu0 %v2837_v23 }
 0x135   :  { %v813_v45 = vmul.f32 %v692_v58, %v2838_v29  ;;  %v812_v24 = vmul.f32 %v687_v50, %v2839_v13  ;;  %v2854_v50 = vld [vmem:[#allocation46_spill] sm:$0xff]  ;;  %v2855_v13 = vld [vmem:[#allocation48_spill] sm:$0xff] }
 0x137   :  { %1614 = vmatprep.mubr.f32.mxu1 %v812_v24  ;;  %v2856_v24 = vld [vmem:[#allocation49_spill] sm:$0xff] }
 0x138   :  { %v697_v38 = vpop.permute.xlu1 %696  ;;  %v470_v36 = vpop.permute.xlu0 %469  ;;  %1615 = vmatmul.mubr.f32.gmra.mrb[24].mxu1 %v813_v45 }
 0x139   :  { %v814_v21 = vmul.f32 %v697_v38, %v2840_v48  ;;  %v563_v5 = vmul.f32 %v470_v36, %v2841_v22  ;;  %v2857_v48 = vld [vmem:[#allocation50_spill] sm:$0xff]  ;;  %v605_v22 = vrot.slane %v2570_v1, 1 }
 0x13b   :  { %1029 = vmatmul.mubr.f32.gmra.mrb[32].mxu0 %v563_v5  ;;  %1617 = vmatprep.mubr.f32.mxu1 %v814_v21  ;;  %v2858_v21 = vld [vmem:[#allocation51_spill] sm:$0xff] }
 0x13c   :  { %v475_v42 = vpop.permute.xlu1 %474  ;;  %v702_v28 = vpop.permute.xlu0 %701  ;;  %1033 = vmatprep.mubr.f32.mxu0 %v2842_v51 }
 0x13d   :  { %v564_v63 = vmul.f32 %v475_v42, %v2843_v61  ;;  %v815_v34 = vmul.f32 %v702_v28, %v2844_v52  ;;  %v2859_v28 = vld [vmem:[#allocation47_spill] sm:$0xff]  ;;  %v2861_v61 = vld [vmem:[#allocation53_spill] sm:$0xff]  ;;  %v2862_v52 = vrot.slane %v2527_v18, 1 }
 0x13f   :  { %1034 = vmatmul.mubr.f32.gmra.mrb[34].mxu0 %v564_v63  ;;  %1618 = vmatmul.mubr.f32.gmra.mrb[26].mxu1 %v815_v34  ;;  %v617_v34 = vsel %vm611_vm1, %v2862_v52, %v605_v22 }
 0x140   :  { %v712_v55 = vpop.permute.xlu1 %711  ;;  %v707_v57 = vpop.permute.xlu0 %706  ;;  %1038 = vmatprep.mubr.f32.mxu0 %v2845_v33 }
 0x141   :  { %v817_v60 = vmul.f32 %v712_v55, %v2846_v6  ;;  %v816_v26 = vmul.f32 %v707_v57, %v2847_v15  ;;  %v606_v55 = vrot.slane %v2578_v46, 1  ;;  %v607_v57 = vrot.slane %v2588_v8, 1 }
 0x143   :  { %1620 = vmatprep.mubr.f32.mxu1 %v816_v26  ;;  %v615_v26 = vsel %vm611_vm1, %v606_v55, %v607_v57  ;;  %v616_v18 = vsel %vm611_vm1, %v605_v22, %v606_v55 }
 0x144   :  { %v717_v27 = vpop.permute.xlu1 %716  ;;  %v480_v43 = vpop.permute.xlu0 %479  ;;  %1621 = vmatmul.mubr.f32.gmra.mrb[28].mxu1 %v817_v60  ;;  %v2863_v60 = vld [vmem:[#allocation54_spill] sm:$0xff] }
 0x145   :  { %v818_v20 = vmul.f32 %v717_v27, %v2848_v56  ;;  %v565_v40 = vmul.f32 %v480_v43, %v2849_v47  ;;  %v608_v27 = vrot.slane %v2597_v49, 1  ;;  %v609_v43 = vrot.slane %v2606_v14, 1 }
 0x146   :  { %v2864_v14 = vrot.slane %v2545_v53, 1 }
 0x147   :  { %1039 = vmatmul.mubr.f32.gmra.mrb[36].mxu0 %v565_v40  ;;  %1623 = vmatprep.mubr.f32.mxu1 %v818_v20  ;;  %v613_v47 = vsel %vm611_vm1, %v608_v27, %v609_v43  ;;  %v614_v40 = vsel %vm611_vm1, %v607_v57, %v608_v27 }
 0x148   :  { %v485_v11 = vpop.permute.xlu1 %484  ;;  %v722_v32 = vpop.permute.xlu0 %721  ;;  %1043 = vmatprep.mubr.f32.mxu0 %v2443_v59 }
 0x149   :  { %v566_v7 = vmul.f32 %v485_v11, %v2850_v3  ;;  %v819_v39 = vmul.f32 %v722_v32, %v2851_v4 }
 0x14b   :  { %1044 = vmatmul.mubr.f32.gmra.mrb[38].mxu0 %v566_v7  ;;  %1624 = vmatmul.mubr.f32.gmra.mrb[30].mxu1 %v819_v39  ;;  %v612_v7 = vsel %vm611_vm1, %v609_v43, %v2864_v14 }
 0x14c   :  { %v732_v30 = vpop.permute.xlu1 %731  ;;  %v727_v31 = vpop.permute.xlu0 %726  ;;  %1048 = vmatprep.mubr.f32.mxu0 %v2471_v35 }
 0x14d   :  { %v821_v2 = vmul.f32 %v732_v30, %v2852_v12  ;;  %v820_v0 = vmul.f32 %v727_v31, %v2853_v44  ;;  %v2865_v30 = vld [vmem:[#allocation55_spill] sm:$0xff] }
 0x14f   :  { %1626 = vmatprep.mubr.f32.mxu1 %v820_v0 }
 0x150   :  { %v737_v62 = vpop.permute.xlu1 %736  ;;  %v490_v25 = vpop.permute.xlu0 %489  ;;  %1627 = vmatmul.mubr.f32.gmra.mrb[32].mxu1 %v821_v2 }
 0x151   :  { %v822_v59 = vmul.f32 %v737_v62, %v2479_v17  ;;  %v567_v19 = vmul.f32 %v490_v25, %v2483_v16 }
 0x153   :  { %1049 = vmatmul.mubr.f32.gmra.mrb[40].mxu0 %v567_v19  ;;  %1629 = vmatprep.mubr.f32.mxu1 %v822_v59 }
 0x154   :  { %v495_v37 = vpop.permute.xlu1 %494  ;;  %v742_v58 = vpop.permute.xlu0 %741  ;;  %1053 = vmatprep.mubr.f32.mxu0 %v2485_v54 }
 0x155   :  { %v568_v35 = vmul.f32 %v495_v37, %v2493_v9  ;;  %v823_v23 = vmul.f32 %v742_v58, %v2854_v50  ;;  %v1977_v58 = vmov 0.0  }
 0x156   :  { %1370 = vst [vmem:[#allocation14] sm:$0x3] %v1977_v58 }
 0x157   :  { %1054 = vmatmul.mubr.f32.gmra.mrb[42].mxu0 %v568_v35  ;;  %1630 = vmatmul.mubr.f32.gmra.mrb[34].mxu1 %v823_v23 }
 0x158   :  { %v752_v29 = vpop.permute.xlu1 %751  ;;  %v747_v45 = vpop.permute.xlu0 %746  ;;  %1058 = vmatprep.mubr.f32.mxu0 %v2499_v10  ;;  %v2860_v10 = vld [vmem:[#allocation52_spill] sm:$0xff] }
 0x159   :  { %v825_v17 = vmul.f32 %v752_v29, %v2855_v13  ;;  %v824_v16 = vmul.f32 %v747_v45, %v2856_v24 }
 0x15b   :  { %1632 = vmatprep.mubr.f32.mxu1 %v824_v16 }
 0x15c   :  { %v757_v38 = vpop.permute.xlu1 %756  ;;  %v500_v36 = vpop.permute.xlu0 %499  ;;  %1633 = vmatmul.mubr.f32.gmra.mrb[36].mxu1 %v825_v17 }
 0x15d   :  { %v826_v54 = vmul.f32 %v757_v38, %v2857_v48  ;;  %v569_v9 = vmul.f32 %v500_v36, %v2858_v21 }
 0x15f   :  { %1059 = vmatmul.mubr.f32.gmra.mrb[44].mxu0 %v569_v9  ;;  %1635 = vmatprep.mubr.f32.mxu1 %v826_v54 }
 0x160   :  { %v505_v5 = vpop.permute.xlu1 %504  ;;  %v762_v42 = vpop.permute.xlu0 %761  ;;  %1063 = vmatprep.mubr.f32.mxu0 %v2859_v28 }
 0x161   :  { %v570_v51 = vmul.f32 %v505_v5, %v2860_v10  ;;  %v827_v63 = vmul.f32 %v762_v42, %v2861_v61 }
 0x163   :  { %1064 = vmatmul.mubr.f32.gmra.mrb[46].mxu0 %v570_v51  ;;  %1636 = vmatmul.mubr.f32.gmra.mrb[38].mxu1 %v827_v63 }
 0x164   :  { %v772_v1 = vpop.permute.xlu1 %771  ;;  %v767_v33 = vpop.permute.xlu0 %766 }
 0x165   :  { %v829_v6 = vmul.f32 %v772_v1, %v617_v34  ;;  %v828_v15 = vmul.f32 %v767_v33, %v2863_v60 }
 0x167   :  { %1638 = vmatprep.mubr.f32.mxu1 %v828_v15 }
 0x168   :  { %v782_v46 = vpop.permute.xlu1 %781  ;;  %v777_v8 = vpop.permute.xlu0 %776  ;;  %1639 = vmatmul.mubr.f32.gmra.mrb[40].mxu1 %v829_v6 }
 0x169   :  { %v831_v56 = vmul.f32 %v782_v46, %v615_v26  ;;  %v830_v20 = vmul.f32 %v777_v8, %v616_v18 }
 0x16b   :  { %1641 = vmatprep.mubr.f32.mxu1 %v830_v20 }
 0x16c   :  { %v792_v11 = vpop.permute.xlu1 %791  ;;  %v787_v32 = vpop.permute.xlu0 %786  ;;  %1642 = vmatmul.mubr.f32.gmra.mrb[42].mxu1 %v831_v56 }
 0x16d   :  { %v833_v3 = vmul.f32 %v792_v11, %v613_v47  ;;  %v832_v49 = vmul.f32 %v787_v32, %v614_v40 }
 0x16f   :  { %1644 = vmatprep.mubr.f32.mxu1 %v832_v49 }
 0x170   :  { %v802_v4 = vpop.permute.xlu1 %801  ;;  %v797_v39 = vpop.permute.xlu0 %796  ;;  %1645 = vmatmul.mubr.f32.gmra.mrb[44].mxu1 %v833_v3 }
 0x171   :  { %v835_v31 = vmul.f32 %v802_v4, %v2865_v30  ;;  %v834_v12 = vmul.f32 %v797_v39, %v612_v7 }
 0x173   :  { %1647 = vmatprep.mubr.f32.mxu1 %v834_v12 }
 0x174   :  { %1648 = vmatmul.mubr.f32.gmra.mrb[46].mxu1 %v835_v31 }
 0x1ca   :  { %v950_v2 = vpop.f32.mrb[0].mxu0 }
 0x1cb   :  { %v952_v44 = vpop.f32.mrb[1].mxu0 }
 0x1ce   :  { %v955_v0 = vpop.f32.mrb[2].mxu0 }
 0x1cf   :  { %v957_v62 = vpop.f32.mrb[3].mxu0 }
 0x1d2   :  { %v960_v25 = vpop.f32.mrb[4].mxu0  ;;  %v2704_v59 = vpop.f32.mrb[0].mxu1 }
 0x1d3   :  { %v962_v53 = vpop.f32.mrb[5].mxu0  ;;  %v1072_v19 = vpop.f32.mrb[1].mxu1 }
 0x1d6   :  { %v965_v41 = vpop.f32.mrb[6].mxu0  ;;  %v2706_v37 = vpop.f32.mrb[2].mxu1 }
 0x1d7   :  { %v967_v35 = vpop.f32.mrb[7].mxu0  ;;  %v1077_v50 = vpop.f32.mrb[3].mxu1 }
 0x1da   :  { %v970_v23 = vpop.f32.mrb[8].mxu0  ;;  %v2708_v29 = vpop.f32.mrb[4].mxu1 }
 0x1db   :  { %v972_v45 = vpop.f32.mrb[9].mxu0  ;;  %v1082_v13 = vpop.f32.mrb[5].mxu1 }
 0x1de   :  { %v975_v17 = vpop.f32.mrb[10].mxu0  ;;  %v2710_v24 = vpop.f32.mrb[6].mxu1 }
 0x1df   :  { %v977_v16 = vpop.f32.mrb[11].mxu0  ;;  %v1087_v38 = vpop.f32.mrb[7].mxu1 }
 0x1e2   :  { %v2712_v36 = vpop.f32.mrb[12].mxu0  ;;  %v2714_v48 = vpop.f32.mrb[8].mxu1 }
 0x1e3   :  { %v982_v54 = vpop.f32.mrb[13].mxu0  ;;  %v1092_v21 = vpop.f32.mrb[9].mxu1 }
 0x1e6   :  { %v985_v9 = vpop.f32.mrb[14].mxu0  ;;  %v2716_v22 = vpop.f32.mrb[10].mxu1 }
 0x1e7   :  { %v987_v5 = vpop.f32.mrb[15].mxu0  ;;  %v1097_v42 = vpop.f32.mrb[11].mxu1 }
 0x1ea   :  { %v2718_v28 = vpop.f32.mrb[16].mxu0  ;;  %v2720_v10 = vpop.f32.mrb[12].mxu1 }
 0x1eb   :  { %v992_v51 = vpop.f32.mrb[17].mxu0  ;;  %v1102_v61 = vpop.f32.mrb[13].mxu1 }
 0x1ee   :  { %v995_v63 = vpop.f32.mrb[18].mxu0  ;;  %v2722_v52 = vpop.f32.mrb[14].mxu1 }
 0x1ef   :  { %v997_v34 = vpop.f32.mrb[19].mxu0  ;;  %v1107_v55 = vpop.f32.mrb[15].mxu1 }
 0x1f2   :  { %v2724_v57 = vpop.f32.mrb[20].mxu0 }
 0x1f3   :  { %v1002_v1 = vpop.f32.mrb[21].mxu0  ;;  %v1604_v33 = vpop.f32.mrb[16].mxu1 }
 0x1f4   :  { %v1181_v6 = vadd.f32 %v1604_v33, %v955_v0  ;;  %v1175_v60 = vpop.f32.mrb[17].mxu1 }
 0x1f5   :  { %v1176_v15 = vadd.f32 %v1175_v60, %v950_v2 }
 0x1f6   :  { %1335 = vst [vmem:[#allocation13 + $0x8] sm:$0xff] %v1181_v6  ;;  %v1410_v26 = vmul.f32 %v1181_v6, %v1181_v6  ;;  %v2726_v18 = vpop.f32.mrb[22].mxu0 }
 0x1f7   :  { %1334 = vst [vmem:[#allocation13] sm:$0xff] %v1176_v15  ;;  %v1372_v27 = vadd.f32 %v1181_v6, %v1176_v15  ;;  %v1409_v43 = vmul.f32 %v1176_v15, %v1176_v15  ;;  %v1007_v46 = vpop.f32.mrb[23].mxu0 }
 0x1f9   :  { %v1441_v8 = vadd.f32 %v1410_v26, %v1409_v43 }
 0x1fa   :  { %v2728_v56 = vpop.f32.mrb[24].mxu0  ;;  %v1607_v20 = vpop.f32.mrb[18].mxu1 }
 0x1fb   :  { %v1191_v47 = vadd.f32 %v1607_v20, %v965_v41  ;;  %v1012_v40 = vpop.f32.mrb[25].mxu0  ;;  %v1185_v11 = vpop.f32.mrb[19].mxu1 }
 0x1fc   :  { %v1186_v32 = vadd.f32 %v1185_v11, %v960_v25 }
 0x1fd   :  { %1337 = vst [vmem:[#allocation13 + $0x18] sm:$0xff] %v1191_v47  ;;  %v1412_v39 = vmul.f32 %v1191_v47, %v1191_v47 }
 0x1fe   :  { %1336 = vst [vmem:[#allocation13 + $0x10] sm:$0xff] %v1186_v32  ;;  %v1373_v3 = vadd.f32 %v1372_v27, %v1186_v32  ;;  %v1411_v49 = vmul.f32 %v1186_v32, %v1186_v32  ;;  %v1015_v14 = vpop.f32.mrb[26].mxu0 }
 0x1ff   :  { %v1017_v7 = vpop.f32.mrb[27].mxu0  ;;  %v1610_v4 = vpop.f32.mrb[20].mxu1 }
 0x200   :  { %v1442_v30 = vadd.f32 %v1441_v8, %v1411_v49  ;;  %v1201_v31 = vadd.f32 %v1610_v4, %v975_v17  ;;  %v1195_v12 = vpop.f32.mrb[21].mxu1  ;;  %v1374_v2 = vadd.f32 %v1373_v3, %v1191_v47 }
 0x201   :  { %v1196_v44 = vadd.f32 %v1195_v12, %v970_v23 }
 0x202   :  { %1339 = vst [vmem:[#allocation13 + $0x28] sm:$0xff] %v1201_v31  ;;  %v1443_v0 = vadd.f32 %v1442_v30, %v1412_v39  ;;  %v2730_v62 = vpop.f32.mrb[28].mxu0  ;;  %v1414_v41 = vmul.f32 %v1201_v31, %v1201_v31 }
 0x203   :  { %1338 = vst [vmem:[#allocation13 + $0x20] sm:$0xff] %v1196_v44  ;;  %v1375_v53 = vadd.f32 %v1374_v2, %v1196_v44  ;;  %v1413_v25 = vmul.f32 %v1196_v44, %v1196_v44  ;;  %v1022_v19 = vpop.f32.mrb[29].mxu0 }
 0x205   :  { %v1444_v58 = vadd.f32 %v1443_v0, %v1413_v25  ;;  %v1376_v35 = vadd.f32 %v1375_v53, %v1201_v31 }
 0x206   :  { %v1025_v50 = vpop.f32.mrb[30].mxu0  ;;  %v1613_v45 = vpop.f32.mrb[22].mxu1 }
 0x207   :  { %v1211_v13 = vadd.f32 %v1613_v45, %v985_v9  ;;  %v1027_v16 = vpop.f32.mrb[31].mxu0  ;;  %v1205_v38 = vpop.f32.mrb[23].mxu1  ;;  %v1445_v17 = vadd.f32 %v1444_v58, %v1414_v41 }
 0x208   :  { %v1206_v54 = vadd.f32 %v1205_v38, %v2712_v36 }
 0x209   :  { %1341 = vst [vmem:[#allocation13 + $0x38] sm:$0xff] %v1211_v13  ;;  %v1416_v42 = vmul.f32 %v1211_v13, %v1211_v13 }
 0x20a   :  { %1340 = vst [vmem:[#allocation13 + $0x30] sm:$0xff] %v1206_v54  ;;  %v1377_v23 = vadd.f32 %v1376_v35, %v1206_v54  ;;  %v1415_v21 = vmul.f32 %v1206_v54, %v1206_v54 }
 0x20b   :  { %v1616_v5 = vpop.f32.mrb[24].mxu1 }
 0x20c   :  { %v1446_v51 = vadd.f32 %v1445_v17, %v1415_v21  ;;  %v1221_v61 = vadd.f32 %v1616_v5, %v995_v63  ;;  %v1215_v34 = vpop.f32.mrb[25].mxu1  ;;  %v1378_v55 = vadd.f32 %v1377_v23, %v1211_v13 }
 0x20d   :  { %v1216_v1 = vadd.f32 %v1215_v34, %v2718_v28 }
 0x20e   :  { %1343 = vst [vmem:[#allocation13 + $0x48] sm:$0xff] %v1221_v61  ;;  %v1447_v33 = vadd.f32 %v1446_v51, %v1416_v42  ;;  %v1030_v9 = vpop.f32.mrb[32].mxu0  ;;  %v1418_v36 = vmul.f32 %v1221_v61, %v1221_v61 }
 0x20f   :  { %1342 = vst [vmem:[#allocation13 + $0x40] sm:$0xff] %v1216_v1  ;;  %v1379_v6 = vadd.f32 %v1378_v55, %v1216_v1  ;;  %v1417_v60 = vmul.f32 %v1216_v1, %v1216_v1  ;;  %v1032_v15 = vpop.f32.mrb[33].mxu0 }
 0x211   :  { %v1448_v26 = vadd.f32 %v1447_v33, %v1417_v60  ;;  %v1380_v27 = vadd.f32 %v1379_v6, %v1221_v61 }
 0x212   :  { %v1035_v43 = vpop.f32.mrb[34].mxu0  ;;  %v1619_v46 = vpop.f32.mrb[26].mxu1 }
 0x213   :  { %v1231_v8 = vadd.f32 %v1619_v46, %v2726_v18  ;;  %v1037_v20 = vpop.f32.mrb[35].mxu0  ;;  %v1225_v63 = vpop.f32.mrb[27].mxu1  ;;  %v1449_v47 = vadd.f32 %v1448_v26, %v1418_v36 }
 0x214   :  { %v1226_v40 = vadd.f32 %v1225_v63, %v2724_v57 }
 0x215   :  { %1345 = vst [vmem:[#allocation13 + $0x58] sm:$0xff] %v1231_v8  ;;  %v1420_v3 = vmul.f32 %v1231_v8, %v1231_v8 }
 0x216   :  { %1344 = vst [vmem:[#allocation13 + $0x50] sm:$0xff] %v1226_v40  ;;  %v1381_v28 = vadd.f32 %v1380_v27, %v1226_v40  ;;  %v1419_v11 = vmul.f32 %v1226_v40, %v1226_v40 }
 0x217   :  { %v1622_v32 = vpop.f32.mrb[28].mxu1 }
 0x218   :  { %v1450_v49 = vadd.f32 %v1449_v47, %v1419_v11  ;;  %v1241_v7 = vadd.f32 %v1622_v32, %v1015_v14  ;;  %v1235_v4 = vpop.f32.mrb[29].mxu1  ;;  %v1382_v39 = vadd.f32 %v1381_v28, %v1231_v8 }
 0x219   :  { %v1236_v30 = vadd.f32 %v1235_v4, %v2728_v56 }
 0x21a   :  { %1347 = vst [vmem:[#allocation13 + $0x68] sm:$0xff] %v1241_v7  ;;  %v1451_v31 = vadd.f32 %v1450_v49, %v1420_v3  ;;  %v1040_v18 = vpop.f32.mrb[36].mxu0  ;;  %v1422_v57 = vmul.f32 %v1241_v7, %v1241_v7 }
 0x21b   :  { %1346 = vst [vmem:[#allocation13 + $0x60] sm:$0xff] %v1236_v30  ;;  %v1383_v12 = vadd.f32 %v1382_v39, %v1236_v30  ;;  %v1421_v2 = vmul.f32 %v1236_v30, %v1236_v30  ;;  %v1042_v44 = vpop.f32.mrb[37].mxu0 }
 0x21d   :  { %v1452_v0 = vadd.f32 %v1451_v31, %v1421_v2  ;;  %v1384_v53 = vadd.f32 %v1383_v12, %v1241_v7 }
 0x21e   :  { %v1045_v25 = vpop.f32.mrb[38].mxu0  ;;  %v1625_v19 = vpop.f32.mrb[30].mxu1 }
 0x21f   :  { %v1251_v41 = vadd.f32 %v1625_v19, %v1025_v50  ;;  %v1047_v58 = vpop.f32.mrb[39].mxu0  ;;  %v1245_v35 = vpop.f32.mrb[31].mxu1  ;;  %v1453_v14 = vadd.f32 %v1452_v0, %v1422_v57 }
 0x220   :  { %v1246_v45 = vadd.f32 %v1245_v35, %v2730_v62 }
 0x221   :  { %1349 = vst [vmem:[#allocation13 + $0x78] sm:$0xff] %v1251_v41  ;;  %v1424_v38 = vmul.f32 %v1251_v41, %v1251_v41 }
 0x222   :  { %1348 = vst [vmem:[#allocation13 + $0x70] sm:$0xff] %v1246_v45  ;;  %v1385_v56 = vadd.f32 %v1384_v53, %v1246_v45  ;;  %v1423_v13 = vmul.f32 %v1246_v45, %v1246_v45 }
 0x223   :  { %v1628_v16 = vpop.f32.mrb[32].mxu1 }
 0x224   :  { %v1454_v17 = vadd.f32 %v1453_v14, %v1423_v13  ;;  %v1261_v54 = vadd.f32 %v1628_v16, %v1035_v43  ;;  %v1255_v23 = vpop.f32.mrb[33].mxu1  ;;  %v1386_v21 = vadd.f32 %v1385_v56, %v1251_v41 }
 0x225   :  { %v1256_v5 = vadd.f32 %v1255_v23, %v1030_v9 }
 0x226   :  { %1351 = vst [vmem:[#allocation13 + $0x88] sm:$0xff] %v1261_v54  ;;  %v1455_v42 = vadd.f32 %v1454_v17, %v1424_v38  ;;  %v1050_v51 = vpop.f32.mrb[40].mxu0  ;;  %v1426_v55 = vmul.f32 %v1261_v54, %v1261_v54 }
 0x227   :  { %1350 = vst [vmem:[#allocation13 + $0x80] sm:$0xff] %v1256_v5  ;;  %v1387_v50 = vadd.f32 %v1386_v21, %v1256_v5  ;;  %v1425_v61 = vmul.f32 %v1256_v5, %v1256_v5  ;;  %v1052_v34 = vpop.f32.mrb[41].mxu0 }
 0x229   :  { %v1456_v62 = vadd.f32 %v1455_v42, %v1425_v61  ;;  %v1388_v1 = vadd.f32 %v1387_v50, %v1261_v54 }
 0x22a   :  { %v1055_v33 = vpop.f32.mrb[42].mxu0  ;;  %v1631_v6 = vpop.f32.mrb[34].mxu1 }
 0x22b   :  { %v1271_v60 = vadd.f32 %v1631_v6, %v1045_v25  ;;  %v1057_v15 = vpop.f32.mrb[43].mxu0  ;;  %v1265_v36 = vpop.f32.mrb[35].mxu1  ;;  %v1457_v26 = vadd.f32 %v1456_v62, %v1426_v55 }
 0x22c   :  { %v1266_v27 = vadd.f32 %v1265_v36, %v1040_v18 }
 0x22d   :  { %1353 = vst [vmem:[#allocation13 + $0x98] sm:$0xff] %v1271_v60  ;;  %v1428_v8 = vmul.f32 %v1271_v60, %v1271_v60 }
 0x22e   :  { %1352 = vst [vmem:[#allocation13 + $0x90] sm:$0xff] %v1266_v27  ;;  %v1389_v9 = vadd.f32 %v1388_v1, %v1266_v27  ;;  %v1427_v43 = vmul.f32 %v1266_v27, %v1266_v27 }
 0x22f   :  { %v1634_v46 = vpop.f32.mrb[36].mxu1 }
 0x230   :  { %v1458_v20 = vadd.f32 %v1457_v26, %v1427_v43  ;;  %v1281_v63 = vadd.f32 %v1634_v46, %v1055_v33  ;;  %v1275_v47 = vpop.f32.mrb[37].mxu1  ;;  %v1390_v40 = vadd.f32 %v1389_v9, %v1271_v60 }
 0x231   :  { %v1276_v28 = vadd.f32 %v1275_v47, %v1050_v51 }
 0x232   :  { %1355 = vst [vmem:[#allocation13 + $0xa8] sm:$0xff] %v1281_v63  ;;  %v1459_v11 = vadd.f32 %v1458_v20, %v1428_v8  ;;  %v1060_v32 = vpop.f32.mrb[44].mxu0  ;;  %v1430_v4 = vmul.f32 %v1281_v63, %v1281_v63 }
 0x233   :  { %1354 = vst [vmem:[#allocation13 + $0xa0] sm:$0xff] %v1276_v28  ;;  %v1391_v3 = vadd.f32 %v1390_v40, %v1276_v28  ;;  %v1429_v49 = vmul.f32 %v1276_v28, %v1276_v28  ;;  %v1062_v7 = vpop.f32.mrb[45].mxu0 }
 0x235   :  { %v1460_v39 = vadd.f32 %v1459_v11, %v1429_v49  ;;  %v1392_v30 = vadd.f32 %v1391_v3, %v1281_v63 }
 0x236   :  { %v1065_v31 = vpop.f32.mrb[46].mxu0  ;;  %v1637_v18 = vpop.f32.mrb[38].mxu1 }
 0x237   :  { %v1291_v12 = vadd.f32 %v1637_v18, %v1065_v31  ;;  %v1067_v2 = vpop.f32.mrb[47].mxu0  ;;  %v1285_v44 = vpop.f32.mrb[39].mxu1  ;;  %v1461_v57 = vadd.f32 %v1460_v39, %v1430_v4 }
 0x238   :  { %v1286_v0 = vadd.f32 %v1285_v44, %v1060_v32 }
 0x239   :  { %1357 = vst [vmem:[#allocation13 + $0xb8] sm:$0xff] %v1291_v12  ;;  %v1432_v41 = vmul.f32 %v1291_v12, %v1291_v12 }
 0x23a   :  { %1356 = vst [vmem:[#allocation13 + $0xb0] sm:$0xff] %v1286_v0  ;;  %v1393_v53 = vadd.f32 %v1392_v30, %v1286_v0  ;;  %v1431_v25 = vmul.f32 %v1286_v0, %v1286_v0 }
 0x23b   :  { %v1640_v19 = vpop.f32.mrb[40].mxu1 }
 0x23c   :  { %v1462_v58 = vadd.f32 %v1461_v57, %v1431_v25  ;;  %v1301_v35 = vadd.f32 %v1640_v19, %v2706_v37  ;;  %v1295_v14 = vpop.f32.mrb[41].mxu1  ;;  %v1394_v45 = vadd.f32 %v1393_v53, %v1291_v12 }
 0x23d   :  { %v1296_v56 = vadd.f32 %v1295_v14, %v2704_v59 }
 0x23e   :  { %1359 = vst [vmem:[#allocation13 + $0xc8] sm:$0xff] %v1301_v35  ;;  %v1463_v13 = vadd.f32 %v1462_v58, %v1432_v41  ;;  %v1434_v21 = vmul.f32 %v1301_v35, %v1301_v35 }
 0x23f   :  { %1358 = vst [vmem:[#allocation13 + $0xc0] sm:$0xff] %v1296_v56  ;;  %v1395_v16 = vadd.f32 %v1394_v45, %v1296_v56  ;;  %v1433_v38 = vmul.f32 %v1296_v56, %v1296_v56  ;;  %v1643_v17 = vpop.f32.mrb[42].mxu1 }
 0x240   :  { %v1311_v54 = vadd.f32 %v1643_v17, %v2710_v24  ;;  %v1305_v23 = vpop.f32.mrb[43].mxu1 }
 0x241   :  { %v1464_v5 = vadd.f32 %v1463_v13, %v1433_v38  ;;  %v1306_v42 = vadd.f32 %v1305_v23, %v2708_v29  ;;  %v1396_v51 = vadd.f32 %v1395_v16, %v1301_v35 }
 0x242   :  { %1361 = vst [vmem:[#allocation13 + $0xd8] sm:$0xff] %v1311_v54  ;;  %v1436_v62 = vmul.f32 %v1311_v54, %v1311_v54 }
 0x243   :  { %1360 = vst [vmem:[#allocation13 + $0xd0] sm:$0xff] %v1306_v42  ;;  %v1397_v37 = vadd.f32 %v1396_v51, %v1306_v42  ;;  %v1435_v50 = vmul.f32 %v1306_v42, %v1306_v42  ;;  %v1465_v61 = vadd.f32 %v1464_v5, %v1434_v21  ;;  %v1646_v59 = vpop.f32.mrb[44].mxu1 }
 0x244   :  { %v1321_v34 = vadd.f32 %v1646_v59, %v2716_v22  ;;  %v1315_v55 = vpop.f32.mrb[45].mxu1 }
 0x245   :  { %v1466_v1 = vadd.f32 %v1465_v61, %v1435_v50  ;;  %v1316_v33 = vadd.f32 %v1315_v55, %v2714_v48  ;;  %v1398_v24 = vadd.f32 %v1397_v37, %v1311_v54 }
 0x246   :  { %1363 = vst [vmem:[#allocation13 + $0xe8] sm:$0xff] %v1321_v34  ;;  %v1438_v27 = vmul.f32 %v1321_v34, %v1321_v34 }
 0x247   :  { %1362 = vst [vmem:[#allocation13 + $0xe0] sm:$0xff] %v1316_v33  ;;  %v1399_v29 = vadd.f32 %v1398_v24, %v1316_v33  ;;  %v1437_v6 = vmul.f32 %v1316_v33, %v1316_v33  ;;  %v1467_v60 = vadd.f32 %v1466_v1, %v1436_v62  ;;  %v1649_v15 = vpop.f32.mrb[46].mxu1 }
 0x248   :  { %v1331_v36 = vadd.f32 %v1649_v15, %v2722_v52  ;;  %v1325_v26 = vpop.f32.mrb[47].mxu1 }
 0x249   :  { %v1468_v9 = vadd.f32 %v1467_v60, %v1437_v6  ;;  %v1326_v22 = vadd.f32 %v1325_v26, %v2720_v10  ;;  %v1400_v43 = vadd.f32 %v1399_v29, %v1321_v34 }
 0x24a   :  { %1365 = vst [vmem:[#allocation13 + $0xf8] sm:$0xff] %v1331_v36 }
 0x24b   :  { %1364 = vst [vmem:[#allocation13 + $0xf0] sm:$0xff] %v1326_v22  ;;  %v1401_v48 = vadd.f32 %v1400_v43, %v1326_v22  ;;  %v1439_v46 = vmul.f32 %v1326_v22, %v1326_v22  ;;  %v1469_v8 = vadd.f32 %v1468_v9, %v1438_v27 }
 0x24c   :  { %1921 = shalt.err (!%p1918_p12)
}
 0x24d   :  { %s1922_s11 = scalar_lea.hbm %s2779_s6, 4096 }
 0x24e   :  { %p1923_p13 = scmp.ne.s32.totalorder %s2779_s6, %s1922_s11  ;;  %p1926_p0 = scmp.lt.u32.totalorder %s1922_s11, %s2779_s6 }
 0x250   :  { %p1928_p1 = pnand %p1926_p0, %p1923_p13 }
 0x252   :  { %1931 = shalt.err (!%p1928_p1)
}
 0x253   :  { %1497 = dma.vmem_to_hbm [thread:$0]  %s1492_s0, 4096, %s2779_s6, [#allocation4], %s1969_s25, %s1969_s25, %s1970_s26   ;;  %v1440_v10 = vmul.f32 %v1331_v36, %v1331_v36  ;;  %v1402_v52 = vadd.f32 %v1401_v48, %v1331_v36  ;;  %v1470_v20 = vadd.f32 %v1469_v8, %v1439_v46  ;;  %vm1478_vm2 = vcmask 1040384   ;;  %v1371_v30 = vld [vmem:[#allocation14] sm:$0x3] }
 0x254   :  { %s1979_s18 = smov [#allocation14]  }
 0x255   :  { %v1403_v63 = vrot.slane %v1402_v52, 4  ;;  %v1471_v47 = vadd.f32 %v1470_v20, %v1440_v10  ;;  %s1504_s6 = sshll.u32 %s1979_s18, 4  ;;  %s1505_s6 = int_to_ptr.vmem [resolvable:$true] %s1504_s6 }
 0x256   :  { %s1932_s25 = scalar_lea.vmem %s1505_s6, 32  ;;  %p1937_p3 = scmp.lt.s32.totalorder %s1505_s6, %s1505_s6 }
 0x257   :  { %v1404_v40 = vadd.f32 %v1403_v63, %v1402_v52  ;;  %v1472_v28 = vrot.slane %v1471_v47, 4  ;;  %p1933_p2 = scmp.ne.s32.totalorder %s1505_s6, %s1932_s25  ;;  %p1938_p4 = scmp.lt.s32.totalorder %s1932_s25, %s1932_s25 }
 0x259   :  { %v1405_v11 = vrot.slane %v1404_v40, 2  ;;  %v1473_v32 = vadd.f32 %v1472_v28, %v1471_v47  ;;  %p1939_p5 = por %p1938_p4, %p1937_p3 }
 0x25b   :  { %v1406_v3 = vadd.f32 %v1405_v11, %v1404_v40  ;;  %v1474_v49 = vrot.slane %v1473_v32, 2  ;;  %p1940_p6 = pnand %p1939_p5, %p1933_p2 }
 0x25d   :  { %v1407_v7 = vrot.slane %v1406_v3, 1  ;;  %v1475_v4 = vadd.f32 %v1474_v49, %v1473_v32 }
 0x25f   :  { %v1476_v39 = vrot.slane %v1475_v4, 1  ;;  %v1408_v31 = vadd.f32 %v1407_v7, %v1406_v3 }
 0x261   :  { %v1477_v18 = vadd.f32 %v1476_v39, %v1475_v4 }
 0x263   :  { %v1479_v12 = vsel %vm1478_vm2, %v1408_v31, %v1477_v18 }
 0x264   :  { %v1480_v2 = vadd.f32 %v1479_v12, %v1371_v30 }
 0x266   :  { %1481 = vst [vmem:[#allocation14] sm:$0x3] %v1480_v2 }
 0x267   :  { %1943 = shalt.err (!%p1940_p6)
}
 0x268   :  { %s1944_s19 = scalar_lea.hbm %s2780_s7, 32 }
 0x269   :  { %p1945_p7 = scmp.ne.s32.totalorder %s2780_s7, %s1944_s19  ;;  %p1948_p8 = scmp.lt.u32.totalorder %s1944_s19, %s2780_s7 }
 0x26b   :  { %p1950_p9 = pnand %p1948_p8, %p1945_p7 }
 0x26d   :  { %1953 = shalt.err (!%p1950_p9)
}
 0x26e   :  { %1507 = dma.vmem_to_hbm [thread:$0]  %s1505_s6, 32, %s2780_s7, [#allocation15]  }
 0x26f   :  { %1962 = dma.done.wait [#allocation4], 4096  }
 0x270   :  { %1963 = vsyncadd [#allocation4], 4294963200 }
 0x271   :  { %1964 = dma.done.wait [#allocation15], 32  }
 0x272   :  { %1965 = vsyncadd [#allocation15], 4294967264 }
 0x273   :  { %1514 = vsyncpa [#allocation3], 1 }
 0x274   :  { %1515 = vsyncpa [#allocation6], 1 }
 0x275   :  { %1516 = vsyncpa [#allocation9], 1 }
 0x276   :  { %1517 = vsyncpa [#allocation12], 1 }
 0x277   :  { %1518 = vsyncpa [#allocation4], 1 }
 0x278   :  { %1519 = vsyncpa [#allocation15], 1 }

// kernel: basic_block_pallas.3
= control target key start
LH: loop header
LB: loop body
LE: loop exit
PB: predicated region body
PF: predicated region fallthrough
CT: control target
= control target key end

     0   :  { %11 = vsyncpa [#allocation3], 0  ;;  %s2280_s0 = inlined_call_operand.hbm [shape: f32[256,128], index: 0, kind: input, shape index: {}]   ;;  %s2281_s1 = inlined_call_operand.hbm [shape: f32[384,256], index: 1, kind: input, shape index: {}]   ;;  %s2282_s2 = inlined_call_operand.hbm [shape: f32[256,1], index: 2, kind: input, shape index: {}]   ;;  %s2283_s3 = inlined_call_operand.hbm [shape: f32[256,1], index: 3, kind: input, shape index: {}]   ;;  %s2284_s4 = inlined_call_operand.hbm [shape: f32[256,256], index: 4, kind: output, shape index: {0}]   ;;  %s2285_s5 = inlined_call_operand.hbm [shape: f32[1,2,256], index: 5, kind: output, shape index: {1}]  }
   0x1   :  { %12 = vsyncpa [#allocation6], 0 }
   0x2   :  { %13 = vsyncpa [#allocation9], 0 }
   0x3   :  { %14 = vsyncpa [#allocation4], 0 }
   0x4   :  { %15 = vsyncpa [#allocation12], 0  ;;  %s1959_s18 = smov [#allocation5]   ;;  %s1817_s22 = scalar_lea.hbm %s2281_s1, 12288 }
   0x5   :  { %s37_s19 = sshll.u32 %s1959_s18, 4  ;;  %p1818_p0 = scmp.ne.s32.totalorder %s2281_s1, %s1817_s22  ;;  %s38_s19 = int_to_ptr.vmem [resolvable:$true] %s37_s19 }
   0x6   :  { %p1821_p1 = scmp.lt.u32.totalorder %s1817_s22, %s2281_s1 }
   0x8   :  { %p1823_p2 = pnand %p1821_p1, %p1818_p0 }
   0xa   :  { %1826 = shalt.err (!%p1823_p2)
}
   0xb   :  { %s1827_s27 = scalar_lea.vmem %s38_s19, 12288  ;;  %p1832_p4 = scmp.lt.s32.totalorder %s38_s19, %s38_s19 }
   0xc   :  { %p1828_p3 = scmp.ne.s32.totalorder %s38_s19, %s1827_s27  ;;  %p1833_p5 = scmp.lt.s32.totalorder %s1827_s27, %s1827_s27 }
   0xe   :  { %p1834_p6 = por %p1833_p5, %p1832_p4 }
  0x10   :  { %p1835_p7 = pnand %p1834_p6, %p1828_p3 }
  0x12   :  { %1838 = shalt.err (!%p1835_p7)
}
  0x13   :  { %s1960_s28 = smov 256   ;;  %s1961_s29 = smov 16  }
  0x14   :  { %43 = dma.hbm_to_vmem [thread:$0]  %s2281_s1, 12288, %s38_s19, [#allocation6], %s1960_s28, %s1960_s28, %s1961_s29  }
  0x15   :  { %s1962_s7 = smov [#allocation2]   ;;  %s1839_s11 = scalar_lea.hbm %s2280_s0, 4096 }
  0x16   :  { %s25_s8 = sshll.u32 %s1962_s7, 4  ;;  %p1840_p8 = scmp.ne.s32.totalorder %s2280_s0, %s1839_s11  ;;  %s26_s8 = int_to_ptr.vmem [resolvable:$true] %s25_s8 }
  0x17   :  { %p1843_p9 = scmp.lt.u32.totalorder %s1839_s11, %s2280_s0 }
  0x19   :  { %p1845_p10 = pnand %p1843_p9, %p1840_p8 }
  0x1b   :  { %1848 = shalt.err (!%p1845_p10)
}
  0x1c   :  { %s1849_s16 = scalar_lea.vmem %s26_s8, 4096  ;;  %p1854_p12 = scmp.lt.s32.totalorder %s26_s8, %s26_s8 }
  0x1d   :  { %p1850_p11 = scmp.ne.s32.totalorder %s26_s8, %s1849_s16  ;;  %p1855_p13 = scmp.lt.s32.totalorder %s1849_s16, %s1849_s16 }
  0x1f   :  { %p1856_p0 = por %p1855_p13, %p1854_p12 }
  0x21   :  { %p1857_p1 = pnand %p1856_p0, %p1850_p11 }
  0x23   :  { %1860 = shalt.err (!%p1857_p1)
}
  0x24   :  { %s1963_s1 = smov 128   ;;  %s1964_s17 = smov 8  }
  0x25   :  { %31 = dma.hbm_to_vmem [thread:$0]  %s2280_s0, 4096, %s26_s8, [#allocation3], %s1963_s1, %s1963_s1, %s1964_s17  }
  0x26   :  { %s1965_s20 = smov [#allocation7]   ;;  %s1966_s22 = smov [#allocation8]  }
  0x27   :  { %s49_s21 = sshll.u32 %s1965_s20, 4  ;;  %s61_s23 = sshll.u32 %s1966_s22, 4  ;;  %s50_s21 = int_to_ptr.vmem [resolvable:$true] %s49_s21  ;;  %s2032_s23 = int_to_ptr.vmem [resolvable:$true] %s61_s23 }
  0x28   :  { %s1861_s26 = scalar_lea.hbm %s2282_s2, 4096 }
  0x29   :  { %p1862_p2 = scmp.ne.s32.totalorder %s2282_s2, %s1861_s26  ;;  %p1865_p3 = scmp.lt.u32.totalorder %s1861_s26, %s2282_s2 }
  0x2b   :  { %p1867_p4 = pnand %p1865_p3, %p1862_p2 }
  0x2d   :  { %1870 = shalt.err (!%p1867_p4)
}
  0x2e   :  { %s1871_s0 = scalar_lea.vmem %s50_s21, 4096  ;;  %p1876_p6 = scmp.lt.s32.totalorder %s50_s21, %s50_s21 }
  0x2f   :  { %p1872_p5 = scmp.ne.s32.totalorder %s50_s21, %s1871_s0  ;;  %p1877_p7 = scmp.lt.s32.totalorder %s1871_s0, %s1871_s0 }
  0x31   :  { %p1878_p8 = por %p1877_p7, %p1876_p6 }
  0x33   :  { %p1879_p9 = pnand %p1878_p8, %p1872_p5 }
  0x35   :  { %1882 = shalt.err (!%p1879_p9)
}
  0x36   :  { %55 = dma.hbm_to_vmem [thread:$0]  %s2282_s2, 4096, %s50_s21, [#allocation6], %s1963_s1, %s1963_s1, %s1964_s17  }
  0x37   :  { %s1883_s12 = scalar_lea.hbm %s2283_s3, 4096 }
  0x38   :  { %p1884_p10 = scmp.ne.s32.totalorder %s2283_s3, %s1883_s12  ;;  %p1887_p11 = scmp.lt.u32.totalorder %s1883_s12, %s2283_s3 }
  0x3a   :  { %p1889_p12 = pnand %p1887_p11, %p1884_p10 }
  0x3c   :  { %1892 = shalt.err (!%p1889_p12)
}
  0x3d   :  { %s1893_s18 = scalar_lea.vmem %s2032_s23, 4096  ;;  %p1898_p0 = scmp.lt.s32.totalorder %s2032_s23, %s2032_s23 }
  0x3e   :  { %p1894_p13 = scmp.ne.s32.totalorder %s2032_s23, %s1893_s18  ;;  %p1899_p1 = scmp.lt.s32.totalorder %s1893_s18, %s1893_s18 }
  0x40   :  { %p1900_p2 = por %p1899_p1, %p1898_p0 }
  0x42   :  { %p1901_p3 = pnand %p1900_p2, %p1894_p13 }
  0x44   :  { %1904 = shalt.err (!%p1901_p3)
}
  0x45   :  { %67 = dma.hbm_to_vmem [thread:$0]  %s2283_s3, 4096, %s2032_s23, [#allocation9], %s1963_s1, %s1963_s1, %s1964_s17  }
  0x46   :  { %1949 = dma.done.wait [#allocation3], 4096  }
  0x47   :  { %1950 = vsyncadd [#allocation3], 4294963200 }
  0x48   :  { %1951 = dma.done.wait [#allocation6], 16384  }
  0x49   :  { %1952 = vsyncadd [#allocation6], 4294950912 }
  0x4a   :  { %1953 = dma.done.wait [#allocation9], 4096  }
  0x4b   :  { %1954 = vsyncadd [#allocation9], 4294963200  ;;  %v1967_v0 = vmov 0   ;;  %v117_v1 = vld [vmem:[#allocation7 + $0x8] sm:$0xff]  ;;  %v116_v2 = vld [vmem:[#allocation7] sm:$0xff]  ;;  %v1968_v7 = vmov 0.0  }
  0x4c   :  { %1816 = vset.pattern.permute.xlu1 %v1967_v0  ;;  %1815 = vset.pattern.permute.xlu0 %v1967_v0  ;;  %v149_v3 = vld [vmem:[#allocation8 + $0x8] sm:$0xff]  ;;  %v148_v4 = vld [vmem:[#allocation8] sm:$0xff]  ;;  %v150_v5 = vld [vmem:[#allocation8 + $0x10] sm:$0xff]  ;;  %1374 = vst [vmem:[#allocation11] sm:$0xf] %v1968_v7  ;;  %s1969_s3 = smov [#allocation10]  }
  0x4d   :  { %254 = vperm.xlu1 %1816, %v117_v1   ;;  %249 = vperm.xlu0 %1815, %v116_v2   ;;  %v118_v6 = vld [vmem:[#allocation7 + $0x10] sm:$0xff]  ;;  %v151_v8 = vld [vmem:[#allocation8 + $0x18] sm:$0xff]  ;;  %v697_v10 = vld [vmem:[#allocation5 + $0x8] sm:$0xff]  ;;  %s1614_s1 = sshll.u32 %s1969_s3, 4  ;;  %s1615_s1 = int_to_ptr.vmem [resolvable:$true] %s1614_s1 }
  0x4e   :  { %1113 = vmatprep.mubr.f32.mxu0 %v1968_v7  ;;  %v119_v9 = vld [vmem:[#allocation7 + $0x18] sm:$0xff]  ;;  %v696_v13 = vld [vmem:[#allocation5] sm:$0xff]  ;;  %v698_v14 = vld [vmem:[#allocation5 + $0x10] sm:$0xff]  ;;  %s1905_s17 = scalar_lea.vmem %s1615_s1, 8192  ;;  %p1910_p5 = scmp.lt.s32.totalorder %s1615_s1, %s1615_s1 }
  0x4f   :  { %v699_v11 = vld [vmem:[#allocation5 + $0x18] sm:$0xff]  ;;  %v152_v15 = vld [vmem:[#allocation8 + $0x20] sm:$0xff]  ;;  %v1644_v16 = vpack.c.bf16 %v698_v14, %v696_v13  ;;  %v701_v17 = vld [vmem:[#allocation5 + $0x28] sm:$0xff]  ;;  %p1906_p4 = scmp.ne.s32.totalorder %s1615_s1, %s1905_s17  ;;  %p1911_p6 = scmp.lt.s32.totalorder %s1905_s17, %s1905_s17 }
  0x50   :  { %v1642_v12 = vpack.c.bf16 %v699_v11, %v697_v10  ;;  %v703_v18 = vld [vmem:[#allocation5 + $0x38] sm:$0xff]  ;;  %v120_v19 = vld [vmem:[#allocation7 + $0x20] sm:$0xff]  ;;  %v702_v22 = vld [vmem:[#allocation5 + $0x30] sm:$0xff] }
  0x51   :  { %511 = vperm.xlu1 %1816, %v149_v3   ;;  %506 = vperm.xlu0 %1815, %v148_v4   ;;  %v1646_v20 = vpack.c.bf16 %v703_v18, %v701_v17  ;;  %v700_v21 = vld [vmem:[#allocation5 + $0x20] sm:$0xff]  ;;  %v705_v24 = vld [vmem:[#allocation5 + $0x48] sm:$0xff]  ;;  %v707_v25 = vld [vmem:[#allocation5 + $0x58] sm:$0xff]  ;;  %p1912_p7 = por %p1911_p6, %p1910_p5 }
  0x52   :  { %1643 = vmatprep.subr.bf16.mxu1 %v1642_v12  ;;  %v1648_v23 = vpack.c.bf16 %v702_v22, %v700_v21  ;;  %v1650_v26 = vpack.c.bf16 %v707_v25, %v705_v24  ;;  %v704_v27 = vld [vmem:[#allocation5 + $0x40] sm:$0xff]  ;;  %v706_v28 = vld [vmem:[#allocation5 + $0x50] sm:$0xff]  ;;  %v709_v29 = vld [vmem:[#allocation5 + $0x68] sm:$0xff] }
  0x53   :  { %1645 = vmatpush1.bf16.msra.mxu1 %v1644_v16  ;;  %v711_v30 = vld [vmem:[#allocation5 + $0x78] sm:$0xff]  ;;  %v153_v31 = vld [vmem:[#allocation8 + $0x28] sm:$0xff]  ;;  %v1652_v33 = vpack.c.bf16 %v706_v28, %v704_v27  ;;  %v708_v35 = vld [vmem:[#allocation5 + $0x60] sm:$0xff]  ;;  %p1913_p8 = pnand %p1912_p7, %p1906_p4 }
  0x54   :  { %1647 = vmatprep.subr.bf16.mxu1 %v1646_v20  ;;  %v121_v32 = vld [vmem:[#allocation7 + $0x28] sm:$0xff]  ;;  %v1654_v34 = vpack.c.bf16 %v711_v30, %v709_v29  ;;  %v710_v36 = vld [vmem:[#allocation5 + $0x70] sm:$0xff]  ;;  %v715_v38 = vld [vmem:[#allocation5 + $0x98] sm:$0xff] }
  0x55   :  { %516 = vperm.xlu1 %1816, %v150_v5   ;;  %259 = vperm.xlu0 %1815, %v118_v6   ;;  %v713_v37 = vld [vmem:[#allocation5 + $0x88] sm:$0xff]  ;;  %v154_v39 = vld [vmem:[#allocation8 + $0x30] sm:$0xff]  ;;  %v1656_v41 = vpack.c.bf16 %v710_v36, %v708_v35  ;;  %v712_v43 = vld [vmem:[#allocation5 + $0x80] sm:$0xff] }
  0x56   :  { %v122_v40 = vld [vmem:[#allocation7 + $0x30] sm:$0xff]  ;;  %v1658_v42 = vpack.c.bf16 %v715_v38, %v713_v37  ;;  %v717_v45 = vld [vmem:[#allocation5 + $0xa8] sm:$0xff]  ;;  %v719_v46 = vld [vmem:[#allocation5 + $0xb8] sm:$0xff] }
  0x57   :  { %1649 = vmatpush1.bf16.msra.mxu1 %v1648_v23  ;;  %v714_v44 = vld [vmem:[#allocation5 + $0x90] sm:$0xff]  ;;  %v155_v47 = vld [vmem:[#allocation8 + $0x38] sm:$0xff]  ;;  %v1662_v50 = vpack.c.bf16 %v719_v46, %v717_v45  ;;  %v716_v51 = vld [vmem:[#allocation5 + $0xa0] sm:$0xff] }
  0x58   :  { %1651 = vmatprep.subr.bf16.mxu1 %v1650_v26  ;;  %v123_v48 = vld [vmem:[#allocation7 + $0x38] sm:$0xff]  ;;  %v1660_v49 = vpack.c.bf16 %v714_v44, %v712_v43  ;;  %v718_v52 = vld [vmem:[#allocation5 + $0xb0] sm:$0xff]  ;;  %v156_v53 = vld [vmem:[#allocation8 + $0x40] sm:$0xff] }
  0x59   :  { %521 = vperm.xlu1 %1816, %v151_v8   ;;  %264 = vperm.xlu0 %1815, %v119_v9   ;;  %v721_v54 = vld [vmem:[#allocation5 + $0xc8] sm:$0xff]  ;;  %v723_v55 = vld [vmem:[#allocation5 + $0xd8] sm:$0xff]  ;;  %v124_v56 = vld [vmem:[#allocation7 + $0x40] sm:$0xff]  ;;  %v1664_v59 = vpack.c.bf16 %v718_v52, %v716_v51 }
  0x5a   :  { %v761_v57 = vld [vmem:[#allocation5 + $0x208] sm:$0xff]  ;;  %v763_v58 = vld [vmem:[#allocation5 + $0x218] sm:$0xff]  ;;  %v760_v61 = vld [vmem:[#allocation5 + $0x200] sm:$0xff]  ;;  %v1666_v63 = vpack.c.bf16 %v723_v55, %v721_v54 }
  0x5b   :  { %1653 = vmatpush1.bf16.msra.mxu1 %v1652_v33  ;;  %v1706_v60 = vpack.c.bf16 %v763_v58, %v761_v57  ;;  %v762_v62 = vld [vmem:[#allocation5 + $0x210] sm:$0xff]  ;;  %v720_v0 = vld [vmem:[#allocation5 + $0xc0] sm:$0xff]  ;;  %v725_v2 = vld [vmem:[#allocation5 + $0xe8] sm:$0xff] }
  0x5c   :  { %1655 = vmatprep.subr.bf16.mxu1 %v1654_v34  ;;  %v722_v1 = vld [vmem:[#allocation5 + $0xd0] sm:$0xff]  ;;  %v1708_v3 = vpack.c.bf16 %v762_v62, %v760_v61  ;;  %v727_v4 = vld [vmem:[#allocation5 + $0xf8] sm:$0xff]  ;;  %v765_v5 = vld [vmem:[#allocation5 + $0x228] sm:$0xff] }
  0x5d   :  { %526 = vperm.xlu1 %1816, %v152_v15   ;;  %269 = vperm.xlu0 %1815, %v120_v19   ;;  %v767_v6 = vld [vmem:[#allocation5 + $0x238] sm:$0xff]  ;;  %v157_v8 = vld [vmem:[#allocation8 + $0x48] sm:$0xff]  ;;  %v764_v11 = vld [vmem:[#allocation5 + $0x220] sm:$0xff]  ;;  %v1668_v12 = vpack.c.bf16 %v722_v1, %v720_v0  ;;  %v1670_v15 = vpack.c.bf16 %v727_v4, %v725_v2 }
  0x5e   :  { %v125_v9 = vld [vmem:[#allocation7 + $0x48] sm:$0xff]  ;;  %1707 = vmatprep.subr.bf16.mxu0 %v1706_v60  ;;  %v1710_v10 = vpack.c.bf16 %v767_v6, %v765_v5  ;;  %v766_v13 = vld [vmem:[#allocation5 + $0x230] sm:$0xff]  ;;  %v724_v16 = vld [vmem:[#allocation5 + $0xe0] sm:$0xff] }
  0x5f   :  { %1657 = vmatpush1.bf16.msra.mxu1 %v1656_v41  ;;  %1709 = vmatpush1.bf16.msra.mxu0 %v1708_v3  ;;  %v158_v14 = vld [vmem:[#allocation8 + $0x50] sm:$0xff]  ;;  %v1712_v18 = vpack.c.bf16 %v766_v13, %v764_v11  ;;  %v769_v19 = vld [vmem:[#allocation5 + $0x248] sm:$0xff]  ;;  %v731_v21 = vld [vmem:[#allocation5 + $0x118] sm:$0xff] }
  0x60   :  { %1659 = vmatprep.subr.bf16.mxu1 %v1658_v42  ;;  %v726_v17 = vld [vmem:[#allocation5 + $0xf0] sm:$0xff]  ;;  %1711 = vmatprep.subr.bf16.mxu0 %v1710_v10  ;;  %v729_v20 = vld [vmem:[#allocation5 + $0x108] sm:$0xff]  ;;  %v771_v22 = vld [vmem:[#allocation5 + $0x258] sm:$0xff] }
  0x61   :  { %531 = vperm.xlu1 %1816, %v153_v31   ;;  %274 = vperm.xlu0 %1815, %v121_v32   ;;  %v126_v23 = vld [vmem:[#allocation7 + $0x50] sm:$0xff]  ;;  %v1714_v24 = vpack.c.bf16 %v771_v22, %v769_v19  ;;  %v768_v25 = vld [vmem:[#allocation5 + $0x240] sm:$0xff]  ;;  %v1672_v27 = vpack.c.bf16 %v726_v17, %v724_v16  ;;  %v1674_v31 = vpack.c.bf16 %v731_v21, %v729_v20  ;;  %v733_v32 = vld [vmem:[#allocation5 + $0x128] sm:$0xff] }
  0x62   :  { %v770_v26 = vld [vmem:[#allocation5 + $0x250] sm:$0xff]  ;;  %v728_v28 = vld [vmem:[#allocation5 + $0x100] sm:$0xff]  ;;  %v773_v33 = vld [vmem:[#allocation5 + $0x268] sm:$0xff] }
  0x63   :  { %1661 = vmatpush1.bf16.msra.mxu1 %v1660_v49  ;;  %v730_v29 = vld [vmem:[#allocation5 + $0x110] sm:$0xff]  ;;  %1713 = vmatpush1.bf16.msra.mxu0 %v1712_v18  ;;  %v1716_v30 = vpack.c.bf16 %v770_v26, %v768_v25  ;;  %v775_v34 = vld [vmem:[#allocation5 + $0x278] sm:$0xff]  ;;  %v772_v37 = vld [vmem:[#allocation5 + $0x260] sm:$0xff] }
  0x64   :  { %1663 = vmatprep.subr.bf16.mxu1 %v1662_v50  ;;  %1715 = vmatprep.subr.bf16.mxu0 %v1714_v24  ;;  %v735_v35 = vld [vmem:[#allocation5 + $0x138] sm:$0xff]  ;;  %v1718_v36 = vpack.c.bf16 %v775_v34, %v773_v33  ;;  %v774_v38 = vld [vmem:[#allocation5 + $0x270] sm:$0xff]  ;;  %v1676_v41 = vpack.c.bf16 %v730_v29, %v728_v28  ;;  %v777_v43 = vld [vmem:[#allocation5 + $0x288] sm:$0xff] }
  0x65   :  { %536 = vperm.xlu1 %1816, %v154_v39   ;;  %279 = vperm.xlu0 %1815, %v122_v40   ;;  %v159_v39 = vld [vmem:[#allocation8 + $0x58] sm:$0xff]  ;;  %v1720_v42 = vpack.c.bf16 %v774_v38, %v772_v37  ;;  %v1678_v45 = vpack.c.bf16 %v735_v35, %v733_v32  ;;  %v732_v46 = vld [vmem:[#allocation5 + $0x120] sm:$0xff]  ;;  %v737_v50 = vld [vmem:[#allocation5 + $0x148] sm:$0xff] }
  0x66   :  { %v127_v40 = vld [vmem:[#allocation7 + $0x58] sm:$0xff]  ;;  %v776_v49 = vld [vmem:[#allocation5 + $0x280] sm:$0xff]  ;;  %v778_v52 = vld [vmem:[#allocation5 + $0x290] sm:$0xff] }
  0x67   :  { %1665 = vmatpush1.bf16.msra.mxu1 %v1664_v59  ;;  %1717 = vmatpush1.bf16.msra.mxu0 %v1716_v30  ;;  %v779_v44 = vld [vmem:[#allocation5 + $0x298] sm:$0xff]  ;;  %v128_v54 = vld [vmem:[#allocation7 + $0x60] sm:$0xff]  ;;  %v781_v55 = vld [vmem:[#allocation5 + $0x2a8] sm:$0xff]  ;;  %v1724_v58 = vpack.c.bf16 %v778_v52, %v776_v49 }
  0x68   :  { %1667 = vmatprep.subr.bf16.mxu1 %v1666_v63  ;;  %1719 = vmatprep.subr.bf16.mxu0 %v1718_v36  ;;  %v739_v51 = vld [vmem:[#allocation5 + $0x158] sm:$0xff]  ;;  %v736_v57 = vld [vmem:[#allocation5 + $0x140] sm:$0xff]  ;;  %v738_v61 = vld [vmem:[#allocation5 + $0x150] sm:$0xff] }
  0x69   :  { %541 = vperm.xlu1 %1816, %v155_v47   ;;  %284 = vperm.xlu0 %1815, %v123_v48   ;;  %v734_v47 = vld [vmem:[#allocation5 + $0x130] sm:$0xff]  ;;  %v1722_v48 = vpack.c.bf16 %v779_v44, %v777_v43  ;;  %v783_v59 = vld [vmem:[#allocation5 + $0x2b8] sm:$0xff]  ;;  %v1682_v60 = vpack.c.bf16 %v739_v51, %v737_v50  ;;  %v780_v63 = vld [vmem:[#allocation5 + $0x2a0] sm:$0xff] }
  0x6a   :  { %v1726_v62 = vpack.c.bf16 %v783_v59, %v781_v55  ;;  %v782_v0 = vld [vmem:[#allocation5 + $0x2b0] sm:$0xff]  ;;  %v161_v1 = vld [vmem:[#allocation8 + $0x68] sm:$0xff]  ;;  %v743_v3 = vld [vmem:[#allocation5 + $0x178] sm:$0xff] }
  0x6b   :  { %1669 = vmatpush1.bf16.msra.mxu1 %v1668_v12  ;;  %1721 = vmatpush1.bf16.msra.mxu0 %v1720_v42  ;;  %v741_v2 = vld [vmem:[#allocation5 + $0x168] sm:$0xff]  ;;  %v787_v6 = vld [vmem:[#allocation5 + $0x2d8] sm:$0xff]  ;;  %v742_v10 = vld [vmem:[#allocation5 + $0x170] sm:$0xff]  ;;  %v1728_v12 = vpack.c.bf16 %v782_v0, %v780_v63 }
  0x6c   :  { %1671 = vmatprep.subr.bf16.mxu1 %v1670_v15  ;;  %1723 = vmatprep.subr.bf16.mxu0 %v1722_v48  ;;  %v129_v4 = vld [vmem:[#allocation7 + $0x68] sm:$0xff]  ;;  %v1686_v13 = vpack.c.bf16 %v743_v3, %v741_v2  ;;  %v784_v16 = vld [vmem:[#allocation5 + $0x2c0] sm:$0xff]  ;;  %v786_v17 = vld [vmem:[#allocation5 + $0x2d0] sm:$0xff] }
  0x6d   :  { %546 = vperm.xlu1 %1816, %v156_v53   ;;  %289 = vperm.xlu0 %1815, %v124_v56   ;;  %v160_v53 = vld [vmem:[#allocation8 + $0x60] sm:$0xff]  ;;  %v1680_v56 = vpack.c.bf16 %v734_v47, %v732_v46  ;;  %v785_v5 = vld [vmem:[#allocation5 + $0x2c8] sm:$0xff]  ;;  %v791_v20 = vld [vmem:[#allocation5 + $0x2f8] sm:$0xff]  ;;  %v1732_v25 = vpack.c.bf16 %v786_v17, %v784_v16 }
  0x6e   :  { %v745_v11 = vld [vmem:[#allocation5 + $0x188] sm:$0xff]  ;;  %v1730_v15 = vpack.c.bf16 %v787_v6, %v785_v5  ;;  %v2071_v18 = vld [vmem:[#allocation2] sm:$0xff]  ;;  %v162_v21 = vld [vmem:[#allocation8 + $0x70] sm:$0xff] }
  0x6f   :  { %1673 = vmatpush1.bf16.msra.mxu1 %v1672_v27  ;;  %1725 = vmatpush1.bf16.msra.mxu0 %v1724_v58  ;;  %v789_v19 = vld [vmem:[#allocation5 + $0x2e8] sm:$0xff]  ;;  %v130_v22 = vld [vmem:[#allocation7 + $0x70] sm:$0xff]  ;;  %v744_v24 = vld [vmem:[#allocation5 + $0x180] sm:$0xff] }
  0x70   :  { %1675 = vmatprep.subr.bf16.mxu1 %v1674_v31  ;;  %1727 = vmatprep.subr.bf16.mxu0 %v1726_v62  ;;  %v746_v27 = vld [vmem:[#allocation5 + $0x190] sm:$0xff]  ;;  %v1734_v28 = vpack.c.bf16 %v791_v20, %v789_v19  ;;  %v788_v29 = vld [vmem:[#allocation5 + $0x2e0] sm:$0xff]  ;;  %v749_v31 = vld [vmem:[#allocation5 + $0x1a8] sm:$0xff]  ;;  %v212_v19 = vlaneseq }
  0x71   :  { %551 = vperm.xlu1 %1816, %v157_v8   ;;  %294 = vperm.xlu0 %1815, %v125_v9   ;;  %v1684_v8 = vpack.c.bf16 %v738_v61, %v736_v57  ;;  %v740_v9 = vld [vmem:[#allocation5 + $0x160] sm:$0xff]  ;;  %v790_v30 = vld [vmem:[#allocation5 + $0x2f0] sm:$0xff]  ;;  %v751_v32 = vld [vmem:[#allocation5 + $0x1b8] sm:$0xff]  ;;  %v1692_v35 = vpack.c.bf16 %v746_v27, %v744_v24  ;;  %v180_v27 = vrot.slane %v2071_v18, 7 }
  0x72   :  { %856 = vmatprep.mubr.f32.mxu1 %v2071_v18  ;;  %v163_v33 = vld [vmem:[#allocation8 + $0x78] sm:$0xff]  ;;  %v1736_v36 = vpack.c.bf16 %v790_v30, %v788_v29  ;;  %v1694_v37 = vpack.c.bf16 %v751_v32, %v749_v31  ;;  %v748_v38 = vld [vmem:[#allocation5 + $0x1a0] sm:$0xff]  ;;  %v754_v47 = vld [vmem:[#allocation5 + $0x1d0] sm:$0xff]  ;;  %v439_v32 = vrot.slane %v2071_v18, 1 }
  0x73   :  { %1677 = vmatpush1.bf16.msra.mxu1 %v1676_v41  ;;  %1729 = vmatpush1.bf16.msra.mxu0 %v1728_v12  ;;  %v131_v34 = vld [vmem:[#allocation7 + $0x78] sm:$0xff]  ;;  %v164_v42 = vld [vmem:[#allocation8 + $0x80] sm:$0xff]  ;;  %v757_v48 = vld [vmem:[#allocation5 + $0x1e8] sm:$0xff] }
  0x74   :  { %1679 = vmatprep.subr.bf16.mxu1 %v1678_v45  ;;  %1731 = vmatprep.subr.bf16.mxu0 %v1730_v15  ;;  %v755_v41 = vld [vmem:[#allocation5 + $0x1d8] sm:$0xff]  ;;  %v132_v43 = vld [vmem:[#allocation7 + $0x80] sm:$0xff]  ;;  %v165_v50 = vld [vmem:[#allocation8 + $0x88] sm:$0xff] }
  0x75   :  { %556 = vperm.xlu1 %1816, %v158_v14   ;;  %299 = vperm.xlu0 %1815, %v126_v23   ;;  %v747_v14 = vld [vmem:[#allocation5 + $0x198] sm:$0xff]  ;;  %v1688_v23 = vpack.c.bf16 %v742_v10, %v740_v9  ;;  %v752_v46 = vld [vmem:[#allocation5 + $0x1c0] sm:$0xff]  ;;  %v133_v51 = vld [vmem:[#allocation7 + $0x88] sm:$0xff] }
  0x76   :  { %v1690_v26 = vpack.c.bf16 %v747_v14, %v745_v11  ;;  %v759_v49 = vld [vmem:[#allocation5 + $0x1f8] sm:$0xff]  ;;  %v1700_v52 = vpack.c.bf16 %v754_v47, %v752_v46  ;;  %v758_v55 = vld [vmem:[#allocation5 + $0x1f0] sm:$0xff]  ;;  %v168_v61 = vld [vmem:[#allocation8 + $0xa0] sm:$0xff] }
  0x77   :  { %1681 = vmatpush1.bf16.msra.mxu1 %v1680_v56  ;;  %1733 = vmatpush1.bf16.msra.mxu0 %v1732_v25  ;;  %v166_v56 = vld [vmem:[#allocation8 + $0x90] sm:$0xff]  ;;  %v167_v59 = vld [vmem:[#allocation8 + $0x98] sm:$0xff]  ;;  %v136_v62 = vld [vmem:[#allocation7 + $0xa0] sm:$0xff] }
  0x78   :  { %1683 = vmatprep.subr.bf16.mxu1 %v1682_v60  ;;  %1735 = vmatprep.subr.bf16.mxu0 %v1734_v28  ;;  %v134_v57 = vld [vmem:[#allocation7 + $0x90] sm:$0xff]  ;;  %v135_v60 = vld [vmem:[#allocation7 + $0x98] sm:$0xff]  ;;  %v169_v63 = vld [vmem:[#allocation8 + $0xa8] sm:$0xff] }
  0x79   :  { %561 = vperm.xlu1 %1816, %v159_v39   ;;  %304 = vperm.xlu0 %1815, %v127_v40   ;;  %v750_v39 = vld [vmem:[#allocation5 + $0x1b0] sm:$0xff]  ;;  %v753_v40 = vld [vmem:[#allocation5 + $0x1c8] sm:$0xff]  ;;  %v171_v3 = vld [vmem:[#allocation8 + $0xb8] sm:$0xff] }
  0x7a   :  { %v1696_v44 = vpack.c.bf16 %v750_v39, %v748_v38  ;;  %v1698_v45 = vpack.c.bf16 %v755_v41, %v753_v40  ;;  %v137_v0 = vld [vmem:[#allocation7 + $0xa8] sm:$0xff]  ;;  %v138_v2 = vld [vmem:[#allocation7 + $0xb0] sm:$0xff]  ;;  %v172_v5 = vld [vmem:[#allocation8 + $0xc0] sm:$0xff] }
  0x7b   :  { %1685 = vmatpush1.bf16.msra.mxu1 %v1684_v8  ;;  %1737 = vmatpush1.bf16.msra.mxu0 %v1736_v36  ;;  %v140_v6 = vld [vmem:[#allocation7 + $0xc0] sm:$0xff]  ;;  %v173_v8 = vld [vmem:[#allocation8 + $0xc8] sm:$0xff]  ;;  %v174_v10 = vld [vmem:[#allocation8 + $0xd0] sm:$0xff] }
  0x7c   :  { %1687 = vmatprep.subr.bf16.mxu1 %v1686_v13  ;;  %v141_v9 = vld [vmem:[#allocation7 + $0xc8] sm:$0xff]  ;;  %v142_v11 = vld [vmem:[#allocation7 + $0xd0] sm:$0xff]  ;;  %v175_v12 = vld [vmem:[#allocation8 + $0xd8] sm:$0xff] }
  0x7d   :  { %566 = vperm.xlu1 %1816, %v160_v53   ;;  %309 = vperm.xlu0 %1815, %v128_v54   ;;  %v1702_v53 = vpack.c.bf16 %v759_v49, %v757_v48  ;;  %v756_v54 = vld [vmem:[#allocation5 + $0x1e0] sm:$0xff]  ;;  %v143_v13 = vld [vmem:[#allocation7 + $0xd8] sm:$0xff]  ;;  %v177_v16 = vld [vmem:[#allocation8 + $0xe8] sm:$0xff] }
  0x7e   :  { %v1704_v58 = vpack.c.bf16 %v758_v55, %v756_v54  ;;  %v176_v14 = vld [vmem:[#allocation8 + $0xe0] sm:$0xff]  ;;  %v145_v17 = vld [vmem:[#allocation7 + $0xe8] sm:$0xff]  ;;  %v178_v20 = vld [vmem:[#allocation8 + $0xf0] sm:$0xff] }
  0x7f   :  { %1689 = vmatpush1.bf16.msra.mxu1 %v1688_v23  ;;  %v144_v15 = vld [vmem:[#allocation7 + $0xe0] sm:$0xff]  ;;  %v2076_v23 = vld [vmem:[#allocation2 + $0xf8] sm:$0xff]  ;;  %v85_v24 = vld [vmem:[#allocation2 + $0x8] sm:$0xff] }
  0x80   :  { %1691 = vmatprep.subr.bf16.mxu1 %v1690_v26  ;;  %v179_v25 = vld [vmem:[#allocation8 + $0xf8] sm:$0xff]  ;;  %v211_v28 = vrot.slane %v2076_v23, 7  ;;  %v181_v29 = vrot.slane %v85_v24, 7  ;;  %v440_v31 = vrot.slane %v85_v24, 1 }
  0x81   :  { %571 = vperm.xlu1 %1816, %v161_v1   ;;  %314 = vperm.xlu0 %1815, %v129_v4   ;;  %v170_v1 = vld [vmem:[#allocation8 + $0xb0] sm:$0xff]  ;;  %v139_v4 = vld [vmem:[#allocation7 + $0xb8] sm:$0xff] }
  0x82   :  { %v147_v26 = vld [vmem:[#allocation7 + $0xf8] sm:$0xff] }
  0x83   :  { %1693 = vmatpush1.bf16.msra.mxu1 %v1692_v35 }
  0x84   :  { %1695 = vmatprep.subr.bf16.mxu1 %v1694_v37 }
  0x85   :  { %576 = vperm.xlu1 %1816, %v162_v21   ;;  %319 = vperm.xlu0 %1815, %v130_v22   ;;  %v146_v21 = vld [vmem:[#allocation7 + $0xf0] sm:$0xff]  ;;  %v2074_v22 = vshrl.u32 %v212_v19, 7 }
  0x87   :  { %1697 = vmatpush1.bf16.msra.mxu1 %v1696_v44  ;;  %vm214_vm0 = vcmp.lt.s32.totalorder %v2074_v22, 1  ;;  %vm471_vm1 = vcmp.lt.s32.totalorder %v2074_v22, 7 }
  0x88   :  { %1699 = vmatprep.subr.bf16.mxu1 %v1698_v45  ;;  %v246_v30 = vsel %vm214_vm0, %v211_v28, %v180_v27  ;;  %v245_v35 = vsel %vm214_vm0, %v180_v27, %v181_v29  ;;  %v502_v39 = vsel %vm471_vm1, %v439_v32, %v440_v31 }
  0x89   :  { %581 = vperm.xlu1 %1816, %v163_v33   ;;  %324 = vperm.xlu0 %1815, %v131_v34   ;;  %v86_v33 = vld [vmem:[#allocation2 + $0x10] sm:$0xff] }
  0x8a   :  { %v441_v38 = vrot.slane %v86_v33, 1  ;;  %v182_v40 = vrot.slane %v86_v33, 7 }
  0x8b   :  { %1701 = vmatpush1.bf16.msra.mxu1 %v1700_v52 }
  0x8c   :  { %1703 = vmatprep.subr.bf16.mxu1 %v1702_v53  ;;  %v501_v46 = vsel %vm471_vm1, %v440_v31, %v441_v38  ;;  %v244_v48 = vsel %vm214_vm0, %v181_v29, %v182_v40 }
  0x8d   :  { %586 = vperm.xlu1 %1816, %v164_v42   ;;  %329 = vperm.xlu0 %1815, %v132_v43   ;;  %v87_v42 = vld [vmem:[#allocation2 + $0x18] sm:$0xff] }
  0x8e   :  { %v442_v47 = vrot.slane %v87_v42, 1  ;;  %v183_v49 = vrot.slane %v87_v42, 7 }
  0x8f   :  { %1705 = vmatpush1.bf16.msra.mxu1 %v1704_v58 }
  0x90   :  { %v500_v55 = vsel %vm471_vm1, %v441_v38, %v442_v47 }
  0x91   :  { %591 = vperm.xlu1 %1816, %v165_v50   ;;  %334 = vperm.xlu0 %1815, %v133_v51   ;;  %v88_v50 = vld [vmem:[#allocation2 + $0x20] sm:$0xff] }
  0x92   :  { %v184_v58 = vrot.slane %v88_v50, 7 }
  0x95   :  { %596 = vperm.xlu1 %1816, %v166_v56   ;;  %339 = vperm.xlu0 %1815, %v134_v57   ;;  %v443_v56 = vrot.slane %v88_v50, 1  ;;  %v243_v57 = vsel %vm214_vm0, %v182_v40, %v183_v49 }
  0x99   :  { %601 = vperm.xlu1 %1816, %v167_v59   ;;  %344 = vperm.xlu0 %1815, %v135_v60   ;;  %v89_v59 = vld [vmem:[#allocation2 + $0x28] sm:$0xff] }
  0x9d   :  { %606 = vperm.xlu1 %1816, %v168_v61   ;;  %349 = vperm.xlu0 %1815, %v136_v62  }
  0xa1   :  { %611 = vperm.xlu1 %1816, %v169_v63   ;;  %354 = vperm.xlu0 %1815, %v137_v0   ;;  %v499_v0 = vsel %vm471_vm1, %v442_v47, %v443_v56 }
  0xa5   :  { %616 = vperm.xlu1 %1816, %v170_v1   ;;  %359 = vperm.xlu0 %1815, %v138_v2   ;;  %v444_v1 = vrot.slane %v89_v59, 1  ;;  %v242_v2 = vsel %vm214_vm0, %v183_v49, %v184_v58 }
  0xa9   :  { %621 = vperm.xlu1 %1816, %v171_v3   ;;  %364 = vperm.xlu0 %1815, %v139_v4   ;;  %v185_v3 = vrot.slane %v89_v59, 7  ;;  %v90_v4 = vld [vmem:[#allocation2 + $0x30] sm:$0xff] }
  0xad   :  { %626 = vperm.xlu1 %1816, %v172_v5   ;;  %369 = vperm.xlu0 %1815, %v140_v6  }
  0xb1   :  { %631 = vperm.xlu1 %1816, %v173_v8   ;;  %374 = vperm.xlu0 %1815, %v141_v9  }
  0xb5   :  { %636 = vperm.xlu1 %1816, %v174_v10   ;;  %379 = vperm.xlu0 %1815, %v142_v11   ;;  %v498_v10 = vsel %vm471_vm1, %v443_v56, %v444_v1  ;;  %v445_v11 = vrot.slane %v90_v4, 1 }
  0xb9   :  { %641 = vperm.xlu1 %1816, %v175_v12   ;;  %384 = vperm.xlu0 %1815, %v143_v13   ;;  %v241_v12 = vsel %vm214_vm0, %v184_v58, %v185_v3  ;;  %v186_v13 = vrot.slane %v90_v4, 7 }
  0xbd   :  { %646 = vperm.xlu1 %1816, %v176_v14   ;;  %389 = vperm.xlu0 %1815, %v144_v15   ;;  %v91_v14 = vld [vmem:[#allocation2 + $0x38] sm:$0xff] }
  0xc1   :  { %651 = vperm.xlu1 %1816, %v177_v16   ;;  %394 = vperm.xlu0 %1815, %v145_v17  }
  0xc5   :  { %656 = vperm.xlu1 %1816, %v178_v20   ;;  %399 = vperm.xlu0 %1815, %v146_v21   ;;  %v497_v20 = vsel %vm471_vm1, %v444_v1, %v445_v11  ;;  %v446_v21 = vrot.slane %v91_v14, 1 }
  0xc9   :  { %661 = vperm.xlu1 %1816, %v179_v25   ;;  %404 = vperm.xlu0 %1815, %v147_v26   ;;  %v187_v25 = vrot.slane %v91_v14, 7  ;;  %v92_v26 = vld [vmem:[#allocation2 + $0x40] sm:$0xff] }
  0xcc   :  { %v255_v34 = vpop.permute.xlu1 %254  ;;  %v250_v36 = vpop.permute.xlu0 %249 }
  0xcd   :  { %v407_v37 = vmul.f32 %v250_v36, %v246_v30  ;;  %v408_v41 = vmul.f32 %v255_v34, %v245_v35  ;;  %v447_v34 = vrot.slane %v92_v26, 1  ;;  %v239_v35 = vsel %vm214_vm0, %v186_v13, %v187_v25 }
  0xce   :  { %v188_v36 = vrot.slane %v92_v26, 7 }
  0xcf   :  { %857 = vmatmul.mubr.f32.vlgmr.msra.gmra.mrb[0].mxu1 %v407_v37  ;;  %v93_v37 = vld [vmem:[#allocation2 + $0x48] sm:$0xff] }
  0xd0   :  { %v512_v43 = vpop.permute.xlu1 %511  ;;  %v507_v44 = vpop.permute.xlu0 %506  ;;  %862 = vmatprep.mubr.f32.mxu1 %v85_v24  ;;  %v240_v24 = vsel %vm214_vm0, %v185_v3, %v186_v13 }
  0xd1   :  { %v664_v45 = vmul.f32 %v507_v44, %v502_v39  ;;  %v665_v53 = vmul.f32 %v512_v43, %v501_v46  ;;  %v448_v43 = vrot.slane %v93_v37, 1  ;;  %v238_v44 = vsel %vm214_vm0, %v187_v25, %v188_v36  ;;  %v94_v46 = vld [vmem:[#allocation2 + $0x50] sm:$0xff] }
  0xd3   :  { %863 = vmatmul.mubr.f32.gmra.mrb[2].mxu1 %v408_v41  ;;  %1114 = vmatmul.mubr.f32.vlgmr.msra.gmra.mrb[0].mxu0 %v664_v45  ;;  %v189_v45 = vrot.slane %v93_v37, 7 }
  0xd4   :  { %v517_v51 = vpop.permute.xlu1 %516  ;;  %v260_v52 = vpop.permute.xlu0 %259  ;;  %868 = vmatprep.mubr.f32.mxu1 %v86_v33  ;;  %1119 = vmatprep.mubr.f32.mxu0 %v1968_v7  ;;  %v496_v33 = vsel %vm471_vm1, %v445_v11, %v446_v21 }
  0xd5   :  { %v409_v54 = vmul.f32 %v260_v52, %v244_v48  ;;  %v666_v62 = vmul.f32 %v517_v51, %v500_v55  ;;  %v494_v51 = vsel %vm471_vm1, %v447_v34, %v448_v43  ;;  %v449_v52 = vrot.slane %v94_v46, 1  ;;  %v95_v55 = vld [vmem:[#allocation2 + $0x58] sm:$0xff] }
  0xd7   :  { %869 = vmatmul.mubr.f32.gmra.mrb[4].mxu1 %v409_v54  ;;  %1120 = vmatmul.mubr.f32.gmra.mrb[2].mxu0 %v665_v53  ;;  %v237_v53 = vsel %vm214_vm0, %v188_v36, %v189_v45  ;;  %v190_v54 = vrot.slane %v94_v46, 7 }
  0xd8   :  { %v522_v60 = vpop.permute.xlu1 %521  ;;  %v265_v61 = vpop.permute.xlu0 %264  ;;  %874 = vmatprep.mubr.f32.mxu1 %v87_v42  ;;  %1125 = vmatprep.mubr.f32.mxu0 %v1968_v7  ;;  %v495_v42 = vsel %vm471_vm1, %v446_v21, %v447_v34 }
  0xd9   :  { %v410_v63 = vmul.f32 %v265_v61, %v243_v57  ;;  %v667_v8 = vmul.f32 %v522_v60, %v499_v0  ;;  %v493_v60 = vsel %vm471_vm1, %v448_v43, %v449_v52  ;;  %v450_v61 = vrot.slane %v95_v55, 1  ;;  %v96_v0 = vld [vmem:[#allocation2 + $0x60] sm:$0xff] }
  0xdb   :  { %875 = vmatmul.mubr.f32.gmra.mrb[6].mxu1 %v410_v63  ;;  %1126 = vmatmul.mubr.f32.gmra.mrb[4].mxu0 %v666_v62  ;;  %v236_v62 = vsel %vm214_vm0, %v189_v45, %v190_v54  ;;  %v191_v63 = vrot.slane %v95_v55, 7 }
  0xdc   :  { %v527_v5 = vpop.permute.xlu1 %526  ;;  %v270_v6 = vpop.permute.xlu0 %269  ;;  %880 = vmatprep.mubr.f32.mxu1 %v88_v50  ;;  %1131 = vmatprep.mubr.f32.mxu0 %v1968_v7 }
  0xdd   :  { %v411_v9 = vmul.f32 %v270_v6, %v242_v2  ;;  %v668_v17 = vmul.f32 %v527_v5, %v498_v10  ;;  %v492_v5 = vsel %vm471_vm1, %v449_v52, %v450_v61  ;;  %v451_v6 = vrot.slane %v96_v0, 1  ;;  %v97_v10 = vld [vmem:[#allocation2 + $0x68] sm:$0xff] }
  0xdf   :  { %881 = vmatmul.mubr.f32.gmra.mrb[8].mxu1 %v411_v9  ;;  %1132 = vmatmul.mubr.f32.gmra.mrb[6].mxu0 %v667_v8  ;;  %v235_v8 = vsel %vm214_vm0, %v190_v54, %v191_v63  ;;  %v192_v9 = vrot.slane %v96_v0, 7 }
  0xe0   :  { %v532_v15 = vpop.permute.xlu1 %531  ;;  %v275_v16 = vpop.permute.xlu0 %274  ;;  %886 = vmatprep.mubr.f32.mxu1 %v89_v59  ;;  %1137 = vmatprep.mubr.f32.mxu0 %v1968_v7 }
  0xe1   :  { %v412_v19 = vmul.f32 %v275_v16, %v241_v12  ;;  %v669_v30 = vmul.f32 %v532_v15, %v497_v20  ;;  %v491_v15 = vsel %vm471_vm1, %v450_v61, %v451_v6  ;;  %v452_v16 = vrot.slane %v97_v10, 1  ;;  %v98_v20 = vld [vmem:[#allocation2 + $0x70] sm:$0xff] }
  0xe3   :  { %887 = vmatmul.mubr.f32.gmra.mrb[10].mxu1 %v412_v19  ;;  %1138 = vmatmul.mubr.f32.gmra.mrb[8].mxu0 %v668_v17  ;;  %v234_v17 = vsel %vm214_vm0, %v191_v63, %v192_v9  ;;  %v193_v19 = vrot.slane %v97_v10, 7 }
  0xe4   :  { %v537_v27 = vpop.permute.xlu1 %536  ;;  %v280_v29 = vpop.permute.xlu0 %279  ;;  %892 = vmatprep.mubr.f32.mxu1 %v90_v4  ;;  %1143 = vmatprep.mubr.f32.mxu0 %v1968_v7 }
  0xe5   :  { %v413_v31 = vmul.f32 %v280_v29, %v240_v24  ;;  %v670_v40 = vmul.f32 %v537_v27, %v496_v33  ;;  %v490_v27 = vsel %vm471_vm1, %v451_v6, %v452_v16  ;;  %v453_v29 = vrot.slane %v98_v20, 1  ;;  %v99_v33 = vld [vmem:[#allocation2 + $0x78] sm:$0xff] }
  0xe7   :  { %893 = vmatmul.mubr.f32.gmra.mrb[12].mxu1 %v413_v31  ;;  %1144 = vmatmul.mubr.f32.gmra.mrb[10].mxu0 %v669_v30  ;;  %v233_v30 = vsel %vm214_vm0, %v192_v9, %v193_v19  ;;  %v194_v31 = vrot.slane %v98_v20, 7 }
  0xe8   :  { %v542_v38 = vpop.permute.xlu1 %541  ;;  %v285_v39 = vpop.permute.xlu0 %284  ;;  %898 = vmatprep.mubr.f32.mxu1 %v91_v14  ;;  %1149 = vmatprep.mubr.f32.mxu0 %v1968_v7 }
  0xe9   :  { %v414_v41 = vmul.f32 %v285_v39, %v239_v35  ;;  %v671_v49 = vmul.f32 %v542_v38, %v495_v42  ;;  %v489_v38 = vsel %vm471_vm1, %v452_v16, %v453_v29  ;;  %v454_v39 = vrot.slane %v99_v33, 1  ;;  %v100_v42 = vld [vmem:[#allocation2 + $0x80] sm:$0xff] }
  0xeb   :  { %899 = vmatmul.mubr.f32.gmra.mrb[14].mxu1 %v414_v41  ;;  %1150 = vmatmul.mubr.f32.gmra.mrb[12].mxu0 %v670_v40  ;;  %v232_v40 = vsel %vm214_vm0, %v193_v19, %v194_v31  ;;  %v195_v41 = vrot.slane %v99_v33, 7 }
  0xec   :  { %v547_v47 = vpop.permute.xlu1 %546  ;;  %v290_v48 = vpop.permute.xlu0 %289  ;;  %904 = vmatprep.mubr.f32.mxu1 %v92_v26  ;;  %1155 = vmatprep.mubr.f32.mxu0 %v1968_v7 }
  0xed   :  { %v415_v50 = vmul.f32 %v290_v48, %v238_v44  ;;  %v672_v58 = vmul.f32 %v547_v47, %v494_v51  ;;  %v488_v47 = vsel %vm471_vm1, %v453_v29, %v454_v39  ;;  %v455_v48 = vrot.slane %v100_v42, 1  ;;  %v101_v51 = vld [vmem:[#allocation2 + $0x88] sm:$0xff] }
  0xef   :  { %905 = vmatmul.mubr.f32.gmra.mrb[16].mxu1 %v415_v50  ;;  %1156 = vmatmul.mubr.f32.gmra.mrb[14].mxu0 %v671_v49  ;;  %v231_v49 = vsel %vm214_vm0, %v194_v31, %v195_v41  ;;  %v196_v50 = vrot.slane %v100_v42, 7 }
  0xf0   :  { %v552_v56 = vpop.permute.xlu1 %551  ;;  %v295_v57 = vpop.permute.xlu0 %294  ;;  %910 = vmatprep.mubr.f32.mxu1 %v93_v37  ;;  %1161 = vmatprep.mubr.f32.mxu0 %v1968_v7 }
  0xf1   :  { %v416_v59 = vmul.f32 %v295_v57, %v237_v53  ;;  %v673_v3 = vmul.f32 %v552_v56, %v493_v60  ;;  %v487_v56 = vsel %vm471_vm1, %v454_v39, %v455_v48  ;;  %v456_v57 = vrot.slane %v101_v51, 1  ;;  %v102_v60 = vld [vmem:[#allocation2 + $0x90] sm:$0xff] }
  0xf3   :  { %911 = vmatmul.mubr.f32.gmra.mrb[18].mxu1 %v416_v59  ;;  %1162 = vmatmul.mubr.f32.gmra.mrb[16].mxu0 %v672_v58  ;;  %v230_v58 = vsel %vm214_vm0, %v195_v41, %v196_v50  ;;  %v197_v59 = vrot.slane %v101_v51, 7 }
  0xf4   :  { %v557_v1 = vpop.permute.xlu1 %556  ;;  %v300_v2 = vpop.permute.xlu0 %299  ;;  %916 = vmatprep.mubr.f32.mxu1 %v94_v46  ;;  %1167 = vmatprep.mubr.f32.mxu0 %v1968_v7 }
  0xf5   :  { %v417_v4 = vmul.f32 %v300_v2, %v236_v62  ;;  %v674_v13 = vmul.f32 %v557_v1, %v492_v5  ;;  %v486_v1 = vsel %vm471_vm1, %v455_v48, %v456_v57  ;;  %v457_v2 = vrot.slane %v102_v60, 1  ;;  %v103_v5 = vld [vmem:[#allocation2 + $0x98] sm:$0xff] }
  0xf7   :  { %917 = vmatmul.mubr.f32.gmra.mrb[20].mxu1 %v417_v4  ;;  %1168 = vmatmul.mubr.f32.gmra.mrb[18].mxu0 %v673_v3  ;;  %v229_v3 = vsel %vm214_vm0, %v196_v50, %v197_v59  ;;  %v198_v4 = vrot.slane %v102_v60, 7 }
  0xf8   :  { %v562_v11 = vpop.permute.xlu1 %561  ;;  %v305_v12 = vpop.permute.xlu0 %304  ;;  %922 = vmatprep.mubr.f32.mxu1 %v95_v55  ;;  %1173 = vmatprep.mubr.f32.mxu0 %v1968_v7 }
  0xf9   :  { %v418_v14 = vmul.f32 %v305_v12, %v235_v8  ;;  %v675_v25 = vmul.f32 %v562_v11, %v491_v15  ;;  %v485_v11 = vsel %vm471_vm1, %v456_v57, %v457_v2  ;;  %v458_v12 = vrot.slane %v103_v5, 1  ;;  %v104_v15 = vld [vmem:[#allocation2 + $0xa0] sm:$0xff] }
  0xfb   :  { %923 = vmatmul.mubr.f32.gmra.mrb[22].mxu1 %v418_v14  ;;  %1174 = vmatmul.mubr.f32.gmra.mrb[20].mxu0 %v674_v13  ;;  %v228_v13 = vsel %vm214_vm0, %v197_v59, %v198_v4  ;;  %v199_v14 = vrot.slane %v103_v5, 7 }
  0xfc   :  { %v567_v21 = vpop.permute.xlu1 %566  ;;  %v310_v24 = vpop.permute.xlu0 %309  ;;  %928 = vmatprep.mubr.f32.mxu1 %v96_v0  ;;  %1179 = vmatprep.mubr.f32.mxu0 %v1968_v7 }
  0xfd   :  { %v419_v26 = vmul.f32 %v310_v24, %v234_v17  ;;  %v676_v36 = vmul.f32 %v567_v21, %v490_v27  ;;  %v484_v21 = vsel %vm471_vm1, %v457_v2, %v458_v12  ;;  %v459_v24 = vrot.slane %v104_v15, 1  ;;  %v105_v27 = vld [vmem:[#allocation2 + $0xa8] sm:$0xff] }
  0xff   :  { %929 = vmatmul.mubr.f32.gmra.mrb[24].mxu1 %v419_v26  ;;  %1180 = vmatmul.mubr.f32.gmra.mrb[22].mxu0 %v675_v25  ;;  %v227_v25 = vsel %vm214_vm0, %v198_v4, %v199_v14  ;;  %v200_v26 = vrot.slane %v104_v15, 7 }
 0x100   :  { %v572_v34 = vpop.permute.xlu1 %571  ;;  %v315_v35 = vpop.permute.xlu0 %314  ;;  %934 = vmatprep.mubr.f32.mxu1 %v97_v10  ;;  %1185 = vmatprep.mubr.f32.mxu0 %v1968_v7 }
 0x101   :  { %v420_v37 = vmul.f32 %v315_v35, %v233_v30  ;;  %v677_v45 = vmul.f32 %v572_v34, %v489_v38  ;;  %v483_v34 = vsel %vm471_vm1, %v458_v12, %v459_v24  ;;  %v460_v35 = vrot.slane %v105_v27, 1  ;;  %v106_v38 = vld [vmem:[#allocation2 + $0xb0] sm:$0xff] }
 0x103   :  { %935 = vmatmul.mubr.f32.gmra.mrb[26].mxu1 %v420_v37  ;;  %1186 = vmatmul.mubr.f32.gmra.mrb[24].mxu0 %v676_v36  ;;  %v226_v36 = vsel %vm214_vm0, %v199_v14, %v200_v26  ;;  %v201_v37 = vrot.slane %v105_v27, 7 }
 0x104   :  { %v577_v43 = vpop.permute.xlu1 %576  ;;  %v320_v44 = vpop.permute.xlu0 %319  ;;  %940 = vmatprep.mubr.f32.mxu1 %v98_v20  ;;  %1191 = vmatprep.mubr.f32.mxu0 %v1968_v7 }
 0x105   :  { %v421_v46 = vmul.f32 %v320_v44, %v232_v40  ;;  %v678_v54 = vmul.f32 %v577_v43, %v488_v47  ;;  %v482_v43 = vsel %vm471_vm1, %v459_v24, %v460_v35  ;;  %v461_v44 = vrot.slane %v106_v38, 1  ;;  %v107_v47 = vld [vmem:[#allocation2 + $0xb8] sm:$0xff] }
 0x107   :  { %941 = vmatmul.mubr.f32.gmra.mrb[28].mxu1 %v421_v46  ;;  %1192 = vmatmul.mubr.f32.gmra.mrb[26].mxu0 %v677_v45  ;;  %v225_v45 = vsel %vm214_vm0, %v200_v26, %v201_v37  ;;  %v202_v46 = vrot.slane %v106_v38, 7 }
 0x108   :  { %v582_v52 = vpop.permute.xlu1 %581  ;;  %v325_v53 = vpop.permute.xlu0 %324  ;;  %946 = vmatprep.mubr.f32.mxu1 %v99_v33  ;;  %1197 = vmatprep.mubr.f32.mxu0 %v1968_v7 }
 0x109   :  { %v422_v55 = vmul.f32 %v325_v53, %v231_v49  ;;  %v679_v63 = vmul.f32 %v582_v52, %v487_v56  ;;  %v481_v52 = vsel %vm471_vm1, %v460_v35, %v461_v44  ;;  %v462_v53 = vrot.slane %v107_v47, 1  ;;  %v108_v56 = vld [vmem:[#allocation2 + $0xc0] sm:$0xff] }
 0x10b   :  { %947 = vmatmul.mubr.f32.gmra.mrb[30].mxu1 %v422_v55  ;;  %1198 = vmatmul.mubr.f32.gmra.mrb[28].mxu0 %v678_v54  ;;  %v224_v54 = vsel %vm214_vm0, %v201_v37, %v202_v46  ;;  %v203_v55 = vrot.slane %v107_v47, 7 }
 0x10c   :  { %v587_v61 = vpop.permute.xlu1 %586  ;;  %v330_v62 = vpop.permute.xlu0 %329  ;;  %952 = vmatprep.mubr.f32.mxu1 %v100_v42  ;;  %1203 = vmatprep.mubr.f32.mxu0 %v1968_v7 }
 0x10d   :  { %v423_v0 = vmul.f32 %v330_v62, %v230_v58  ;;  %v680_v9 = vmul.f32 %v587_v61, %v486_v1  ;;  %v480_v61 = vsel %vm471_vm1, %v461_v44, %v462_v53  ;;  %v463_v62 = vrot.slane %v108_v56, 1  ;;  %v109_v1 = vld [vmem:[#allocation2 + $0xc8] sm:$0xff] }
 0x10f   :  { %953 = vmatmul.mubr.f32.gmra.mrb[32].mxu1 %v423_v0  ;;  %1204 = vmatmul.mubr.f32.gmra.mrb[30].mxu0 %v679_v63  ;;  %v223_v63 = vsel %vm214_vm0, %v202_v46, %v203_v55  ;;  %v204_v0 = vrot.slane %v108_v56, 7 }
 0x110   :  { %v592_v6 = vpop.permute.xlu1 %591  ;;  %v335_v8 = vpop.permute.xlu0 %334  ;;  %958 = vmatprep.mubr.f32.mxu1 %v101_v51  ;;  %1209 = vmatprep.mubr.f32.mxu0 %v1968_v7 }
 0x111   :  { %v424_v10 = vmul.f32 %v335_v8, %v229_v3  ;;  %v681_v19 = vmul.f32 %v592_v6, %v485_v11  ;;  %v479_v6 = vsel %vm471_vm1, %v462_v53, %v463_v62  ;;  %v464_v8 = vrot.slane %v109_v1, 1  ;;  %v110_v11 = vld [vmem:[#allocation2 + $0xd0] sm:$0xff] }
 0x113   :  { %959 = vmatmul.mubr.f32.gmra.mrb[34].mxu1 %v424_v10  ;;  %1210 = vmatmul.mubr.f32.gmra.mrb[32].mxu0 %v680_v9  ;;  %v222_v9 = vsel %vm214_vm0, %v203_v55, %v204_v0  ;;  %v205_v10 = vrot.slane %v109_v1, 7 }
 0x114   :  { %v597_v16 = vpop.permute.xlu1 %596  ;;  %v340_v17 = vpop.permute.xlu0 %339  ;;  %964 = vmatprep.mubr.f32.mxu1 %v102_v60  ;;  %1215 = vmatprep.mubr.f32.mxu0 %v1968_v7 }
 0x115   :  { %v425_v20 = vmul.f32 %v340_v17, %v228_v13  ;;  %v682_v31 = vmul.f32 %v597_v16, %v484_v21  ;;  %v478_v16 = vsel %vm471_vm1, %v463_v62, %v464_v8  ;;  %v465_v17 = vrot.slane %v110_v11, 1  ;;  %v111_v21 = vld [vmem:[#allocation2 + $0xd8] sm:$0xff] }
 0x117   :  { %965 = vmatmul.mubr.f32.gmra.mrb[36].mxu1 %v425_v20  ;;  %1216 = vmatmul.mubr.f32.gmra.mrb[34].mxu0 %v681_v19  ;;  %v221_v19 = vsel %vm214_vm0, %v204_v0, %v205_v10  ;;  %v206_v20 = vrot.slane %v110_v11, 7 }
 0x118   :  { %v602_v29 = vpop.permute.xlu1 %601  ;;  %v345_v30 = vpop.permute.xlu0 %344  ;;  %970 = vmatprep.mubr.f32.mxu1 %v103_v5  ;;  %1221 = vmatprep.mubr.f32.mxu0 %v1968_v7 }
 0x119   :  { %v426_v33 = vmul.f32 %v345_v30, %v227_v25  ;;  %v683_v41 = vmul.f32 %v602_v29, %v483_v34  ;;  %v477_v29 = vsel %vm471_vm1, %v464_v8, %v465_v17  ;;  %v466_v30 = vrot.slane %v111_v21, 1  ;;  %v112_v34 = vld [vmem:[#allocation2 + $0xe0] sm:$0xff] }
 0x11b   :  { %971 = vmatmul.mubr.f32.gmra.mrb[38].mxu1 %v426_v33  ;;  %1222 = vmatmul.mubr.f32.gmra.mrb[36].mxu0 %v682_v31  ;;  %v220_v31 = vsel %vm214_vm0, %v205_v10, %v206_v20  ;;  %v207_v33 = vrot.slane %v111_v21, 7 }
 0x11c   :  { %v607_v39 = vpop.permute.xlu1 %606  ;;  %v350_v40 = vpop.permute.xlu0 %349  ;;  %976 = vmatprep.mubr.f32.mxu1 %v104_v15  ;;  %1227 = vmatprep.mubr.f32.mxu0 %v1968_v7 }
 0x11d   :  { %v427_v42 = vmul.f32 %v350_v40, %v226_v36  ;;  %v684_v50 = vmul.f32 %v607_v39, %v482_v43  ;;  %v476_v39 = vsel %vm471_vm1, %v465_v17, %v466_v30  ;;  %v467_v40 = vrot.slane %v112_v34, 1  ;;  %v113_v43 = vld [vmem:[#allocation2 + $0xe8] sm:$0xff] }
 0x11f   :  { %977 = vmatmul.mubr.f32.gmra.mrb[40].mxu1 %v427_v42  ;;  %1228 = vmatmul.mubr.f32.gmra.mrb[38].mxu0 %v683_v41  ;;  %v219_v41 = vsel %vm214_vm0, %v206_v20, %v207_v33  ;;  %v208_v42 = vrot.slane %v112_v34, 7 }
 0x120   :  { %v612_v48 = vpop.permute.xlu1 %611  ;;  %v355_v49 = vpop.permute.xlu0 %354  ;;  %982 = vmatprep.mubr.f32.mxu1 %v105_v27  ;;  %1233 = vmatprep.mubr.f32.mxu0 %v1968_v7 }
 0x121   :  { %v428_v51 = vmul.f32 %v355_v49, %v225_v45  ;;  %v685_v59 = vmul.f32 %v612_v48, %v481_v52  ;;  %v475_v48 = vsel %vm471_vm1, %v466_v30, %v467_v40  ;;  %v468_v49 = vrot.slane %v113_v43, 1  ;;  %v114_v52 = vld [vmem:[#allocation2 + $0xf0] sm:$0xff] }
 0x123   :  { %983 = vmatmul.mubr.f32.gmra.mrb[42].mxu1 %v428_v51  ;;  %1234 = vmatmul.mubr.f32.gmra.mrb[40].mxu0 %v684_v50  ;;  %v218_v50 = vsel %vm214_vm0, %v207_v33, %v208_v42  ;;  %v209_v51 = vrot.slane %v113_v43, 7 }
 0x124   :  { %v617_v57 = vpop.permute.xlu1 %616  ;;  %v360_v58 = vpop.permute.xlu0 %359  ;;  %988 = vmatprep.mubr.f32.mxu1 %v106_v38  ;;  %1239 = vmatprep.mubr.f32.mxu0 %v1968_v7 }
 0x125   :  { %v429_v60 = vmul.f32 %v360_v58, %v224_v54  ;;  %v686_v4 = vmul.f32 %v617_v57, %v480_v61  ;;  %v474_v57 = vsel %vm471_vm1, %v467_v40, %v468_v49  ;;  %v469_v58 = vrot.slane %v114_v52, 1 }
 0x127   :  { %989 = vmatmul.mubr.f32.gmra.mrb[44].mxu1 %v429_v60  ;;  %1240 = vmatmul.mubr.f32.gmra.mrb[42].mxu0 %v685_v59  ;;  %v217_v59 = vsel %vm214_vm0, %v208_v42, %v209_v51  ;;  %v210_v60 = vrot.slane %v114_v52, 7 }
 0x128   :  { %v622_v2 = vpop.permute.xlu1 %621  ;;  %v365_v3 = vpop.permute.xlu0 %364  ;;  %994 = vmatprep.mubr.f32.mxu1 %v107_v47  ;;  %1245 = vmatprep.mubr.f32.mxu0 %v1968_v7 }
 0x129   :  { %v430_v5 = vmul.f32 %v365_v3, %v223_v63  ;;  %v687_v14 = vmul.f32 %v622_v2, %v479_v6  ;;  %v470_v2 = vrot.slane %v2076_v23, 1  ;;  %v216_v3 = vsel %vm214_vm0, %v209_v51, %v210_v60 }
 0x12a   :  { %v215_v10 = vsel %vm214_vm0, %v210_v60, %v211_v28 }
 0x12b   :  { %995 = vmatmul.mubr.f32.gmra.mrb[46].mxu1 %v430_v5  ;;  %1246 = vmatmul.mubr.f32.gmra.mrb[44].mxu0 %v686_v4 }
 0x12c   :  { %v627_v12 = vpop.permute.xlu1 %626  ;;  %v370_v13 = vpop.permute.xlu0 %369  ;;  %1000 = vmatprep.mubr.f32.mxu1 %v108_v56  ;;  %1251 = vmatprep.mubr.f32.mxu0 %v1968_v7 }
 0x12d   :  { %v431_v15 = vmul.f32 %v370_v13, %v222_v9  ;;  %v688_v26 = vmul.f32 %v627_v12, %v478_v16  ;;  %v472_v9 = vsel %vm471_vm1, %v469_v58, %v470_v2 }
 0x12f   :  { %1001 = vmatmul.mubr.f32.gmra.mrb[48].mxu1 %v431_v15  ;;  %1252 = vmatmul.mubr.f32.gmra.mrb[46].mxu0 %v687_v14  ;;  %v503_v15 = vsel %vm471_vm1, %v470_v2, %v439_v32 }
 0x130   :  { %v632_v24 = vpop.permute.xlu1 %631  ;;  %v375_v25 = vpop.permute.xlu0 %374  ;;  %1006 = vmatprep.mubr.f32.mxu1 %v109_v1  ;;  %1257 = vmatprep.mubr.f32.mxu0 %v1968_v7  ;;  %v473_v1 = vsel %vm471_vm1, %v468_v49, %v469_v58 }
 0x131   :  { %v432_v27 = vmul.f32 %v375_v25, %v221_v19  ;;  %v689_v37 = vmul.f32 %v632_v24, %v477_v29 }
 0x133   :  { %1007 = vmatmul.mubr.f32.gmra.mrb[50].mxu1 %v432_v27  ;;  %1258 = vmatmul.mubr.f32.gmra.mrb[48].mxu0 %v688_v26 }
 0x134   :  { %v637_v35 = vpop.permute.xlu1 %636  ;;  %v380_v36 = vpop.permute.xlu0 %379  ;;  %1012 = vmatprep.mubr.f32.mxu1 %v110_v11  ;;  %1263 = vmatprep.mubr.f32.mxu0 %v1968_v7 }
 0x135   :  { %v433_v38 = vmul.f32 %v380_v36, %v220_v31  ;;  %v690_v46 = vmul.f32 %v637_v35, %v476_v39 }
 0x137   :  { %1013 = vmatmul.mubr.f32.gmra.mrb[52].mxu1 %v433_v38  ;;  %1264 = vmatmul.mubr.f32.gmra.mrb[50].mxu0 %v689_v37 }
 0x138   :  { %v642_v44 = vpop.permute.xlu1 %641  ;;  %v385_v45 = vpop.permute.xlu0 %384  ;;  %1018 = vmatprep.mubr.f32.mxu1 %v111_v21  ;;  %1269 = vmatprep.mubr.f32.mxu0 %v1968_v7 }
 0x139   :  { %v434_v47 = vmul.f32 %v385_v45, %v219_v41  ;;  %v691_v55 = vmul.f32 %v642_v44, %v475_v48 }
 0x13b   :  { %1019 = vmatmul.mubr.f32.gmra.mrb[54].mxu1 %v434_v47  ;;  %1270 = vmatmul.mubr.f32.gmra.mrb[52].mxu0 %v690_v46 }
 0x13c   :  { %v647_v53 = vpop.permute.xlu1 %646  ;;  %v390_v54 = vpop.permute.xlu0 %389  ;;  %1024 = vmatprep.mubr.f32.mxu1 %v112_v34  ;;  %1275 = vmatprep.mubr.f32.mxu0 %v1968_v7 }
 0x13d   :  { %v435_v56 = vmul.f32 %v390_v54, %v218_v50  ;;  %v692_v63 = vmul.f32 %v647_v53, %v474_v57 }
 0x13f   :  { %1025 = vmatmul.mubr.f32.gmra.mrb[56].mxu1 %v435_v56  ;;  %1276 = vmatmul.mubr.f32.gmra.mrb[54].mxu0 %v691_v55 }
 0x140   :  { %v652_v61 = vpop.permute.xlu1 %651  ;;  %v395_v62 = vpop.permute.xlu0 %394  ;;  %1030 = vmatprep.mubr.f32.mxu1 %v113_v43  ;;  %1281 = vmatprep.mubr.f32.mxu0 %v1968_v7 }
 0x141   :  { %v436_v0 = vmul.f32 %v395_v62, %v217_v59  ;;  %v693_v6 = vmul.f32 %v652_v61, %v473_v1 }
 0x143   :  { %1031 = vmatmul.mubr.f32.gmra.mrb[58].mxu1 %v436_v0  ;;  %1282 = vmatmul.mubr.f32.gmra.mrb[56].mxu0 %v692_v63 }
 0x144   :  { %v657_v4 = vpop.permute.xlu1 %656  ;;  %v400_v5 = vpop.permute.xlu0 %399  ;;  %1036 = vmatprep.mubr.f32.mxu1 %v114_v52  ;;  %1287 = vmatprep.mubr.f32.mxu0 %v1968_v7 }
 0x145   :  { %v437_v8 = vmul.f32 %v400_v5, %v216_v3  ;;  %v694_v12 = vmul.f32 %v657_v4, %v472_v9 }
 0x147   :  { %1037 = vmatmul.mubr.f32.gmra.mrb[60].mxu1 %v437_v8  ;;  %1288 = vmatmul.mubr.f32.gmra.mrb[58].mxu0 %v693_v6 }
 0x148   :  { %v405_v11 = vpop.permute.xlu0 %404  ;;  %1042 = vmatprep.mubr.f32.mxu1 %v2076_v23  ;;  %1293 = vmatprep.mubr.f32.mxu0 %v1968_v7  ;;  %v662_v14 = vpop.permute.xlu1 %661 }
 0x149   :  { %v438_v13 = vmul.f32 %v405_v11, %v215_v10  ;;  %v695_v28 = vmul.f32 %v662_v14, %v503_v15 }
 0x14b   :  { %1043 = vmatmul.mubr.f32.gmra.mrb[62].mxu1 %v438_v13  ;;  %1294 = vmatmul.mubr.f32.gmra.mrb[60].mxu0 %v694_v12 }
 0x14c   :  { %1299 = vmatprep.mubr.f32.mxu0 %v1968_v7 }
 0x14f   :  { %1300 = vmatmul.mubr.f32.gmra.mrb[62].mxu0 %v695_v28 }
 0x1a2   :  { %v858_v16 = vpop.f32.mrb[0].mxu1 }
 0x1a3   :  { %v860_v17 = vpop.f32.mrb[1].mxu1 }
 0x1a6   :  { %v864_v19 = vpop.f32.mrb[2].mxu1  ;;  %v1115_v23 = vpop.f32.mrb[0].mxu0 }
 0x1a7   :  { %v1116_v20 = vadd.f32 %v1115_v23, %v858_v16  ;;  %v866_v21 = vpop.f32.mrb[3].mxu1  ;;  %v1117_v24 = vpop.f32.mrb[1].mxu0 }
 0x1a8   :  { %v1118_v25 = vadd.f32 %v1117_v24, %v860_v17 }
 0x1a9   :  { %1306 = vst [vmem:[#allocation10] sm:$0xff] %v1116_v20  ;;  %v1450_v31 = vmul.f32 %v1116_v20, %v1116_v20 }
 0x1aa   :  { %1307 = vst [vmem:[#allocation10 + $0x8] sm:$0xff] %v1118_v25  ;;  %v870_v18 = vpop.f32.mrb[4].mxu1  ;;  %v1121_v26 = vpop.f32.mrb[2].mxu0  ;;  %v1451_v34 = vmul.f32 %v1118_v25, %v1118_v25 }
 0x1ab   :  { %v1122_v27 = vadd.f32 %v1121_v26, %v864_v19  ;;  %v872_v32 = vpop.f32.mrb[5].mxu1  ;;  %v1123_v29 = vpop.f32.mrb[3].mxu0 }
 0x1ac   :  { %v1124_v30 = vadd.f32 %v1123_v29, %v866_v21 }
 0x1ad   :  { %1308 = vst [vmem:[#allocation10 + $0x10] sm:$0xff] %v1122_v27  ;;  %v1376_v7 = vadd.f32 %v1122_v27, %v1116_v20  ;;  %v1452_v33 = vmul.f32 %v1122_v27, %v1122_v27 }
 0x1ae   :  { %1309 = vst [vmem:[#allocation10 + $0x18] sm:$0xff] %v1124_v30  ;;  %v1413_v35 = vadd.f32 %v1124_v30, %v1118_v25  ;;  %v1453_v36 = vmul.f32 %v1124_v30, %v1124_v30  ;;  %v876_v37 = vpop.f32.mrb[6].mxu1  ;;  %v1127_v38 = vpop.f32.mrb[4].mxu0 }
 0x1af   :  { %v1514_v39 = vadd.f32 %v1452_v33, %v1450_v31  ;;  %v1128_v40 = vadd.f32 %v1127_v38, %v870_v18  ;;  %v878_v41 = vpop.f32.mrb[7].mxu1  ;;  %v1129_v42 = vpop.f32.mrb[5].mxu0 }
 0x1b0   :  { %v1551_v43 = vadd.f32 %v1453_v36, %v1451_v34  ;;  %v1130_v44 = vadd.f32 %v1129_v42, %v872_v32 }
 0x1b1   :  { %1310 = vst [vmem:[#allocation10 + $0x20] sm:$0xff] %v1128_v40  ;;  %v1377_v45 = vadd.f32 %v1376_v7, %v1128_v40  ;;  %v1454_v46 = vmul.f32 %v1128_v40, %v1128_v40 }
 0x1b2   :  { %1311 = vst [vmem:[#allocation10 + $0x28] sm:$0xff] %v1130_v44  ;;  %v1414_v47 = vadd.f32 %v1413_v35, %v1130_v44  ;;  %v1455_v48 = vmul.f32 %v1130_v44, %v1130_v44  ;;  %v882_v49 = vpop.f32.mrb[8].mxu1  ;;  %v1133_v50 = vpop.f32.mrb[6].mxu0 }
 0x1b3   :  { %v1515_v51 = vadd.f32 %v1514_v39, %v1454_v46  ;;  %v1134_v52 = vadd.f32 %v1133_v50, %v876_v37  ;;  %v884_v53 = vpop.f32.mrb[9].mxu1  ;;  %v1135_v54 = vpop.f32.mrb[7].mxu0 }
 0x1b4   :  { %v1552_v55 = vadd.f32 %v1551_v43, %v1455_v48  ;;  %v1136_v56 = vadd.f32 %v1135_v54, %v878_v41 }
 0x1b5   :  { %1312 = vst [vmem:[#allocation10 + $0x30] sm:$0xff] %v1134_v52  ;;  %v1378_v57 = vadd.f32 %v1377_v45, %v1134_v52  ;;  %v1456_v58 = vmul.f32 %v1134_v52, %v1134_v52 }
 0x1b6   :  { %1313 = vst [vmem:[#allocation10 + $0x38] sm:$0xff] %v1136_v56  ;;  %v1415_v59 = vadd.f32 %v1414_v47, %v1136_v56  ;;  %v1457_v60 = vmul.f32 %v1136_v56, %v1136_v56  ;;  %v888_v61 = vpop.f32.mrb[10].mxu1  ;;  %v1139_v62 = vpop.f32.mrb[8].mxu0 }
 0x1b7   :  { %v1516_v63 = vadd.f32 %v1515_v51, %v1456_v58  ;;  %v1140_v0 = vadd.f32 %v1139_v62, %v882_v49  ;;  %v890_v1 = vpop.f32.mrb[11].mxu1  ;;  %v1141_v2 = vpop.f32.mrb[9].mxu0 }
 0x1b8   :  { %v1553_v3 = vadd.f32 %v1552_v55, %v1457_v60  ;;  %v1142_v4 = vadd.f32 %v1141_v2, %v884_v53 }
 0x1b9   :  { %1314 = vst [vmem:[#allocation10 + $0x40] sm:$0xff] %v1140_v0  ;;  %v1379_v5 = vadd.f32 %v1378_v57, %v1140_v0  ;;  %v1458_v6 = vmul.f32 %v1140_v0, %v1140_v0 }
 0x1ba   :  { %1315 = vst [vmem:[#allocation10 + $0x48] sm:$0xff] %v1142_v4  ;;  %v1416_v8 = vadd.f32 %v1415_v59, %v1142_v4  ;;  %v1459_v9 = vmul.f32 %v1142_v4, %v1142_v4  ;;  %v894_v10 = vpop.f32.mrb[12].mxu1  ;;  %v1145_v11 = vpop.f32.mrb[10].mxu0 }
 0x1bb   :  { %v1517_v12 = vadd.f32 %v1516_v63, %v1458_v6  ;;  %v1146_v13 = vadd.f32 %v1145_v11, %v888_v61  ;;  %v896_v14 = vpop.f32.mrb[13].mxu1  ;;  %v1147_v15 = vpop.f32.mrb[11].mxu0 }
 0x1bc   :  { %v1554_v28 = vadd.f32 %v1553_v3, %v1459_v9  ;;  %v1148_v16 = vadd.f32 %v1147_v15, %v890_v1 }
 0x1bd   :  { %1316 = vst [vmem:[#allocation10 + $0x50] sm:$0xff] %v1146_v13  ;;  %v1380_v17 = vadd.f32 %v1379_v5, %v1146_v13  ;;  %v1460_v19 = vmul.f32 %v1146_v13, %v1146_v13 }
 0x1be   :  { %1317 = vst [vmem:[#allocation10 + $0x58] sm:$0xff] %v1148_v16  ;;  %v1417_v23 = vadd.f32 %v1416_v8, %v1148_v16  ;;  %v1461_v20 = vmul.f32 %v1148_v16, %v1148_v16  ;;  %v900_v21 = vpop.f32.mrb[14].mxu1  ;;  %v1151_v24 = vpop.f32.mrb[12].mxu0 }
 0x1bf   :  { %v1518_v25 = vadd.f32 %v1517_v12, %v1460_v19  ;;  %v1152_v18 = vadd.f32 %v1151_v24, %v894_v10  ;;  %v902_v26 = vpop.f32.mrb[15].mxu1  ;;  %v1153_v27 = vpop.f32.mrb[13].mxu0 }
 0x1c0   :  { %v1555_v32 = vadd.f32 %v1554_v28, %v1461_v20  ;;  %v1154_v29 = vadd.f32 %v1153_v27, %v896_v14 }
 0x1c1   :  { %1318 = vst [vmem:[#allocation10 + $0x60] sm:$0xff] %v1152_v18  ;;  %v1381_v30 = vadd.f32 %v1380_v17, %v1152_v18  ;;  %v1462_v31 = vmul.f32 %v1152_v18, %v1152_v18 }
 0x1c2   :  { %1319 = vst [vmem:[#allocation10 + $0x68] sm:$0xff] %v1154_v29  ;;  %v1418_v7 = vadd.f32 %v1417_v23, %v1154_v29  ;;  %v1463_v33 = vmul.f32 %v1154_v29, %v1154_v29  ;;  %v906_v34 = vpop.f32.mrb[16].mxu1  ;;  %v1157_v35 = vpop.f32.mrb[14].mxu0 }
 0x1c3   :  { %v1519_v36 = vadd.f32 %v1518_v25, %v1462_v31  ;;  %v1158_v37 = vadd.f32 %v1157_v35, %v900_v21  ;;  %v908_v38 = vpop.f32.mrb[17].mxu1  ;;  %v1159_v39 = vpop.f32.mrb[15].mxu0 }
 0x1c4   :  { %v1556_v40 = vadd.f32 %v1555_v32, %v1463_v33  ;;  %v1160_v41 = vadd.f32 %v1159_v39, %v902_v26 }
 0x1c5   :  { %1320 = vst [vmem:[#allocation10 + $0x70] sm:$0xff] %v1158_v37  ;;  %v1382_v42 = vadd.f32 %v1381_v30, %v1158_v37  ;;  %v1464_v43 = vmul.f32 %v1158_v37, %v1158_v37 }
 0x1c6   :  { %1321 = vst [vmem:[#allocation10 + $0x78] sm:$0xff] %v1160_v41  ;;  %v1419_v44 = vadd.f32 %v1418_v7, %v1160_v41  ;;  %v1465_v45 = vmul.f32 %v1160_v41, %v1160_v41  ;;  %v912_v46 = vpop.f32.mrb[18].mxu1  ;;  %v1163_v47 = vpop.f32.mrb[16].mxu0 }
 0x1c7   :  { %v1520_v48 = vadd.f32 %v1519_v36, %v1464_v43  ;;  %v1164_v49 = vadd.f32 %v1163_v47, %v906_v34  ;;  %v914_v50 = vpop.f32.mrb[19].mxu1  ;;  %v1165_v51 = vpop.f32.mrb[17].mxu0 }
 0x1c8   :  { %v1557_v52 = vadd.f32 %v1556_v40, %v1465_v45  ;;  %v1166_v53 = vadd.f32 %v1165_v51, %v908_v38 }
 0x1c9   :  { %1322 = vst [vmem:[#allocation10 + $0x80] sm:$0xff] %v1164_v49  ;;  %v1383_v54 = vadd.f32 %v1382_v42, %v1164_v49  ;;  %v1466_v55 = vmul.f32 %v1164_v49, %v1164_v49 }
 0x1ca   :  { %1323 = vst [vmem:[#allocation10 + $0x88] sm:$0xff] %v1166_v53  ;;  %v1420_v56 = vadd.f32 %v1419_v44, %v1166_v53  ;;  %v1467_v57 = vmul.f32 %v1166_v53, %v1166_v53  ;;  %v918_v58 = vpop.f32.mrb[20].mxu1  ;;  %v1169_v59 = vpop.f32.mrb[18].mxu0 }
 0x1cb   :  { %v1521_v60 = vadd.f32 %v1520_v48, %v1466_v55  ;;  %v1170_v61 = vadd.f32 %v1169_v59, %v912_v46  ;;  %v920_v62 = vpop.f32.mrb[21].mxu1  ;;  %v1171_v63 = vpop.f32.mrb[19].mxu0 }
 0x1cc   :  { %v1558_v0 = vadd.f32 %v1557_v52, %v1467_v57  ;;  %v1172_v1 = vadd.f32 %v1171_v63, %v914_v50 }
 0x1cd   :  { %1324 = vst [vmem:[#allocation10 + $0x90] sm:$0xff] %v1170_v61  ;;  %v1384_v2 = vadd.f32 %v1383_v54, %v1170_v61  ;;  %v1468_v3 = vmul.f32 %v1170_v61, %v1170_v61 }
 0x1ce   :  { %1325 = vst [vmem:[#allocation10 + $0x98] sm:$0xff] %v1172_v1  ;;  %v1421_v4 = vadd.f32 %v1420_v56, %v1172_v1  ;;  %v1469_v5 = vmul.f32 %v1172_v1, %v1172_v1  ;;  %v924_v6 = vpop.f32.mrb[22].mxu1  ;;  %v1175_v8 = vpop.f32.mrb[20].mxu0 }
 0x1cf   :  { %v1522_v9 = vadd.f32 %v1521_v60, %v1468_v3  ;;  %v1176_v10 = vadd.f32 %v1175_v8, %v918_v58  ;;  %v926_v11 = vpop.f32.mrb[23].mxu1  ;;  %v1177_v12 = vpop.f32.mrb[21].mxu0 }
 0x1d0   :  { %v1559_v13 = vadd.f32 %v1558_v0, %v1469_v5  ;;  %v1178_v14 = vadd.f32 %v1177_v12, %v920_v62 }
 0x1d1   :  { %1326 = vst [vmem:[#allocation10 + $0xa0] sm:$0xff] %v1176_v10  ;;  %v1385_v15 = vadd.f32 %v1384_v2, %v1176_v10  ;;  %v1470_v28 = vmul.f32 %v1176_v10, %v1176_v10 }
 0x1d2   :  { %1327 = vst [vmem:[#allocation10 + $0xa8] sm:$0xff] %v1178_v14  ;;  %v1422_v16 = vadd.f32 %v1421_v4, %v1178_v14  ;;  %v1471_v17 = vmul.f32 %v1178_v14, %v1178_v14  ;;  %v930_v19 = vpop.f32.mrb[24].mxu1  ;;  %v1181_v23 = vpop.f32.mrb[22].mxu0 }
 0x1d3   :  { %v1523_v20 = vadd.f32 %v1522_v9, %v1470_v28  ;;  %v1182_v21 = vadd.f32 %v1181_v23, %v924_v6  ;;  %v932_v24 = vpop.f32.mrb[25].mxu1  ;;  %v1183_v25 = vpop.f32.mrb[23].mxu0 }
 0x1d4   :  { %v1560_v18 = vadd.f32 %v1559_v13, %v1471_v17  ;;  %v1184_v26 = vadd.f32 %v1183_v25, %v926_v11 }
 0x1d5   :  { %1328 = vst [vmem:[#allocation10 + $0xb0] sm:$0xff] %v1182_v21  ;;  %v1386_v27 = vadd.f32 %v1385_v15, %v1182_v21  ;;  %v1472_v32 = vmul.f32 %v1182_v21, %v1182_v21 }
 0x1d6   :  { %1329 = vst [vmem:[#allocation10 + $0xb8] sm:$0xff] %v1184_v26  ;;  %v1423_v29 = vadd.f32 %v1422_v16, %v1184_v26  ;;  %v1473_v30 = vmul.f32 %v1184_v26, %v1184_v26  ;;  %v936_v31 = vpop.f32.mrb[26].mxu1  ;;  %v1187_v7 = vpop.f32.mrb[24].mxu0 }
 0x1d7   :  { %v1524_v33 = vadd.f32 %v1523_v20, %v1472_v32  ;;  %v1188_v34 = vadd.f32 %v1187_v7, %v930_v19  ;;  %v938_v35 = vpop.f32.mrb[27].mxu1  ;;  %v1189_v36 = vpop.f32.mrb[25].mxu0 }
 0x1d8   :  { %v1561_v37 = vadd.f32 %v1560_v18, %v1473_v30  ;;  %v1190_v38 = vadd.f32 %v1189_v36, %v932_v24 }
 0x1d9   :  { %1330 = vst [vmem:[#allocation10 + $0xc0] sm:$0xff] %v1188_v34  ;;  %v1387_v39 = vadd.f32 %v1386_v27, %v1188_v34  ;;  %v1474_v40 = vmul.f32 %v1188_v34, %v1188_v34 }
 0x1da   :  { %1331 = vst [vmem:[#allocation10 + $0xc8] sm:$0xff] %v1190_v38  ;;  %v1424_v41 = vadd.f32 %v1423_v29, %v1190_v38  ;;  %v1475_v42 = vmul.f32 %v1190_v38, %v1190_v38  ;;  %v942_v43 = vpop.f32.mrb[28].mxu1  ;;  %v1193_v44 = vpop.f32.mrb[26].mxu0 }
 0x1db   :  { %v1525_v45 = vadd.f32 %v1524_v33, %v1474_v40  ;;  %v1194_v46 = vadd.f32 %v1193_v44, %v936_v31  ;;  %v944_v47 = vpop.f32.mrb[29].mxu1  ;;  %v1195_v48 = vpop.f32.mrb[27].mxu0 }
 0x1dc   :  { %v1562_v49 = vadd.f32 %v1561_v37, %v1475_v42  ;;  %v1196_v50 = vadd.f32 %v1195_v48, %v938_v35 }
 0x1dd   :  { %1332 = vst [vmem:[#allocation10 + $0xd0] sm:$0xff] %v1194_v46  ;;  %v1388_v51 = vadd.f32 %v1387_v39, %v1194_v46  ;;  %v1476_v52 = vmul.f32 %v1194_v46, %v1194_v46 }
 0x1de   :  { %1333 = vst [vmem:[#allocation10 + $0xd8] sm:$0xff] %v1196_v50  ;;  %v1425_v53 = vadd.f32 %v1424_v41, %v1196_v50  ;;  %v1477_v54 = vmul.f32 %v1196_v50, %v1196_v50  ;;  %v948_v55 = vpop.f32.mrb[30].mxu1  ;;  %v1199_v56 = vpop.f32.mrb[28].mxu0 }
 0x1df   :  { %v1526_v57 = vadd.f32 %v1525_v45, %v1476_v52  ;;  %v1200_v58 = vadd.f32 %v1199_v56, %v942_v43  ;;  %v950_v59 = vpop.f32.mrb[31].mxu1  ;;  %v1201_v60 = vpop.f32.mrb[29].mxu0 }
 0x1e0   :  { %v1563_v61 = vadd.f32 %v1562_v49, %v1477_v54  ;;  %v1202_v62 = vadd.f32 %v1201_v60, %v944_v47 }
 0x1e1   :  { %1334 = vst [vmem:[#allocation10 + $0xe0] sm:$0xff] %v1200_v58  ;;  %v1389_v63 = vadd.f32 %v1388_v51, %v1200_v58  ;;  %v1478_v0 = vmul.f32 %v1200_v58, %v1200_v58 }
 0x1e2   :  { %1335 = vst [vmem:[#allocation10 + $0xe8] sm:$0xff] %v1202_v62  ;;  %v1426_v1 = vadd.f32 %v1425_v53, %v1202_v62  ;;  %v1479_v2 = vmul.f32 %v1202_v62, %v1202_v62  ;;  %v954_v3 = vpop.f32.mrb[32].mxu1  ;;  %v1205_v4 = vpop.f32.mrb[30].mxu0 }
 0x1e3   :  { %v1527_v5 = vadd.f32 %v1526_v57, %v1478_v0  ;;  %v1206_v6 = vadd.f32 %v1205_v4, %v948_v55  ;;  %v956_v8 = vpop.f32.mrb[33].mxu1  ;;  %v1207_v9 = vpop.f32.mrb[31].mxu0 }
 0x1e4   :  { %v1564_v10 = vadd.f32 %v1563_v61, %v1479_v2  ;;  %v1208_v11 = vadd.f32 %v1207_v9, %v950_v59 }
 0x1e5   :  { %1336 = vst [vmem:[#allocation10 + $0xf0] sm:$0xff] %v1206_v6  ;;  %v1390_v12 = vadd.f32 %v1389_v63, %v1206_v6  ;;  %v1480_v13 = vmul.f32 %v1206_v6, %v1206_v6 }
 0x1e6   :  { %1337 = vst [vmem:[#allocation10 + $0xf8] sm:$0xff] %v1208_v11  ;;  %v1427_v14 = vadd.f32 %v1426_v1, %v1208_v11  ;;  %v1481_v15 = vmul.f32 %v1208_v11, %v1208_v11  ;;  %v960_v28 = vpop.f32.mrb[34].mxu1  ;;  %v1211_v16 = vpop.f32.mrb[32].mxu0 }
 0x1e7   :  { %v1528_v17 = vadd.f32 %v1527_v5, %v1480_v13  ;;  %v1212_v19 = vadd.f32 %v1211_v16, %v954_v3  ;;  %v962_v23 = vpop.f32.mrb[35].mxu1  ;;  %v1213_v20 = vpop.f32.mrb[33].mxu0 }
 0x1e8   :  { %v1565_v21 = vadd.f32 %v1564_v10, %v1481_v15  ;;  %v1214_v24 = vadd.f32 %v1213_v20, %v956_v8 }
 0x1e9   :  { %1338 = vst [vmem:[#allocation10 + $0x100] sm:$0xff] %v1212_v19  ;;  %v1391_v25 = vadd.f32 %v1390_v12, %v1212_v19  ;;  %v1482_v18 = vmul.f32 %v1212_v19, %v1212_v19 }
 0x1ea   :  { %1339 = vst [vmem:[#allocation10 + $0x108] sm:$0xff] %v1214_v24  ;;  %v1428_v26 = vadd.f32 %v1427_v14, %v1214_v24  ;;  %v1483_v27 = vmul.f32 %v1214_v24, %v1214_v24  ;;  %v966_v32 = vpop.f32.mrb[36].mxu1  ;;  %v1217_v29 = vpop.f32.mrb[34].mxu0 }
 0x1eb   :  { %v1529_v30 = vadd.f32 %v1528_v17, %v1482_v18  ;;  %v1218_v31 = vadd.f32 %v1217_v29, %v960_v28  ;;  %v968_v7 = vpop.f32.mrb[37].mxu1  ;;  %v1219_v33 = vpop.f32.mrb[35].mxu0 }
 0x1ec   :  { %v1566_v34 = vadd.f32 %v1565_v21, %v1483_v27  ;;  %v1220_v35 = vadd.f32 %v1219_v33, %v962_v23 }
 0x1ed   :  { %1340 = vst [vmem:[#allocation10 + $0x110] sm:$0xff] %v1218_v31  ;;  %v1392_v36 = vadd.f32 %v1391_v25, %v1218_v31  ;;  %v1484_v37 = vmul.f32 %v1218_v31, %v1218_v31 }
 0x1ee   :  { %1341 = vst [vmem:[#allocation10 + $0x118] sm:$0xff] %v1220_v35  ;;  %v1429_v38 = vadd.f32 %v1428_v26, %v1220_v35  ;;  %v1485_v39 = vmul.f32 %v1220_v35, %v1220_v35  ;;  %v972_v40 = vpop.f32.mrb[38].mxu1  ;;  %v1223_v41 = vpop.f32.mrb[36].mxu0 }
 0x1ef   :  { %v1530_v42 = vadd.f32 %v1529_v30, %v1484_v37  ;;  %v1224_v43 = vadd.f32 %v1223_v41, %v966_v32  ;;  %v974_v44 = vpop.f32.mrb[39].mxu1  ;;  %v1225_v45 = vpop.f32.mrb[37].mxu0 }
 0x1f0   :  { %v1567_v46 = vadd.f32 %v1566_v34, %v1485_v39  ;;  %v1226_v47 = vadd.f32 %v1225_v45, %v968_v7 }
 0x1f1   :  { %1342 = vst [vmem:[#allocation10 + $0x120] sm:$0xff] %v1224_v43  ;;  %v1393_v48 = vadd.f32 %v1392_v36, %v1224_v43  ;;  %v1486_v49 = vmul.f32 %v1224_v43, %v1224_v43 }
 0x1f2   :  { %1343 = vst [vmem:[#allocation10 + $0x128] sm:$0xff] %v1226_v47  ;;  %v1430_v50 = vadd.f32 %v1429_v38, %v1226_v47  ;;  %v1487_v51 = vmul.f32 %v1226_v47, %v1226_v47  ;;  %v978_v52 = vpop.f32.mrb[40].mxu1  ;;  %v1229_v53 = vpop.f32.mrb[38].mxu0 }
 0x1f3   :  { %v1531_v54 = vadd.f32 %v1530_v42, %v1486_v49  ;;  %v1230_v55 = vadd.f32 %v1229_v53, %v972_v40  ;;  %v980_v56 = vpop.f32.mrb[41].mxu1  ;;  %v1231_v57 = vpop.f32.mrb[39].mxu0 }
 0x1f4   :  { %v1568_v58 = vadd.f32 %v1567_v46, %v1487_v51  ;;  %v1232_v59 = vadd.f32 %v1231_v57, %v974_v44 }
 0x1f5   :  { %1344 = vst [vmem:[#allocation10 + $0x130] sm:$0xff] %v1230_v55  ;;  %v1394_v60 = vadd.f32 %v1393_v48, %v1230_v55  ;;  %v1488_v61 = vmul.f32 %v1230_v55, %v1230_v55 }
 0x1f6   :  { %1345 = vst [vmem:[#allocation10 + $0x138] sm:$0xff] %v1232_v59  ;;  %v1431_v62 = vadd.f32 %v1430_v50, %v1232_v59  ;;  %v1489_v63 = vmul.f32 %v1232_v59, %v1232_v59  ;;  %v984_v0 = vpop.f32.mrb[42].mxu1  ;;  %v1235_v1 = vpop.f32.mrb[40].mxu0 }
 0x1f7   :  { %v1532_v2 = vadd.f32 %v1531_v54, %v1488_v61  ;;  %v1236_v3 = vadd.f32 %v1235_v1, %v978_v52  ;;  %v986_v4 = vpop.f32.mrb[43].mxu1  ;;  %v1237_v5 = vpop.f32.mrb[41].mxu0 }
 0x1f8   :  { %v1569_v6 = vadd.f32 %v1568_v58, %v1489_v63  ;;  %v1238_v8 = vadd.f32 %v1237_v5, %v980_v56 }
 0x1f9   :  { %1346 = vst [vmem:[#allocation10 + $0x140] sm:$0xff] %v1236_v3  ;;  %v1395_v9 = vadd.f32 %v1394_v60, %v1236_v3  ;;  %v1490_v10 = vmul.f32 %v1236_v3, %v1236_v3 }
 0x1fa   :  { %1347 = vst [vmem:[#allocation10 + $0x148] sm:$0xff] %v1238_v8  ;;  %v1432_v11 = vadd.f32 %v1431_v62, %v1238_v8  ;;  %v1491_v12 = vmul.f32 %v1238_v8, %v1238_v8  ;;  %v990_v13 = vpop.f32.mrb[44].mxu1  ;;  %v1241_v14 = vpop.f32.mrb[42].mxu0 }
 0x1fb   :  { %v1533_v15 = vadd.f32 %v1532_v2, %v1490_v10  ;;  %v1242_v28 = vadd.f32 %v1241_v14, %v984_v0  ;;  %v992_v16 = vpop.f32.mrb[45].mxu1  ;;  %v1243_v17 = vpop.f32.mrb[43].mxu0 }
 0x1fc   :  { %v1570_v19 = vadd.f32 %v1569_v6, %v1491_v12  ;;  %v1244_v23 = vadd.f32 %v1243_v17, %v986_v4 }
 0x1fd   :  { %1348 = vst [vmem:[#allocation10 + $0x150] sm:$0xff] %v1242_v28  ;;  %v1396_v20 = vadd.f32 %v1395_v9, %v1242_v28  ;;  %v1492_v21 = vmul.f32 %v1242_v28, %v1242_v28 }
 0x1fe   :  { %1349 = vst [vmem:[#allocation10 + $0x158] sm:$0xff] %v1244_v23  ;;  %v1433_v24 = vadd.f32 %v1432_v11, %v1244_v23  ;;  %v1493_v25 = vmul.f32 %v1244_v23, %v1244_v23  ;;  %v996_v18 = vpop.f32.mrb[46].mxu1  ;;  %v1247_v26 = vpop.f32.mrb[44].mxu0 }
 0x1ff   :  { %v1534_v27 = vadd.f32 %v1533_v15, %v1492_v21  ;;  %v1248_v32 = vadd.f32 %v1247_v26, %v990_v13  ;;  %v998_v29 = vpop.f32.mrb[47].mxu1  ;;  %v1249_v30 = vpop.f32.mrb[45].mxu0 }
 0x200   :  { %v1571_v31 = vadd.f32 %v1570_v19, %v1493_v25  ;;  %v1250_v7 = vadd.f32 %v1249_v30, %v992_v16 }
 0x201   :  { %1350 = vst [vmem:[#allocation10 + $0x160] sm:$0xff] %v1248_v32  ;;  %v1397_v33 = vadd.f32 %v1396_v20, %v1248_v32  ;;  %v1494_v34 = vmul.f32 %v1248_v32, %v1248_v32 }
 0x202   :  { %1351 = vst [vmem:[#allocation10 + $0x168] sm:$0xff] %v1250_v7  ;;  %v1434_v35 = vadd.f32 %v1433_v24, %v1250_v7  ;;  %v1495_v36 = vmul.f32 %v1250_v7, %v1250_v7  ;;  %v1002_v37 = vpop.f32.mrb[48].mxu1  ;;  %v1253_v38 = vpop.f32.mrb[46].mxu0 }
 0x203   :  { %v1535_v39 = vadd.f32 %v1534_v27, %v1494_v34  ;;  %v1254_v40 = vadd.f32 %v1253_v38, %v996_v18  ;;  %v1004_v41 = vpop.f32.mrb[49].mxu1  ;;  %v1255_v42 = vpop.f32.mrb[47].mxu0 }
 0x204   :  { %v1572_v43 = vadd.f32 %v1571_v31, %v1495_v36  ;;  %v1256_v44 = vadd.f32 %v1255_v42, %v998_v29 }
 0x205   :  { %1352 = vst [vmem:[#allocation10 + $0x170] sm:$0xff] %v1254_v40  ;;  %v1398_v45 = vadd.f32 %v1397_v33, %v1254_v40  ;;  %v1496_v46 = vmul.f32 %v1254_v40, %v1254_v40 }
 0x206   :  { %1353 = vst [vmem:[#allocation10 + $0x178] sm:$0xff] %v1256_v44  ;;  %v1435_v47 = vadd.f32 %v1434_v35, %v1256_v44  ;;  %v1497_v48 = vmul.f32 %v1256_v44, %v1256_v44  ;;  %v1008_v49 = vpop.f32.mrb[50].mxu1  ;;  %v1259_v50 = vpop.f32.mrb[48].mxu0 }
 0x207   :  { %v1536_v51 = vadd.f32 %v1535_v39, %v1496_v46  ;;  %v1260_v52 = vadd.f32 %v1259_v50, %v1002_v37  ;;  %v1010_v53 = vpop.f32.mrb[51].mxu1  ;;  %v1261_v54 = vpop.f32.mrb[49].mxu0 }
 0x208   :  { %v1573_v55 = vadd.f32 %v1572_v43, %v1497_v48  ;;  %v1262_v56 = vadd.f32 %v1261_v54, %v1004_v41 }
 0x209   :  { %1354 = vst [vmem:[#allocation10 + $0x180] sm:$0xff] %v1260_v52  ;;  %v1399_v57 = vadd.f32 %v1398_v45, %v1260_v52  ;;  %v1498_v58 = vmul.f32 %v1260_v52, %v1260_v52 }
 0x20a   :  { %1355 = vst [vmem:[#allocation10 + $0x188] sm:$0xff] %v1262_v56  ;;  %v1436_v59 = vadd.f32 %v1435_v47, %v1262_v56  ;;  %v1499_v60 = vmul.f32 %v1262_v56, %v1262_v56  ;;  %v1014_v61 = vpop.f32.mrb[52].mxu1  ;;  %v1265_v62 = vpop.f32.mrb[50].mxu0 }
 0x20b   :  { %v1537_v63 = vadd.f32 %v1536_v51, %v1498_v58  ;;  %v1266_v0 = vadd.f32 %v1265_v62, %v1008_v49  ;;  %v1016_v1 = vpop.f32.mrb[53].mxu1  ;;  %v1267_v2 = vpop.f32.mrb[51].mxu0 }
 0x20c   :  { %v1574_v3 = vadd.f32 %v1573_v55, %v1499_v60  ;;  %v1268_v4 = vadd.f32 %v1267_v2, %v1010_v53 }
 0x20d   :  { %1356 = vst [vmem:[#allocation10 + $0x190] sm:$0xff] %v1266_v0  ;;  %v1400_v5 = vadd.f32 %v1399_v57, %v1266_v0  ;;  %v1500_v6 = vmul.f32 %v1266_v0, %v1266_v0 }
 0x20e   :  { %1357 = vst [vmem:[#allocation10 + $0x198] sm:$0xff] %v1268_v4  ;;  %v1437_v8 = vadd.f32 %v1436_v59, %v1268_v4  ;;  %v1501_v9 = vmul.f32 %v1268_v4, %v1268_v4  ;;  %v1020_v10 = vpop.f32.mrb[54].mxu1  ;;  %v1271_v11 = vpop.f32.mrb[52].mxu0 }
 0x20f   :  { %v1538_v12 = vadd.f32 %v1537_v63, %v1500_v6  ;;  %v1272_v13 = vadd.f32 %v1271_v11, %v1014_v61  ;;  %v1022_v14 = vpop.f32.mrb[55].mxu1  ;;  %v1273_v15 = vpop.f32.mrb[53].mxu0 }
 0x210   :  { %v1575_v28 = vadd.f32 %v1574_v3, %v1501_v9  ;;  %v1274_v16 = vadd.f32 %v1273_v15, %v1016_v1 }
 0x211   :  { %1358 = vst [vmem:[#allocation10 + $0x1a0] sm:$0xff] %v1272_v13  ;;  %v1401_v17 = vadd.f32 %v1400_v5, %v1272_v13  ;;  %v1502_v19 = vmul.f32 %v1272_v13, %v1272_v13 }
 0x212   :  { %1359 = vst [vmem:[#allocation10 + $0x1a8] sm:$0xff] %v1274_v16  ;;  %v1438_v23 = vadd.f32 %v1437_v8, %v1274_v16  ;;  %v1503_v20 = vmul.f32 %v1274_v16, %v1274_v16  ;;  %v1026_v21 = vpop.f32.mrb[56].mxu1  ;;  %v1277_v24 = vpop.f32.mrb[54].mxu0 }
 0x213   :  { %v1539_v25 = vadd.f32 %v1538_v12, %v1502_v19  ;;  %v1278_v18 = vadd.f32 %v1277_v24, %v1020_v10  ;;  %v1028_v26 = vpop.f32.mrb[57].mxu1  ;;  %v1279_v27 = vpop.f32.mrb[55].mxu0 }
 0x214   :  { %v1576_v32 = vadd.f32 %v1575_v28, %v1503_v20  ;;  %v1280_v29 = vadd.f32 %v1279_v27, %v1022_v14 }
 0x215   :  { %1360 = vst [vmem:[#allocation10 + $0x1b0] sm:$0xff] %v1278_v18  ;;  %v1402_v30 = vadd.f32 %v1401_v17, %v1278_v18  ;;  %v1504_v31 = vmul.f32 %v1278_v18, %v1278_v18 }
 0x216   :  { %1361 = vst [vmem:[#allocation10 + $0x1b8] sm:$0xff] %v1280_v29  ;;  %v1439_v7 = vadd.f32 %v1438_v23, %v1280_v29  ;;  %v1505_v33 = vmul.f32 %v1280_v29, %v1280_v29  ;;  %v1032_v34 = vpop.f32.mrb[58].mxu1  ;;  %v1283_v35 = vpop.f32.mrb[56].mxu0 }
 0x217   :  { %v1540_v36 = vadd.f32 %v1539_v25, %v1504_v31  ;;  %v1284_v37 = vadd.f32 %v1283_v35, %v1026_v21  ;;  %v1034_v38 = vpop.f32.mrb[59].mxu1  ;;  %v1285_v39 = vpop.f32.mrb[57].mxu0 }
 0x218   :  { %v1577_v40 = vadd.f32 %v1576_v32, %v1505_v33  ;;  %v1286_v41 = vadd.f32 %v1285_v39, %v1028_v26 }
 0x219   :  { %1362 = vst [vmem:[#allocation10 + $0x1c0] sm:$0xff] %v1284_v37  ;;  %v1403_v42 = vadd.f32 %v1402_v30, %v1284_v37  ;;  %v1506_v43 = vmul.f32 %v1284_v37, %v1284_v37 }
 0x21a   :  { %1363 = vst [vmem:[#allocation10 + $0x1c8] sm:$0xff] %v1286_v41  ;;  %v1440_v44 = vadd.f32 %v1439_v7, %v1286_v41  ;;  %v1507_v45 = vmul.f32 %v1286_v41, %v1286_v41  ;;  %v1038_v46 = vpop.f32.mrb[60].mxu1  ;;  %v1289_v47 = vpop.f32.mrb[58].mxu0 }
 0x21b   :  { %v1541_v48 = vadd.f32 %v1540_v36, %v1506_v43  ;;  %v1290_v49 = vadd.f32 %v1289_v47, %v1032_v34  ;;  %v1040_v50 = vpop.f32.mrb[61].mxu1  ;;  %v1291_v51 = vpop.f32.mrb[59].mxu0 }
 0x21c   :  { %v1578_v52 = vadd.f32 %v1577_v40, %v1507_v45  ;;  %v1292_v53 = vadd.f32 %v1291_v51, %v1034_v38 }
 0x21d   :  { %1364 = vst [vmem:[#allocation10 + $0x1d0] sm:$0xff] %v1290_v49  ;;  %v1404_v54 = vadd.f32 %v1403_v42, %v1290_v49  ;;  %v1508_v55 = vmul.f32 %v1290_v49, %v1290_v49 }
 0x21e   :  { %1365 = vst [vmem:[#allocation10 + $0x1d8] sm:$0xff] %v1292_v53  ;;  %v1441_v56 = vadd.f32 %v1440_v44, %v1292_v53  ;;  %v1509_v57 = vmul.f32 %v1292_v53, %v1292_v53  ;;  %v1044_v58 = vpop.f32.mrb[62].mxu1  ;;  %v1295_v59 = vpop.f32.mrb[60].mxu0 }
 0x21f   :  { %v1542_v60 = vadd.f32 %v1541_v48, %v1508_v55  ;;  %v1296_v61 = vadd.f32 %v1295_v59, %v1038_v46  ;;  %v1046_v62 = vpop.f32.mrb[63].mxu1  ;;  %v1297_v63 = vpop.f32.mrb[61].mxu0 }
 0x220   :  { %v1579_v0 = vadd.f32 %v1578_v52, %v1509_v57  ;;  %v1298_v1 = vadd.f32 %v1297_v63, %v1040_v50 }
 0x221   :  { %1366 = vst [vmem:[#allocation10 + $0x1e0] sm:$0xff] %v1296_v61  ;;  %v1405_v2 = vadd.f32 %v1404_v54, %v1296_v61  ;;  %v1510_v3 = vmul.f32 %v1296_v61, %v1296_v61 }
 0x222   :  { %1367 = vst [vmem:[#allocation10 + $0x1e8] sm:$0xff] %v1298_v1  ;;  %v1442_v4 = vadd.f32 %v1441_v56, %v1298_v1  ;;  %v1511_v5 = vmul.f32 %v1298_v1, %v1298_v1  ;;  %v1301_v6 = vpop.f32.mrb[62].mxu0 }
 0x223   :  { %v1543_v8 = vadd.f32 %v1542_v60, %v1510_v3  ;;  %v1302_v9 = vadd.f32 %v1301_v6, %v1044_v58  ;;  %v1303_v10 = vpop.f32.mrb[63].mxu0 }
 0x224   :  { %v1580_v11 = vadd.f32 %v1579_v0, %v1511_v5  ;;  %v1304_v12 = vadd.f32 %v1303_v10, %v1046_v62 }
 0x225   :  { %1368 = vst [vmem:[#allocation10 + $0x1f0] sm:$0xff] %v1302_v9  ;;  %v1406_v13 = vadd.f32 %v1405_v2, %v1302_v9  ;;  %v1512_v14 = vmul.f32 %v1302_v9, %v1302_v9 }
 0x226   :  { %1369 = vst [vmem:[#allocation10 + $0x1f8] sm:$0xff] %v1304_v12  ;;  %v1443_v15 = vadd.f32 %v1442_v4, %v1304_v12  ;;  %v1513_v28 = vmul.f32 %v1304_v12, %v1304_v12 }
 0x227   :  { %v1407_v16 = vrot.slane %v1406_v13, 4  ;;  %v1544_v17 = vadd.f32 %v1543_v8, %v1512_v14 }
 0x228   :  { %1916 = shalt.err (!%p1913_p8)
}
 0x229   :  { %s1917_s22 = scalar_lea.hbm %s2284_s4, 8192 }
 0x22a   :  { %p1918_p9 = scmp.ne.s32.totalorder %s2284_s4, %s1917_s22  ;;  %p1921_p10 = scmp.lt.u32.totalorder %s1917_s22, %s2284_s4 }
 0x22c   :  { %p1923_p11 = pnand %p1921_p10, %p1918_p9 }
 0x22e   :  { %1926 = shalt.err (!%p1923_p11)
}
 0x22f   :  { %1620 = dma.vmem_to_hbm [thread:$0]  %s1615_s1, 8192, %s2284_s4, [#allocation4], %s1960_s28, %s1960_s28, %s1961_s29   ;;  %v1444_v19 = vrot.slane %v1443_v15, 4  ;;  %v1581_v23 = vadd.f32 %v1580_v11, %v1513_v28  ;;  %v1408_v20 = vadd.f32 %v1407_v16, %v1406_v13  ;;  %v1545_v21 = vrot.slane %v1544_v17, 4  ;;  %v1375_v50 = vld [vmem:[#allocation11] sm:$0xf] }
 0x230   :  { %v1970_v31 = vmov 1983009808   ;;  %vm1588_vm2 = vcmask 1040384   ;;  %s1971_s4 = smov [#allocation11]  }
 0x231   :  { %v1445_v24 = vadd.f32 %v1444_v19, %v1443_v15  ;;  %v1582_v25 = vrot.slane %v1581_v23, 4  ;;  %v1409_v18 = vrot.slane %v1408_v20, 2  ;;  %v1546_v26 = vadd.f32 %v1545_v21, %v1544_v17  ;;  %s1627_s28 = sshll.u32 %s1971_s4, 4  ;;  %s1628_s28 = int_to_ptr.vmem [resolvable:$true] %s1627_s28 }
 0x232   :  { %v1595_v7 = vunpack.c.l.s4 %v1970_v31  ;;  %s1927_s29 = scalar_lea.vmem %s1628_s28, 64  ;;  %p1932_p13 = scmp.lt.s32.totalorder %s1628_s28, %s1628_s28 }
 0x233   :  { %v1446_v27 = vrot.slane %v1445_v24, 2  ;;  %v1583_v32 = vadd.f32 %v1582_v25, %v1581_v23  ;;  %v1410_v29 = vadd.f32 %v1409_v18, %v1408_v20  ;;  %v1547_v30 = vrot.slane %v1546_v26, 2  ;;  %p1928_p12 = scmp.ne.s32.totalorder %s1628_s28, %s1927_s29  ;;  %p1933_p0 = scmp.lt.s32.totalorder %s1927_s29, %s1927_s29 }
 0x234   :  { %v1596_v40 = vunpack.c.0.s8 %v1595_v7 }
 0x235   :  { %v1447_v33 = vadd.f32 %v1446_v27, %v1445_v24  ;;  %v1584_v34 = vrot.slane %v1583_v32, 2  ;;  %v1411_v35 = vrot.slane %v1410_v29, 1  ;;  %v1548_v36 = vadd.f32 %v1547_v30, %v1546_v26  ;;  %p1934_p1 = por %p1933_p0, %p1932_p13 }
 0x236   :  { %v1599_v47 = vsub.s32 %v1596_v40, %v2074_v22 }
 0x237   :  { %v1448_v37 = vrot.slane %v1447_v33, 1  ;;  %v1585_v38 = vadd.f32 %v1584_v34, %v1583_v32  ;;  %v1549_v39 = vrot.slane %v1548_v36, 1  ;;  %v1412_v42 = vadd.f32 %v1411_v35, %v1410_v29  ;;  %p1935_p2 = pnand %p1934_p1, %p1928_p12 }
 0x239   :  { %v1586_v41 = vrot.slane %v1585_v38, 1  ;;  %v1550_v43 = vadd.f32 %v1549_v39, %v1548_v36  ;;  %v1449_v44 = vadd.f32 %v1448_v37, %v1447_v33 }
 0x23b   :  { %v1587_v45 = vadd.f32 %v1586_v41, %v1585_v38  ;;  %v1589_v46 = vsel %vm1588_vm2, %v1412_v42, %v1550_v43 }
 0x23d   :  { %v1590_v48 = vsel %vm1588_vm2, %v1449_v44, %v1587_v45 }
 0x23e   :  { %v1593_v49 = vcombine.low %v1589_v46, %v1590_v48 }
 0x240   :  { %v1600_v51 = vrot.slane %v1593_v49, %v1599_v47 }
 0x242   :  { %v1602_v52 = vadd.f32 %v1600_v51, %v1375_v50 }
 0x244   :  { %1603 = vst [vmem:[#allocation11] sm:$0xf] %v1602_v52 }
 0x245   :  { %1938 = shalt.err (!%p1935_p2)
}
 0x246   :  { %s1939_s0 = scalar_lea.hbm %s2285_s5, 64 }
 0x247   :  { %p1940_p3 = scmp.ne.s32.totalorder %s2285_s5, %s1939_s0  ;;  %p1943_p4 = scmp.lt.u32.totalorder %s1939_s0, %s2285_s5 }
 0x249   :  { %p1945_p5 = pnand %p1943_p4, %p1940_p3 }
 0x24b   :  { %1948 = shalt.err (!%p1945_p5)
}
 0x24c   :  { %1630 = dma.vmem_to_hbm [thread:$0]  %s1628_s28, 64, %s2285_s5, [#allocation12]  }
 0x24d   :  { %1955 = dma.done.wait [#allocation4], 8192  }
 0x24e   :  { %1956 = vsyncadd [#allocation4], 4294959104 }
 0x24f   :  { %1957 = dma.done.wait [#allocation12], 64  }
 0x250   :  { %1958 = vsyncadd [#allocation12], 4294967232 }
 0x251   :  { %1637 = vsyncpa [#allocation3], 1 }
 0x252   :  { %1638 = vsyncpa [#allocation6], 1 }
 0x253   :  { %1639 = vsyncpa [#allocation9], 1 }
 0x254   :  { %1640 = vsyncpa [#allocation4], 1 }
 0x255   :  { %1641 = vsyncpa [#allocation12], 1 }

</bundles_post_ra>
